<compile_context>
chip_gen: v7x
topology: tpu7x:2x2x1
jax: 0.10.0
libtpu: 0.0.40
codegen_flags: <defaults>
</compile_context>

<pallas_src>
import functools

import numpy as np
import jax
import jax.numpy as jnp
from jax import lax
from jax.experimental import pallas as pl
from jax.experimental.pallas import tpu as pltpu


def _up_conv_kernel(x_ref, w_ref, b_ref, o_ref):
    """Fused ConvTranspose2d(k=2,s=2) + folded-BN bias + ReLU + pixel shuffle.

    x_ref: (Cin, th, W)  input rows (f32/bf16; cast to bf16 here, not in wrapper)
    w_ref: (4*Cout, Cin) bf16 folded weights, row p = (2*ky + kx)*Cout + co
    b_ref: (4*Cout, 1)   f32 folded bias
    o_ref: (Cout, th, 2*W) uint32; each u32 packs (bf16 kx=0 | bf16 kx=1 << 16) and
           lane j = ky*W + w, which is bit-identical to the final NCHW bf16 layout.
    """
    _, th, W = x_ref.shape
    cout = o_ref.shape[0]
    w = w_ref[...]
    b = b_ref[...]
    hi_mask = jnp.uint32(0xFFFF0000)

    def bf16_bits(v):
        # f32 -> u32 whose HIGH 16 bits hold the RNE-rounded bf16 bit pattern.
        return pltpu.bitcast(v.astype(jnp.bfloat16).astype(jnp.float32), jnp.uint32)

    # Static unroll over the rows of this tile (th is bounded by the tile picker).
    for i in range(th):
        xi = x_ref[:, i, :].astype(jnp.bfloat16)                   # (Cin, W)
        # One lane-dense MXU matmul per row: all 4 taps in the M dimension.
        acc = jnp.dot(w, xi, preferred_element_type=jnp.float32)   # (4*Cout, W)
        z = jnp.maximum(acc + b, 0.0)                              # folded-BN bias + ReLU
        for ky in range(2):
            lo = bf16_bits(z[(2 * ky) * cout:(2 * ky + 1) * cout, :])      # kx = 0
            hi = bf16_bits(z[(2 * ky + 1) * cout:(2 * ky + 2) * cout, :])  # kx = 1
            # kx interleave done by the bf16-pair pack; ky halves sit side by side.
            o_ref[:, i, ky * W:(ky + 1) * W] = (lo >> 16) | (hi & hi_mask)


def _vmem_budget_and_limit():
    """Per-step VMEM budget for the tile picker + scoped-VMEM limit to request."""
    cap = 64 * 1024 * 1024                      # conservative fallback (v7x size)
    try:
        cap = int(pltpu.get_tpu_info().vmem_capacity_bytes)
    except Exception:
        pass
    budget = min(24 * 1024 * 1024, cap // 4)    # ~16 MiB on v7x, 24 MiB on v5e/v6e
    limit = max(32 * 1024 * 1024, min((cap * 9) // 10, 112 * 1024 * 1024))
    return budget, limit


def _pick_row_tile(H, W, Cin, Cout, n_batch, vmem_budget, max_rows=64):
    """Input rows per grid step: a multiple of 8 dividing H (or H itself) so the
    block's sublane dim satisfies the (8,128) rule, sized to the VMEM budget."""
    def step_bytes(th):
        x_blk = Cin * th * W * 4                 # f32 input block
        o_blk = Cout * th * 2 * W * 4            # packed u32 output block (== bf16 bytes)
        w_b = 4 * Cout * Cin * 2 + 4 * Cout * 4  # resident weights + bias
        return 2 * (x_blk + o_blk) + 2 * w_b     # x2: double-buffered pipeline stages

    cands = [d for d in range(8, min(H, max_rows) + 1, 8) if H % d == 0]
    if not cands:
        cands = [H]                              # H < 8 or H not a multiple of 8
    th = cands[0]
    for c in cands:
        if step_bytes(c) <= vmem_budget:
            th = max(th, c)
    # Keep at least 2 grid steps when possible so both v7x TensorCores are fed.
    if n_batch * (H // th) < 2:
        smaller = [c for c in cands if H // c >= 2 and step_bytes(c) <= vmem_budget]
        if smaller:
            th = max(smaller)
    return th


@functools.lru_cache(maxsize=1)
def _u32_low_half_is_index0():
    """XLA bitcast-convert u32 -> 2 x u16: does index 0 hold the low 16 bits?"""
    halves = jax.lax.bitcast_convert_type(jnp.array([1 << 16], jnp.uint32), jnp.uint16)
    return bool(np.asarray(halves)[0, 0] == 0)


def up_conv_pallas(x, wt, b, gamma, beta, mean, var, eps=1e-5, out_dtype=jnp.bfloat16):
    """UpConv forward.  x: (N, Cin, H, W) NCHW; wt: (Cin, Cout, 2, 2) PyTorch layout.

    Returns (N, Cout, 2H, 2W).  Default out_dtype=bfloat16 halves output HBM traffic;
    pass jnp.float32 for an f32 copy (costs one extra elementwise HBM pass).
    """
    N, Cin, H, W = x.shape
    Cout = wt.shape[1]

    # ---- fold eval-mode BatchNorm into the transposed-conv weights / bias (in f32) ----
    scale = gamma / jnp.sqrt(var + eps)                       # (Cout,)
    w_folded = wt * scale[None, :, None, None]                # (Cin, Cout, 2, 2)
    b_folded = (b - mean) * scale + beta                      # (Cout,)

    # Pack the 4 taps into matmul rows: p = (2*ky + kx)*Cout + co  (lane-dense output).
    w_packed = jnp.transpose(w_folded, (2, 3, 1, 0)).reshape(4 * Cout, Cin)
    w_packed = w_packed.astype(jnp.bfloat16)
    b_packed = jnp.tile(b_folded, 4).reshape(4 * Cout, 1).astype(jnp.float32)

    vmem_budget, vmem_limit = _vmem_budget_and_limit()
    th = _pick_row_tile(H, W, Cin, Cout, N, vmem_budget)
    grid = (N, H // th)

    cost = pl.CostEstimate(
        flops=int(2 * N * H * W * Cin * 4 * Cout),
        transcendentals=0,
        bytes_accessed=int(x.size * x.dtype.itemsize
                           + w_packed.size * 2
                           + N * Cout * H * 2 * W * 4),
    )

    out_u32 = pl.pallas_call(
        _up_conv_kernel,
        out_shape=jax.ShapeDtypeStruct((N, Cout, H, 2 * W), jnp.uint32),
        grid_spec=pltpu.PrefetchScalarGridSpec(
            num_scalar_prefetch=0,
            grid=grid,
            in_specs=[
                pl.BlockSpec((None, Cin, th, W), lambda n, t: (n, 0, t, 0)),
                pl.BlockSpec((4 * Cout, Cin), lambda n, t: (0, 0)),
                pl.BlockSpec((4 * Cout, 1), lambda n, t: (0, 0)),
            ],
            out_specs=pl.BlockSpec((None, Cout, th, 2 * W), lambda n, t: (n, 0, t, 0)),
        ),
        compiler_params=pltpu.CompilerParams(
            dimension_semantics=("parallel", "parallel"),
            vmem_limit_bytes=int(vmem_limit)),
        cost_estimate=cost,
    )(x, w_packed, b_packed)

    # ---- unpack: bitcast + contiguous reshapes only (no transpose, no HBM shuffle) ----
    pairs = jax.lax.bitcast_convert_type(out_u32, jnp.uint16)     # (N, Cout, H, 2W, 2)
    pairs = jax.lax.bitcast_convert_type(pairs, jnp.bfloat16)
    if not _u32_low_half_is_index0():
        pairs = pairs[..., ::-1]   # defensive: only taken if XLA packs high bits first
    out = pairs.reshape(N, Cout, 2 * H, 2 * W)
    if out_dtype != jnp.bfloat16:
        out = out.astype(out_dtype)
    return out


def up_conv_ref(x, wt, b, gamma, beta, mean, var, eps=1e-5):
    """Pure-JAX reference with PyTorch semantics (NCHW, eval-mode BatchNorm)."""
    wf = jnp.transpose(jnp.flip(wt, axis=(2, 3)), (1, 0, 2, 3))   # (Cout, Cin, 2, 2)
    y = lax.conv_general_dilated(
        x, wf, window_strides=(1, 1),
        padding=[(1, 1), (1, 1)],
        lhs_dilation=(2, 2),
        dimension_numbers=('NCHW', 'OIHW', 'NCHW'),
        precision=lax.Precision.HIGHEST) + b[None, :, None, None]
    y = (y - mean[None, :, None, None]) / jnp.sqrt(var[None, :, None, None] + eps)
    y = y * gamma[None, :, None, None] + beta[None, :, None, None]
    return jnp.maximum(y, 0.0)


if __name__ == "__main__":
    key = jax.random.PRNGKey(0)
    kx, kw, kb, kg, kbe, km, kv = jax.random.split(key, 7)

    N, Cin, H, W = 2, 4, 16, 16
    Cout = 8

    x = jax.random.normal(kx, (N, Cin, H, W), jnp.float32)
    # PyTorch ConvTranspose2d weight layout: (in_channels, out_channels, kH, kW)
    wt = jax.random.normal(kw, (Cin, Cout, 2, 2), jnp.float32) / np.sqrt(Cin * 4)
    b = 0.1 * jax.random.normal(kb, (Cout,), jnp.float32)
    gamma = 1.0 + 0.2 * jax.random.normal(kg, (Cout,), jnp.float32)
    beta = 0.1 * jax.random.normal(kbe, (Cout,), jnp.float32)
    mean = 0.1 * jax.random.normal(km, (Cout,), jnp.float32)
    var = jax.random.uniform(kv, (Cout,), jnp.float32, minval=0.8, maxval=1.2)

    out = up_conv_pallas(x, wt, b, gamma, beta, mean, var)
    out = jax.block_until_ready(out)

    ref = up_conv_ref(x, wt, b, gamma, beta, mean, var)
    assert out.shape == (N, Cout, 2 * H, 2 * W), out.shape
    # bf16 matmul inputs + bf16-rounded output, f32 accumulation -> bf16 tolerance.
    np.testing.assert_allclose(np.asarray(out.astype(jnp.float32)), np.asarray(ref),
                               rtol=2e-2, atol=3e-2)
    print("KERNEL_OK")
</pallas_src>

<mosaic_0001>
module attributes {stable_mosaic.version = 11 : i64} {
  func.func @_up_conv_kernel(%arg0: i32, %arg1: i32, %arg2: memref<1x4x16x16xf32, #tpu.memory_space<vmem>>, %arg3: memref<32x4xbf16, #tpu.memory_space<vmem>>, %arg4: memref<32x1xf32, #tpu.memory_space<vmem>>, %arg5: memref<1x8x16x32xi32, #tpu.memory_space<vmem>>) attributes {dimension_semantics = [#tpu.dimension_semantics<parallel>, #tpu.dimension_semantics<parallel>], iteration_bounds = array<i64: 2, 1>, scalar_prefetch = 0 : i64, scratch_operands = 0 : i64, tpu.core_type = #tpu.core_type<tc>, window_params = [{transform_indices = @transform_0, window_bounds = array<i64: 1, 4, 16, 16>}, {pipeline_mode = #tpu.pipeline_mode<synchronous>, transform_indices = @transform_1, window_bounds = array<i64: 32, 4>}, {pipeline_mode = #tpu.pipeline_mode<synchronous>, transform_indices = @transform_2, window_bounds = array<i64: 32, 1>}, {transform_indices = @transform_3, window_bounds = array<i64: 1, 8, 16, 32>}]} {
    %c0 = arith.constant 0 : index
    %c0_0 = arith.constant 0 : index
    %0 = vector.load %arg3[%c0, %c0_0] : memref<32x4xbf16, #tpu.memory_space<vmem>>, vector<32x4xbf16>
    %c0_1 = arith.constant 0 : index
    %c0_2 = arith.constant 0 : index
    %1 = vector.load %arg4[%c0_1, %c0_2] : memref<32x1xf32, #tpu.memory_space<vmem>>, vector<32x1xf32>
    %c0_3 = arith.constant 0 : index
    %c0_4 = arith.constant 0 : index
    %c0_5 = arith.constant 0 : index
    %c0_6 = arith.constant 0 : index
    %2 = vector.load %arg2[%c0_3, %c0_4, %c0_5, %c0_6] : memref<1x4x16x16xf32, #tpu.memory_space<vmem>>, vector<1x4x1x16xf32>
    %3 = vector.shape_cast %2 : vector<1x4x1x16xf32> to vector<4x16xf32>
    %4 = arith.truncf %3 : vector<4x16xf32> to vector<4x16xbf16>
    %cst = arith.constant dense<0.000000e+00> : vector<32x16xf32>
    %5 = tpu.matmul %0, %4, %cst {dimension_numbers = #tpu.dot_dimension_numbers<[1], [0], [0], [1], [0, 0, 1, 1], [], []>} : vector<32x4xbf16>, vector<4x16xbf16>, vector<32x16xf32> -> vector<32x16xf32>
    %6 = vector.broadcast %1 : vector<32x1xf32> to vector<32x16xf32>
    %7 = arith.addf %5, %6 : vector<32x16xf32>
    %cst_7 = arith.constant 0.000000e+00 : f32
    %8 = vector.broadcast %cst_7 : f32 to vector<32x16xf32>
    %9 = arith.maximumf %7, %8 : vector<32x16xf32>
    %10 = vector.extract_strided_slice %9 {offsets = [0, 0], sizes = [8, 16], strides = [1, 1]} : vector<32x16xf32> to vector<8x16xf32>
    %11 = arith.truncf %10 : vector<8x16xf32> to vector<8x16xbf16>
    %12 = arith.extf %11 : vector<8x16xbf16> to vector<8x16xf32>
    %13 = tpu.bitcast %12 : vector<8x16xf32> -> vector<8x16xi32>
    %14 = vector.extract_strided_slice %9 {offsets = [8, 0], sizes = [8, 16], strides = [1, 1]} : vector<32x16xf32> to vector<8x16xf32>
    %15 = arith.truncf %14 : vector<8x16xf32> to vector<8x16xbf16>
    %16 = arith.extf %15 : vector<8x16xbf16> to vector<8x16xf32>
    %17 = tpu.bitcast %16 : vector<8x16xf32> -> vector<8x16xi32>
    %c16_i32 = arith.constant 16 : i32
    %18 = vector.broadcast %c16_i32 : i32 to vector<8x16xi32>
    %19 = arith.shrui %13, %18 : vector<8x16xi32>
    %c-65536_i32 = arith.constant -65536 : i32
    %20 = vector.broadcast %c-65536_i32 : i32 to vector<8x16xi32>
    %21 = arith.andi %17, %20 : vector<8x16xi32>
    %22 = arith.ori %19, %21 : vector<8x16xi32>
    %c0_8 = arith.constant 0 : index
    %c0_9 = arith.constant 0 : index
    %c0_10 = arith.constant 0 : index
    %c0_11 = arith.constant 0 : index
    %23 = vector.load %arg5[%c0_8, %c0_9, %c0_10, %c0_11] : memref<1x8x16x32xi32, #tpu.memory_space<vmem>>, vector<1x8x1x16xi32>
    %24 = vector.shape_cast %23 : vector<1x8x1x16xi32> to vector<8x16xi32>
    %25 = vector.shape_cast %22 : vector<8x16xi32> to vector<1x8x1x16xi32>
    tpu.vector_store %arg5[%c0_8, %c0_9, %c0_10, %c0_11], %25 {strides = array<i32>} : memref<1x8x16x32xi32, #tpu.memory_space<vmem>>, vector<1x8x1x16xi32>,
    %26 = vector.extract_strided_slice %9 {offsets = [16, 0], sizes = [8, 16], strides = [1, 1]} : vector<32x16xf32> to vector<8x16xf32>
    %27 = arith.truncf %26 : vector<8x16xf32> to vector<8x16xbf16>
    %28 = arith.extf %27 : vector<8x16xbf16> to vector<8x16xf32>
    %29 = tpu.bitcast %28 : vector<8x16xf32> -> vector<8x16xi32>
    %30 = vector.extract_strided_slice %9 {offsets = [24, 0], sizes = [8, 16], strides = [1, 1]} : vector<32x16xf32> to vector<8x16xf32>
    %31 = arith.truncf %30 : vector<8x16xf32> to vector<8x16xbf16>
    %32 = arith.extf %31 : vector<8x16xbf16> to vector<8x16xf32>
    %33 = tpu.bitcast %32 : vector<8x16xf32> -> vector<8x16xi32>
    %c16_i32_12 = arith.constant 16 : i32
    %34 = vector.broadcast %c16_i32_12 : i32 to vector<8x16xi32>
    %35 = arith.shrui %29, %34 : vector<8x16xi32>
    %c-65536_i32_13 = arith.constant -65536 : i32
    %36 = vector.broadcast %c-65536_i32_13 : i32 to vector<8x16xi32>
    %37 = arith.andi %33, %36 : vector<8x16xi32>
    %38 = arith.ori %35, %37 : vector<8x16xi32>
    %c0_14 = arith.constant 0 : index
    %c0_15 = arith.constant 0 : index
    %c0_16 = arith.constant 0 : index
    %c16 = arith.constant 16 : index
    %39 = vector.load %arg5[%c0_14, %c0_15, %c0_16, %c16] : memref<1x8x16x32xi32, #tpu.memory_space<vmem>>, vector<1x8x1x16xi32>
    %40 = vector.shape_cast %39 : vector<1x8x1x16xi32> to vector<8x16xi32>
    %41 = vector.shape_cast %38 : vector<8x16xi32> to vector<1x8x1x16xi32>
    tpu.vector_store %arg5[%c0_14, %c0_15, %c0_16, %c16], %41 {strides = array<i32>} : memref<1x8x16x32xi32, #tpu.memory_space<vmem>>, vector<1x8x1x16xi32>,
    %c0_17 = arith.constant 0 : index
    %c0_18 = arith.constant 0 : index
    %c1 = arith.constant 1 : index
    %c0_19 = arith.constant 0 : index
    %42 = vector.load %arg2[%c0_17, %c0_18, %c1, %c0_19] : memref<1x4x16x16xf32, #tpu.memory_space<vmem>>, vector<1x4x1x16xf32>
    %43 = vector.shape_cast %42 : vector<1x4x1x16xf32> to vector<4x16xf32>
    %44 = arith.truncf %43 : vector<4x16xf32> to vector<4x16xbf16>
    %cst_20 = arith.constant dense<0.000000e+00> : vector<32x16xf32>
    %45 = tpu.matmul %0, %44, %cst_20 {dimension_numbers = #tpu.dot_dimension_numbers<[1], [0], [0], [1], [0, 0, 1, 1], [], []>} : vector<32x4xbf16>, vector<4x16xbf16>, vector<32x16xf32> -> vector<32x16xf32>
    %46 = vector.broadcast %1 : vector<32x1xf32> to vector<32x16xf32>
    %47 = arith.addf %45, %46 : vector<32x16xf32>
    %cst_21 = arith.constant 0.000000e+00 : f32
    %48 = vector.broadcast %cst_21 : f32 to vector<32x16xf32>
    %49 = arith.maximumf %47, %48 : vector<32x16xf32>
    %50 = vector.extract_strided_slice %49 {offsets = [0, 0], sizes = [8, 16], strides = [1, 1]} : vector<32x16xf32> to vector<8x16xf32>
    %51 = arith.truncf %50 : vector<8x16xf32> to vector<8x16xbf16>
    %52 = arith.extf %51 : vector<8x16xbf16> to vector<8x16xf32>
    %53 = tpu.bitcast %52 : vector<8x16xf32> -> vector<8x16xi32>
    %54 = vector.extract_strided_slice %49 {offsets = [8, 0], sizes = [8, 16], strides = [1, 1]} : vector<32x16xf32> to vector<8x16xf32>
    %55 = arith.truncf %54 : vector<8x16xf32> to vector<8x16xbf16>
    %56 = arith.extf %55 : vector<8x16xbf16> to vector<8x16xf32>
    %57 = tpu.bitcast %56 : vector<8x16xf32> -> vector<8x16xi32>
    %c16_i32_22 = arith.constant 16 : i32
    %58 = vector.broadcast %c16_i32_22 : i32 to vector<8x16xi32>
    %59 = arith.shrui %53, %58 : vector<8x16xi32>
    %c-65536_i32_23 = arith.constant -65536 : i32
    %60 = vector.broadcast %c-65536_i32_23 : i32 to vector<8x16xi32>
    %61 = arith.andi %57, %60 : vector<8x16xi32>
    %62 = arith.ori %59, %61 : vector<8x16xi32>
    %c0_24 = arith.constant 0 : index
    %c0_25 = arith.constant 0 : index
    %c1_26 = arith.constant 1 : index
    %c0_27 = arith.constant 0 : index
    %63 = vector.load %arg5[%c0_24, %c0_25, %c1_26, %c0_27] : memref<1x8x16x32xi32, #tpu.memory_space<vmem>>, vector<1x8x1x16xi32>
    %64 = vector.shape_cast %63 : vector<1x8x1x16xi32> to vector<8x16xi32>
    %65 = vector.shape_cast %62 : vector<8x16xi32> to vector<1x8x1x16xi32>
    tpu.vector_store %arg5[%c0_24, %c0_25, %c1_26, %c0_27], %65 {strides = array<i32>} : memref<1x8x16x32xi32, #tpu.memory_space<vmem>>, vector<1x8x1x16xi32>,
    %66 = vector.extract_strided_slice %49 {offsets = [16, 0], sizes = [8, 16], strides = [1, 1]} : vector<32x16xf32> to vector<8x16xf32>
    %67 = arith.truncf %66 : vector<8x16xf32> to vector<8x16xbf16>
    %68 = arith.extf %67 : vector<8x16xbf16> to vector<8x16xf32>
    %69 = tpu.bitcast %68 : vector<8x16xf32> -> vector<8x16xi32>
    %70 = vector.extract_strided_slice %49 {offsets = [24, 0], sizes = [8, 16], strides = [1, 1]} : vector<32x16xf32> to vector<8x16xf32>
    %71 = arith.truncf %70 : vector<8x16xf32> to vector<8x16xbf16>
    %72 = arith.extf %71 : vector<8x16xbf16> to vector<8x16xf32>
    %73 = tpu.bitcast %72 : vector<8x16xf32> -> vector<8x16xi32>
    %c16_i32_28 = arith.constant 16 : i32
    %74 = vector.broadcast %c16_i32_28 : i32 to vector<8x16xi32>
    %75 = arith.shrui %69, %74 : vector<8x16xi32>
    %c-65536_i32_29 = arith.constant -65536 : i32
    %76 = vector.broadcast %c-65536_i32_29 : i32 to vector<8x16xi32>
    %77 = arith.andi %73, %76 : vector<8x16xi32>
    %78 = arith.ori %75, %77 : vector<8x16xi32>
    %c0_30 = arith.constant 0 : index
    %c0_31 = arith.constant 0 : index
    %c1_32 = arith.constant 1 : index
    %c16_33 = arith.constant 16 : index
    %79 = vector.load %arg5[%c0_30, %c0_31, %c1_32, %c16_33] : memref<1x8x16x32xi32, #tpu.memory_space<vmem>>, vector<1x8x1x16xi32>
    %80 = vector.shape_cast %79 : vector<1x8x1x16xi32> to vector<8x16xi32>
    %81 = vector.shape_cast %78 : vector<8x16xi32> to vector<1x8x1x16xi32>
    tpu.vector_store %arg5[%c0_30, %c0_31, %c1_32, %c16_33], %81 {strides = array<i32>} : memref<1x8x16x32xi32, #tpu.memory_space<vmem>>, vector<1x8x1x16xi32>,
    %c0_34 = arith.constant 0 : index
    %c0_35 = arith.constant 0 : index
    %c2 = arith.constant 2 : index
    %c0_36 = arith.constant 0 : index
    %82 = vector.load %arg2[%c0_34, %c0_35, %c2, %c0_36] : memref<1x4x16x16xf32, #tpu.memory_space<vmem>>, vector<1x4x1x16xf32>
    %83 = vector.shape_cast %82 : vector<1x4x1x16xf32> to vector<4x16xf32>
    %84 = arith.truncf %83 : vector<4x16xf32> to vector<4x16xbf16>
    %cst_37 = arith.constant dense<0.000000e+00> : vector<32x16xf32>
    %85 = tpu.matmul %0, %84, %cst_37 {dimension_numbers = #tpu.dot_dimension_numbers<[1], [0], [0], [1], [0, 0, 1, 1], [], []>} : vector<32x4xbf16>, vector<4x16xbf16>, vector<32x16xf32> -> vector<32x16xf32>
    %86 = vector.broadcast %1 : vector<32x1xf32> to vector<32x16xf32>
    %87 = arith.addf %85, %86 : vector<32x16xf32>
    %cst_38 = arith.constant 0.000000e+00 : f32
    %88 = vector.broadcast %cst_38 : f32 to vector<32x16xf32>
    %89 = arith.maximumf %87, %88 : vector<32x16xf32>
    %90 = vector.extract_strided_slice %89 {offsets = [0, 0], sizes = [8, 16], strides = [1, 1]} : vector<32x16xf32> to vector<8x16xf32>
    %91 = arith.truncf %90 : vector<8x16xf32> to vector<8x16xbf16>
    %92 = arith.extf %91 : vector<8x16xbf16> to vector<8x16xf32>
    %93 = tpu.bitcast %92 : vector<8x16xf32> -> vector<8x16xi32>
    %94 = vector.extract_strided_slice %89 {offsets = [8, 0], sizes = [8, 16], strides = [1, 1]} : vector<32x16xf32> to vector<8x16xf32>
    %95 = arith.truncf %94 : vector<8x16xf32> to vector<8x16xbf16>
    %96 = arith.extf %95 : vector<8x16xbf16> to vector<8x16xf32>
    %97 = tpu.bitcast %96 : vector<8x16xf32> -> vector<8x16xi32>
    %c16_i32_39 = arith.constant 16 : i32
    %98 = vector.broadcast %c16_i32_39 : i32 to vector<8x16xi32>
    %99 = arith.shrui %93, %98 : vector<8x16xi32>
    %c-65536_i32_40 = arith.constant -65536 : i32
    %100 = vector.broadcast %c-65536_i32_40 : i32 to vector<8x16xi32>
    %101 = arith.andi %97, %100 : vector<8x16xi32>
    %102 = arith.ori %99, %101 : vector<8x16xi32>
    %c0_41 = arith.constant 0 : index
    %c0_42 = arith.constant 0 : index
    %c2_43 = arith.constant 2 : index
    %c0_44 = arith.constant 0 : index
    %103 = vector.load %arg5[%c0_41, %c0_42, %c2_43, %c0_44] : memref<1x8x16x32xi32, #tpu.memory_space<vmem>>, vector<1x8x1x16xi32>
    %104 = vector.shape_cast %103 : vector<1x8x1x16xi32> to vector<8x16xi32>
    %105 = vector.shape_cast %102 : vector<8x16xi32> to vector<1x8x1x16xi32>
    tpu.vector_store %arg5[%c0_41, %c0_42, %c2_43, %c0_44], %105 {strides = array<i32>} : memref<1x8x16x32xi32, #tpu.memory_space<vmem>>, vector<1x8x1x16xi32>,
    %106 = vector.extract_strided_slice %89 {offsets = [16, 0], sizes = [8, 16], strides = [1, 1]} : vector<32x16xf32> to vector<8x16xf32>
    %107 = arith.truncf %106 : vector<8x16xf32> to vector<8x16xbf16>
    %108 = arith.extf %107 : vector<8x16xbf16> to vector<8x16xf32>
    %109 = tpu.bitcast %108 : vector<8x16xf32> -> vector<8x16xi32>
    %110 = vector.extract_strided_slice %89 {offsets = [24, 0], sizes = [8, 16], strides = [1, 1]} : vector<32x16xf32> to vector<8x16xf32>
    %111 = arith.truncf %110 : vector<8x16xf32> to vector<8x16xbf16>
    %112 = arith.extf %111 : vector<8x16xbf16> to vector<8x16xf32>
    %113 = tpu.bitcast %112 : vector<8x16xf32> -> vector<8x16xi32>
    %c16_i32_45 = arith.constant 16 : i32
    %114 = vector.broadcast %c16_i32_45 : i32 to vector<8x16xi32>
    %115 = arith.shrui %109, %114 : vector<8x16xi32>
    %c-65536_i32_46 = arith.constant -65536 : i32
    %116 = vector.broadcast %c-65536_i32_46 : i32 to vector<8x16xi32>
    %117 = arith.andi %113, %116 : vector<8x16xi32>
    %118 = arith.ori %115, %117 : vector<8x16xi32>
    %c0_47 = arith.constant 0 : index
    %c0_48 = arith.constant 0 : index
    %c2_49 = arith.constant 2 : index
    %c16_50 = arith.constant 16 : index
    %119 = vector.load %arg5[%c0_47, %c0_48, %c2_49, %c16_50] : memref<1x8x16x32xi32, #tpu.memory_space<vmem>>, vector<1x8x1x16xi32>
    %120 = vector.shape_cast %119 : vector<1x8x1x16xi32> to vector<8x16xi32>
    %121 = vector.shape_cast %118 : vector<8x16xi32> to vector<1x8x1x16xi32>
    tpu.vector_store %arg5[%c0_47, %c0_48, %c2_49, %c16_50], %121 {strides = array<i32>} : memref<1x8x16x32xi32, #tpu.memory_space<vmem>>, vector<1x8x1x16xi32>,
    %c0_51 = arith.constant 0 : index
    %c0_52 = arith.constant 0 : index
    %c3 = arith.constant 3 : index
    %c0_53 = arith.constant 0 : index
    %122 = vector.load %arg2[%c0_51, %c0_52, %c3, %c0_53] : memref<1x4x16x16xf32, #tpu.memory_space<vmem>>, vector<1x4x1x16xf32>
    %123 = vector.shape_cast %122 : vector<1x4x1x16xf32> to vector<4x16xf32>
    %124 = arith.truncf %123 : vector<4x16xf32> to vector<4x16xbf16>
    %cst_54 = arith.constant dense<0.000000e+00> : vector<32x16xf32>
    %125 = tpu.matmul %0, %124, %cst_54 {dimension_numbers = #tpu.dot_dimension_numbers<[1], [0], [0], [1], [0, 0, 1, 1], [], []>} : vector<32x4xbf16>, vector<4x16xbf16>, vector<32x16xf32> -> vector<32x16xf32>
    %126 = vector.broadcast %1 : vector<32x1xf32> to vector<32x16xf32>
    %127 = arith.addf %125, %126 : vector<32x16xf32>
    %cst_55 = arith.constant 0.000000e+00 : f32
    %128 = vector.broadcast %cst_55 : f32 to vector<32x16xf32>
    %129 = arith.maximumf %127, %128 : vector<32x16xf32>
    %130 = vector.extract_strided_slice %129 {offsets = [0, 0], sizes = [8, 16], strides = [1, 1]} : vector<32x16xf32> to vector<8x16xf32>
    %131 = arith.truncf %130 : vector<8x16xf32> to vector<8x16xbf16>
    %132 = arith.extf %131 : vector<8x16xbf16> to vector<8x16xf32>
    %133 = tpu.bitcast %132 : vector<8x16xf32> -> vector<8x16xi32>
    %134 = vector.extract_strided_slice %129 {offsets = [8, 0], sizes = [8, 16], strides = [1, 1]} : vector<32x16xf32> to vector<8x16xf32>
    %135 = arith.truncf %134 : vector<8x16xf32> to vector<8x16xbf16>
    %136 = arith.extf %135 : vector<8x16xbf16> to vector<8x16xf32>
    %137 = tpu.bitcast %136 : vector<8x16xf32> -> vector<8x16xi32>
    %c16_i32_56 = arith.constant 16 : i32
    %138 = vector.broadcast %c16_i32_56 : i32 to vector<8x16xi32>
    %139 = arith.shrui %133, %138 : vector<8x16xi32>
    %c-65536_i32_57 = arith.constant -65536 : i32
    %140 = vector.broadcast %c-65536_i32_57 : i32 to vector<8x16xi32>
    %141 = arith.andi %137, %140 : vector<8x16xi32>
    %142 = arith.ori %139, %141 : vector<8x16xi32>
    %c0_58 = arith.constant 0 : index
    %c0_59 = arith.constant 0 : index
    %c3_60 = arith.constant 3 : index
    %c0_61 = arith.constant 0 : index
    %143 = vector.load %arg5[%c0_58, %c0_59, %c3_60, %c0_61] : memref<1x8x16x32xi32, #tpu.memory_space<vmem>>, vector<1x8x1x16xi32>
    %144 = vector.shape_cast %143 : vector<1x8x1x16xi32> to vector<8x16xi32>
    %145 = vector.shape_cast %142 : vector<8x16xi32> to vector<1x8x1x16xi32>
    tpu.vector_store %arg5[%c0_58, %c0_59, %c3_60, %c0_61], %145 {strides = array<i32>} : memref<1x8x16x32xi32, #tpu.memory_space<vmem>>, vector<1x8x1x16xi32>,
    %146 = vector.extract_strided_slice %129 {offsets = [16, 0], sizes = [8, 16], strides = [1, 1]} : vector<32x16xf32> to vector<8x16xf32>
    %147 = arith.truncf %146 : vector<8x16xf32> to vector<8x16xbf16>
    %148 = arith.extf %147 : vector<8x16xbf16> to vector<8x16xf32>
    %149 = tpu.bitcast %148 : vector<8x16xf32> -> vector<8x16xi32>
    %150 = vector.extract_strided_slice %129 {offsets = [24, 0], sizes = [8, 16], strides = [1, 1]} : vector<32x16xf32> to vector<8x16xf32>
    %151 = arith.truncf %150 : vector<8x16xf32> to vector<8x16xbf16>
    %152 = arith.extf %151 : vector<8x16xbf16> to vector<8x16xf32>
    %153 = tpu.bitcast %152 : vector<8x16xf32> -> vector<8x16xi32>
    %c16_i32_62 = arith.constant 16 : i32
    %154 = vector.broadcast %c16_i32_62 : i32 to vector<8x16xi32>
    %155 = arith.shrui %149, %154 : vector<8x16xi32>
    %c-65536_i32_63 = arith.constant -65536 : i32
    %156 = vector.broadcast %c-65536_i32_63 : i32 to vector<8x16xi32>
    %157 = arith.andi %153, %156 : vector<8x16xi32>
    %158 = arith.ori %155, %157 : vector<8x16xi32>
    %c0_64 = arith.constant 0 : index
    %c0_65 = arith.constant 0 : index
    %c3_66 = arith.constant 3 : index
    %c16_67 = arith.constant 16 : index
    %159 = vector.load %arg5[%c0_64, %c0_65, %c3_66, %c16_67] : memref<1x8x16x32xi32, #tpu.memory_space<vmem>>, vector<1x8x1x16xi32>
    %160 = vector.shape_cast %159 : vector<1x8x1x16xi32> to vector<8x16xi32>
    %161 = vector.shape_cast %158 : vector<8x16xi32> to vector<1x8x1x16xi32>
    tpu.vector_store %arg5[%c0_64, %c0_65, %c3_66, %c16_67], %161 {strides = array<i32>} : memref<1x8x16x32xi32, #tpu.memory_space<vmem>>, vector<1x8x1x16xi32>,
    %c0_68 = arith.constant 0 : index
    %c0_69 = arith.constant 0 : index
    %c4 = arith.constant 4 : index
    %c0_70 = arith.constant 0 : index
    %162 = vector.load %arg2[%c0_68, %c0_69, %c4, %c0_70] : memref<1x4x16x16xf32, #tpu.memory_space<vmem>>, vector<1x4x1x16xf32>
    %163 = vector.shape_cast %162 : vector<1x4x1x16xf32> to vector<4x16xf32>
    %164 = arith.truncf %163 : vector<4x16xf32> to vector<4x16xbf16>
    %cst_71 = arith.constant dense<0.000000e+00> : vector<32x16xf32>
    %165 = tpu.matmul %0, %164, %cst_71 {dimension_numbers = #tpu.dot_dimension_numbers<[1], [0], [0], [1], [0, 0, 1, 1], [], []>} : vector<32x4xbf16>, vector<4x16xbf16>, vector<32x16xf32> -> vector<32x16xf32>
    %166 = vector.broadcast %1 : vector<32x1xf32> to vector<32x16xf32>
    %167 = arith.addf %165, %166 : vector<32x16xf32>
    %cst_72 = arith.constant 0.000000e+00 : f32
    %168 = vector.broadcast %cst_72 : f32 to vector<32x16xf32>
    %169 = arith.maximumf %167, %168 : vector<32x16xf32>
    %170 = vector.extract_strided_slice %169 {offsets = [0, 0], sizes = [8, 16], strides = [1, 1]} : vector<32x16xf32> to vector<8x16xf32>
    %171 = arith.truncf %170 : vector<8x16xf32> to vector<8x16xbf16>
    %172 = arith.extf %171 : vector<8x16xbf16> to vector<8x16xf32>
    %173 = tpu.bitcast %172 : vector<8x16xf32> -> vector<8x16xi32>
    %174 = vector.extract_strided_slice %169 {offsets = [8, 0], sizes = [8, 16], strides = [1, 1]} : vector<32x16xf32> to vector<8x16xf32>
    %175 = arith.truncf %174 : vector<8x16xf32> to vector<8x16xbf16>
    %176 = arith.extf %175 : vector<8x16xbf16> to vector<8x16xf32>
    %177 = tpu.bitcast %176 : vector<8x16xf32> -> vector<8x16xi32>
    %c16_i32_73 = arith.constant 16 : i32
    %178 = vector.broadcast %c16_i32_73 : i32 to vector<8x16xi32>
    %179 = arith.shrui %173, %178 : vector<8x16xi32>
    %c-65536_i32_74 = arith.constant -65536 : i32
    %180 = vector.broadcast %c-65536_i32_74 : i32 to vector<8x16xi32>
    %181 = arith.andi %177, %180 : vector<8x16xi32>
    %182 = arith.ori %179, %181 : vector<8x16xi32>
    %c0_75 = arith.constant 0 : index
    %c0_76 = arith.constant 0 : index
    %c4_77 = arith.constant 4 : index
    %c0_78 = arith.constant 0 : index
    %183 = vector.load %arg5[%c0_75, %c0_76, %c4_77, %c0_78] : memref<1x8x16x32xi32, #tpu.memory_space<vmem>>, vector<1x8x1x16xi32>
    %184 = vector.shape_cast %183 : vector<1x8x1x16xi32> to vector<8x16xi32>
    %185 = vector.shape_cast %182 : vector<8x16xi32> to vector<1x8x1x16xi32>
    tpu.vector_store %arg5[%c0_75, %c0_76, %c4_77, %c0_78], %185 {strides = array<i32>} : memref<1x8x16x32xi32, #tpu.memory_space<vmem>>, vector<1x8x1x16xi32>,
    %186 = vector.extract_strided_slice %169 {offsets = [16, 0], sizes = [8, 16], strides = [1, 1]} : vector<32x16xf32> to vector<8x16xf32>
    %187 = arith.truncf %186 : vector<8x16xf32> to vector<8x16xbf16>
    %188 = arith.extf %187 : vector<8x16xbf16> to vector<8x16xf32>
    %189 = tpu.bitcast %188 : vector<8x16xf32> -> vector<8x16xi32>
    %190 = vector.extract_strided_slice %169 {offsets = [24, 0], sizes = [8, 16], strides = [1, 1]} : vector<32x16xf32> to vector<8x16xf32>
    %191 = arith.truncf %190 : vector<8x16xf32> to vector<8x16xbf16>
    %192 = arith.extf %191 : vector<8x16xbf16> to vector<8x16xf32>
    %193 = tpu.bitcast %192 : vector<8x16xf32> -> vector<8x16xi32>
    %c16_i32_79 = arith.constant 16 : i32
    %194 = vector.broadcast %c16_i32_79 : i32 to vector<8x16xi32>
    %195 = arith.shrui %189, %194 : vector<8x16xi32>
    %c-65536_i32_80 = arith.constant -65536 : i32
    %196 = vector.broadcast %c-65536_i32_80 : i32 to vector<8x16xi32>
    %197 = arith.andi %193, %196 : vector<8x16xi32>
    %198 = arith.ori %195, %197 : vector<8x16xi32>
    %c0_81 = arith.constant 0 : index
    %c0_82 = arith.constant 0 : index
    %c4_83 = arith.constant 4 : index
    %c16_84 = arith.constant 16 : index
    %199 = vector.load %arg5[%c0_81, %c0_82, %c4_83, %c16_84] : memref<1x8x16x32xi32, #tpu.memory_space<vmem>>, vector<1x8x1x16xi32>
    %200 = vector.shape_cast %199 : vector<1x8x1x16xi32> to vector<8x16xi32>
    %201 = vector.shape_cast %198 : vector<8x16xi32> to vector<1x8x1x16xi32>
    tpu.vector_store %arg5[%c0_81, %c0_82, %c4_83, %c16_84], %201 {strides = array<i32>} : memref<1x8x16x32xi32, #tpu.memory_space<vmem>>, vector<1x8x1x16xi32>,
    %c0_85 = arith.constant 0 : index
    %c0_86 = arith.constant 0 : index
    %c5 = arith.constant 5 : index
    %c0_87 = arith.constant 0 : index
    %202 = vector.load %arg2[%c0_85, %c0_86, %c5, %c0_87] : memref<1x4x16x16xf32, #tpu.memory_space<vmem>>, vector<1x4x1x16xf32>
    %203 = vector.shape_cast %202 : vector<1x4x1x16xf32> to vector<4x16xf32>
    %204 = arith.truncf %203 : vector<4x16xf32> to vector<4x16xbf16>
    %cst_88 = arith.constant dense<0.000000e+00> : vector<32x16xf32>
    %205 = tpu.matmul %0, %204, %cst_88 {dimension_numbers = #tpu.dot_dimension_numbers<[1], [0], [0], [1], [0, 0, 1, 1], [], []>} : vector<32x4xbf16>, vector<4x16xbf16>, vector<32x16xf32> -> vector<32x16xf32>
    %206 = vector.broadcast %1 : vector<32x1xf32> to vector<32x16xf32>
    %207 = arith.addf %205, %206 : vector<32x16xf32>
    %cst_89 = arith.constant 0.000000e+00 : f32
    %208 = vector.broadcast %cst_89 : f32 to vector<32x16xf32>
    %209 = arith.maximumf %207, %208 : vector<32x16xf32>
    %210 = vector.extract_strided_slice %209 {offsets = [0, 0], sizes = [8, 16], strides = [1, 1]} : vector<32x16xf32> to vector<8x16xf32>
    %211 = arith.truncf %210 : vector<8x16xf32> to vector<8x16xbf16>
    %212 = arith.extf %211 : vector<8x16xbf16> to vector<8x16xf32>
    %213 = tpu.bitcast %212 : vector<8x16xf32> -> vector<8x16xi32>
    %214 = vector.extract_strided_slice %209 {offsets = [8, 0], sizes = [8, 16], strides = [1, 1]} : vector<32x16xf32> to vector<8x16xf32>
    %215 = arith.truncf %214 : vector<8x16xf32> to vector<8x16xbf16>
    %216 = arith.extf %215 : vector<8x16xbf16> to vector<8x16xf32>
    %217 = tpu.bitcast %216 : vector<8x16xf32> -> vector<8x16xi32>
    %c16_i32_90 = arith.constant 16 : i32
    %218 = vector.broadcast %c16_i32_90 : i32 to vector<8x16xi32>
    %219 = arith.shrui %213, %218 : vector<8x16xi32>
    %c-65536_i32_91 = arith.constant -65536 : i32
    %220 = vector.broadcast %c-65536_i32_91 : i32 to vector<8x16xi32>
    %221 = arith.andi %217, %220 : vector<8x16xi32>
    %222 = arith.ori %219, %221 : vector<8x16xi32>
    %c0_92 = arith.constant 0 : index
    %c0_93 = arith.constant 0 : index
    %c5_94 = arith.constant 5 : index
    %c0_95 = arith.constant 0 : index
    %223 = vector.load %arg5[%c0_92, %c0_93, %c5_94, %c0_95] : memref<1x8x16x32xi32, #tpu.memory_space<vmem>>, vector<1x8x1x16xi32>
    %224 = vector.shape_cast %223 : vector<1x8x1x16xi32> to vector<8x16xi32>
    %225 = vector.shape_cast %222 : vector<8x16xi32> to vector<1x8x1x16xi32>
    tpu.vector_store %arg5[%c0_92, %c0_93, %c5_94, %c0_95], %225 {strides = array<i32>} : memref<1x8x16x32xi32, #tpu.memory_space<vmem>>, vector<1x8x1x16xi32>,
    %226 = vector.extract_strided_slice %209 {offsets = [16, 0], sizes = [8, 16], strides = [1, 1]} : vector<32x16xf32> to vector<8x16xf32>
    %227 = arith.truncf %226 : vector<8x16xf32> to vector<8x16xbf16>
    %228 = arith.extf %227 : vector<8x16xbf16> to vector<8x16xf32>
    %229 = tpu.bitcast %228 : vector<8x16xf32> -> vector<8x16xi32>
    %230 = vector.extract_strided_slice %209 {offsets = [24, 0], sizes = [8, 16], strides = [1, 1]} : vector<32x16xf32> to vector<8x16xf32>
    %231 = arith.truncf %230 : vector<8x16xf32> to vector<8x16xbf16>
    %232 = arith.extf %231 : vector<8x16xbf16> to vector<8x16xf32>
    %233 = tpu.bitcast %232 : vector<8x16xf32> -> vector<8x16xi32>
    %c16_i32_96 = arith.constant 16 : i32
    %234 = vector.broadcast %c16_i32_96 : i32 to vector<8x16xi32>
    %235 = arith.shrui %229, %234 : vector<8x16xi32>
    %c-65536_i32_97 = arith.constant -65536 : i32
    %236 = vector.broadcast %c-65536_i32_97 : i32 to vector<8x16xi32>
    %237 = arith.andi %233, %236 : vector<8x16xi32>
    %238 = arith.ori %235, %237 : vector<8x16xi32>
    %c0_98 = arith.constant 0 : index
    %c0_99 = arith.constant 0 : index
    %c5_100 = arith.constant 5 : index
    %c16_101 = arith.constant 16 : index
    %239 = vector.load %arg5[%c0_98, %c0_99, %c5_100, %c16_101] : memref<1x8x16x32xi32, #tpu.memory_space<vmem>>, vector<1x8x1x16xi32>
    %240 = vector.shape_cast %239 : vector<1x8x1x16xi32> to vector<8x16xi32>
    %241 = vector.shape_cast %238 : vector<8x16xi32> to vector<1x8x1x16xi32>
    tpu.vector_store %arg5[%c0_98, %c0_99, %c5_100, %c16_101], %241 {strides = array<i32>} : memref<1x8x16x32xi32, #tpu.memory_space<vmem>>, vector<1x8x1x16xi32>,
    %c0_102 = arith.constant 0 : index
    %c0_103 = arith.constant 0 : index
    %c6 = arith.constant 6 : index
    %c0_104 = arith.constant 0 : index
    %242 = vector.load %arg2[%c0_102, %c0_103, %c6, %c0_104] : memref<1x4x16x16xf32, #tpu.memory_space<vmem>>, vector<1x4x1x16xf32>
    %243 = vector.shape_cast %242 : vector<1x4x1x16xf32> to vector<4x16xf32>
    %244 = arith.truncf %243 : vector<4x16xf32> to vector<4x16xbf16>
    %cst_105 = arith.constant dense<0.000000e+00> : vector<32x16xf32>
    %245 = tpu.matmul %0, %244, %cst_105 {dimension_numbers = #tpu.dot_dimension_numbers<[1], [0], [0], [1], [0, 0, 1, 1], [], []>} : vector<32x4xbf16>, vector<4x16xbf16>, vector<32x16xf32> -> vector<32x16xf32>
    %246 = vector.broadcast %1 : vector<32x1xf32> to vector<32x16xf32>
    %247 = arith.addf %245, %246 : vector<32x16xf32>
    %cst_106 = arith.constant 0.000000e+00 : f32
    %248 = vector.broadcast %cst_106 : f32 to vector<32x16xf32>
    %249 = arith.maximumf %247, %248 : vector<32x16xf32>
    %250 = vector.extract_strided_slice %249 {offsets = [0, 0], sizes = [8, 16], strides = [1, 1]} : vector<32x16xf32> to vector<8x16xf32>
    %251 = arith.truncf %250 : vector<8x16xf32> to vector<8x16xbf16>
    %252 = arith.extf %251 : vector<8x16xbf16> to vector<8x16xf32>
    %253 = tpu.bitcast %252 : vector<8x16xf32> -> vector<8x16xi32>
    %254 = vector.extract_strided_slice %249 {offsets = [8, 0], sizes = [8, 16], strides = [1, 1]} : vector<32x16xf32> to vector<8x16xf32>
    %255 = arith.truncf %254 : vector<8x16xf32> to vector<8x16xbf16>
    %256 = arith.extf %255 : vector<8x16xbf16> to vector<8x16xf32>
    %257 = tpu.bitcast %256 : vector<8x16xf32> -> vector<8x16xi32>
    %c16_i32_107 = arith.constant 16 : i32
    %258 = vector.broadcast %c16_i32_107 : i32 to vector<8x16xi32>
    %259 = arith.shrui %253, %258 : vector<8x16xi32>
    %c-65536_i32_108 = arith.constant -65536 : i32
    %260 = vector.broadcast %c-65536_i32_108 : i32 to vector<8x16xi32>
    %261 = arith.andi %257, %260 : vector<8x16xi32>
    %262 = arith.ori %259, %261 : vector<8x16xi32>
    %c0_109 = arith.constant 0 : index
    %c0_110 = arith.constant 0 : index
    %c6_111 = arith.constant 6 : index
    %c0_112 = arith.constant 0 : index
    %263 = vector.load %arg5[%c0_109, %c0_110, %c6_111, %c0_112] : memref<1x8x16x32xi32, #tpu.memory_space<vmem>>, vector<1x8x1x16xi32>
    %264 = vector.shape_cast %263 : vector<1x8x1x16xi32> to vector<8x16xi32>
    %265 = vector.shape_cast %262 : vector<8x16xi32> to vector<1x8x1x16xi32>
    tpu.vector_store %arg5[%c0_109, %c0_110, %c6_111, %c0_112], %265 {strides = array<i32>} : memref<1x8x16x32xi32, #tpu.memory_space<vmem>>, vector<1x8x1x16xi32>,
    %266 = vector.extract_strided_slice %249 {offsets = [16, 0], sizes = [8, 16], strides = [1, 1]} : vector<32x16xf32> to vector<8x16xf32>
    %267 = arith.truncf %266 : vector<8x16xf32> to vector<8x16xbf16>
    %268 = arith.extf %267 : vector<8x16xbf16> to vector<8x16xf32>
    %269 = tpu.bitcast %268 : vector<8x16xf32> -> vector<8x16xi32>
    %270 = vector.extract_strided_slice %249 {offsets = [24, 0], sizes = [8, 16], strides = [1, 1]} : vector<32x16xf32> to vector<8x16xf32>
    %271 = arith.truncf %270 : vector<8x16xf32> to vector<8x16xbf16>
    %272 = arith.extf %271 : vector<8x16xbf16> to vector<8x16xf32>
    %273 = tpu.bitcast %272 : vector<8x16xf32> -> vector<8x16xi32>
    %c16_i32_113 = arith.constant 16 : i32
    %274 = vector.broadcast %c16_i32_113 : i32 to vector<8x16xi32>
    %275 = arith.shrui %269, %274 : vector<8x16xi32>
    %c-65536_i32_114 = arith.constant -65536 : i32
    %276 = vector.broadcast %c-65536_i32_114 : i32 to vector<8x16xi32>
    %277 = arith.andi %273, %276 : vector<8x16xi32>
    %278 = arith.ori %275, %277 : vector<8x16xi32>
    %c0_115 = arith.constant 0 : index
    %c0_116 = arith.constant 0 : index
    %c6_117 = arith.constant 6 : index
    %c16_118 = arith.constant 16 : index
    %279 = vector.load %arg5[%c0_115, %c0_116, %c6_117, %c16_118] : memref<1x8x16x32xi32, #tpu.memory_space<vmem>>, vector<1x8x1x16xi32>
    %280 = vector.shape_cast %279 : vector<1x8x1x16xi32> to vector<8x16xi32>
    %281 = vector.shape_cast %278 : vector<8x16xi32> to vector<1x8x1x16xi32>
    tpu.vector_store %arg5[%c0_115, %c0_116, %c6_117, %c16_118], %281 {strides = array<i32>} : memref<1x8x16x32xi32, #tpu.memory_space<vmem>>, vector<1x8x1x16xi32>,
    %c0_119 = arith.constant 0 : index
    %c0_120 = arith.constant 0 : index
    %c7 = arith.constant 7 : index
    %c0_121 = arith.constant 0 : index
    %282 = vector.load %arg2[%c0_119, %c0_120, %c7, %c0_121] : memref<1x4x16x16xf32, #tpu.memory_space<vmem>>, vector<1x4x1x16xf32>
    %283 = vector.shape_cast %282 : vector<1x4x1x16xf32> to vector<4x16xf32>
    %284 = arith.truncf %283 : vector<4x16xf32> to vector<4x16xbf16>
    %cst_122 = arith.constant dense<0.000000e+00> : vector<32x16xf32>
    %285 = tpu.matmul %0, %284, %cst_122 {dimension_numbers = #tpu.dot_dimension_numbers<[1], [0], [0], [1], [0, 0, 1, 1], [], []>} : vector<32x4xbf16>, vector<4x16xbf16>, vector<32x16xf32> -> vector<32x16xf32>
    %286 = vector.broadcast %1 : vector<32x1xf32> to vector<32x16xf32>
    %287 = arith.addf %285, %286 : vector<32x16xf32>
    %cst_123 = arith.constant 0.000000e+00 : f32
    %288 = vector.broadcast %cst_123 : f32 to vector<32x16xf32>
    %289 = arith.maximumf %287, %288 : vector<32x16xf32>
    %290 = vector.extract_strided_slice %289 {offsets = [0, 0], sizes = [8, 16], strides = [1, 1]} : vector<32x16xf32> to vector<8x16xf32>
    %291 = arith.truncf %290 : vector<8x16xf32> to vector<8x16xbf16>
    %292 = arith.extf %291 : vector<8x16xbf16> to vector<8x16xf32>
    %293 = tpu.bitcast %292 : vector<8x16xf32> -> vector<8x16xi32>
    %294 = vector.extract_strided_slice %289 {offsets = [8, 0], sizes = [8, 16], strides = [1, 1]} : vector<32x16xf32> to vector<8x16xf32>
    %295 = arith.truncf %294 : vector<8x16xf32> to vector<8x16xbf16>
    %296 = arith.extf %295 : vector<8x16xbf16> to vector<8x16xf32>
    %297 = tpu.bitcast %296 : vector<8x16xf32> -> vector<8x16xi32>
    %c16_i32_124 = arith.constant 16 : i32
    %298 = vector.broadcast %c16_i32_124 : i32 to vector<8x16xi32>
    %299 = arith.shrui %293, %298 : vector<8x16xi32>
    %c-65536_i32_125 = arith.constant -65536 : i32
    %300 = vector.broadcast %c-65536_i32_125 : i32 to vector<8x16xi32>
    %301 = arith.andi %297, %300 : vector<8x16xi32>
    %302 = arith.ori %299, %301 : vector<8x16xi32>
    %c0_126 = arith.constant 0 : index
    %c0_127 = arith.constant 0 : index
    %c7_128 = arith.constant 7 : index
    %c0_129 = arith.constant 0 : index
    %303 = vector.load %arg5[%c0_126, %c0_127, %c7_128, %c0_129] : memref<1x8x16x32xi32, #tpu.memory_space<vmem>>, vector<1x8x1x16xi32>
    %304 = vector.shape_cast %303 : vector<1x8x1x16xi32> to vector<8x16xi32>
    %305 = vector.shape_cast %302 : vector<8x16xi32> to vector<1x8x1x16xi32>
    tpu.vector_store %arg5[%c0_126, %c0_127, %c7_128, %c0_129], %305 {strides = array<i32>} : memref<1x8x16x32xi32, #tpu.memory_space<vmem>>, vector<1x8x1x16xi32>,
    %306 = vector.extract_strided_slice %289 {offsets = [16, 0], sizes = [8, 16], strides = [1, 1]} : vector<32x16xf32> to vector<8x16xf32>
    %307 = arith.truncf %306 : vector<8x16xf32> to vector<8x16xbf16>
    %308 = arith.extf %307 : vector<8x16xbf16> to vector<8x16xf32>
    %309 = tpu.bitcast %308 : vector<8x16xf32> -> vector<8x16xi32>
    %310 = vector.extract_strided_slice %289 {offsets = [24, 0], sizes = [8, 16], strides = [1, 1]} : vector<32x16xf32> to vector<8x16xf32>
    %311 = arith.truncf %310 : vector<8x16xf32> to vector<8x16xbf16>
    %312 = arith.extf %311 : vector<8x16xbf16> to vector<8x16xf32>
    %313 = tpu.bitcast %312 : vector<8x16xf32> -> vector<8x16xi32>
    %c16_i32_130 = arith.constant 16 : i32
    %314 = vector.broadcast %c16_i32_130 : i32 to vector<8x16xi32>
    %315 = arith.shrui %309, %314 : vector<8x16xi32>
    %c-65536_i32_131 = arith.constant -65536 : i32
    %316 = vector.broadcast %c-65536_i32_131 : i32 to vector<8x16xi32>
    %317 = arith.andi %313, %316 : vector<8x16xi32>
    %318 = arith.ori %315, %317 : vector<8x16xi32>
    %c0_132 = arith.constant 0 : index
    %c0_133 = arith.constant 0 : index
    %c7_134 = arith.constant 7 : index
    %c16_135 = arith.constant 16 : index
    %319 = vector.load %arg5[%c0_132, %c0_133, %c7_134, %c16_135] : memref<1x8x16x32xi32, #tpu.memory_space<vmem>>, vector<1x8x1x16xi32>
    %320 = vector.shape_cast %319 : vector<1x8x1x16xi32> to vector<8x16xi32>
    %321 = vector.shape_cast %318 : vector<8x16xi32> to vector<1x8x1x16xi32>
    tpu.vector_store %arg5[%c0_132, %c0_133, %c7_134, %c16_135], %321 {strides = array<i32>} : memref<1x8x16x32xi32, #tpu.memory_space<vmem>>, vector<1x8x1x16xi32>,
    %c0_136 = arith.constant 0 : index
    %c0_137 = arith.constant 0 : index
    %c8 = arith.constant 8 : index
    %c0_138 = arith.constant 0 : index
    %322 = vector.load %arg2[%c0_136, %c0_137, %c8, %c0_138] : memref<1x4x16x16xf32, #tpu.memory_space<vmem>>, vector<1x4x1x16xf32>
    %323 = vector.shape_cast %322 : vector<1x4x1x16xf32> to vector<4x16xf32>
    %324 = arith.truncf %323 : vector<4x16xf32> to vector<4x16xbf16>
    %cst_139 = arith.constant dense<0.000000e+00> : vector<32x16xf32>
    %325 = tpu.matmul %0, %324, %cst_139 {dimension_numbers = #tpu.dot_dimension_numbers<[1], [0], [0], [1], [0, 0, 1, 1], [], []>} : vector<32x4xbf16>, vector<4x16xbf16>, vector<32x16xf32> -> vector<32x16xf32>
    %326 = vector.broadcast %1 : vector<32x1xf32> to vector<32x16xf32>
    %327 = arith.addf %325, %326 : vector<32x16xf32>
    %cst_140 = arith.constant 0.000000e+00 : f32
    %328 = vector.broadcast %cst_140 : f32 to vector<32x16xf32>
    %329 = arith.maximumf %327, %328 : vector<32x16xf32>
    %330 = vector.extract_strided_slice %329 {offsets = [0, 0], sizes = [8, 16], strides = [1, 1]} : vector<32x16xf32> to vector<8x16xf32>
    %331 = arith.truncf %330 : vector<8x16xf32> to vector<8x16xbf16>
    %332 = arith.extf %331 : vector<8x16xbf16> to vector<8x16xf32>
    %333 = tpu.bitcast %332 : vector<8x16xf32> -> vector<8x16xi32>
    %334 = vector.extract_strided_slice %329 {offsets = [8, 0], sizes = [8, 16], strides = [1, 1]} : vector<32x16xf32> to vector<8x16xf32>
    %335 = arith.truncf %334 : vector<8x16xf32> to vector<8x16xbf16>
    %336 = arith.extf %335 : vector<8x16xbf16> to vector<8x16xf32>
    %337 = tpu.bitcast %336 : vector<8x16xf32> -> vector<8x16xi32>
    %c16_i32_141 = arith.constant 16 : i32
    %338 = vector.broadcast %c16_i32_141 : i32 to vector<8x16xi32>
    %339 = arith.shrui %333, %338 : vector<8x16xi32>
    %c-65536_i32_142 = arith.constant -65536 : i32
    %340 = vector.broadcast %c-65536_i32_142 : i32 to vector<8x16xi32>
    %341 = arith.andi %337, %340 : vector<8x16xi32>
    %342 = arith.ori %339, %341 : vector<8x16xi32>
    %c0_143 = arith.constant 0 : index
    %c0_144 = arith.constant 0 : index
    %c8_145 = arith.constant 8 : index
    %c0_146 = arith.constant 0 : index
    %343 = vector.load %arg5[%c0_143, %c0_144, %c8_145, %c0_146] : memref<1x8x16x32xi32, #tpu.memory_space<vmem>>, vector<1x8x1x16xi32>
    %344 = vector.shape_cast %343 : vector<1x8x1x16xi32> to vector<8x16xi32>
    %345 = vector.shape_cast %342 : vector<8x16xi32> to vector<1x8x1x16xi32>
    tpu.vector_store %arg5[%c0_143, %c0_144, %c8_145, %c0_146], %345 {strides = array<i32>} : memref<1x8x16x32xi32, #tpu.memory_space<vmem>>, vector<1x8x1x16xi32>,
    %346 = vector.extract_strided_slice %329 {offsets = [16, 0], sizes = [8, 16], strides = [1, 1]} : vector<32x16xf32> to vector<8x16xf32>
    %347 = arith.truncf %346 : vector<8x16xf32> to vector<8x16xbf16>
    %348 = arith.extf %347 : vector<8x16xbf16> to vector<8x16xf32>
    %349 = tpu.bitcast %348 : vector<8x16xf32> -> vector<8x16xi32>
    %350 = vector.extract_strided_slice %329 {offsets = [24, 0], sizes = [8, 16], strides = [1, 1]} : vector<32x16xf32> to vector<8x16xf32>
    %351 = arith.truncf %350 : vector<8x16xf32> to vector<8x16xbf16>
    %352 = arith.extf %351 : vector<8x16xbf16> to vector<8x16xf32>
    %353 = tpu.bitcast %352 : vector<8x16xf32> -> vector<8x16xi32>
    %c16_i32_147 = arith.constant 16 : i32
    %354 = vector.broadcast %c16_i32_147 : i32 to vector<8x16xi32>
    %355 = arith.shrui %349, %354 : vector<8x16xi32>
    %c-65536_i32_148 = arith.constant -65536 : i32
    %356 = vector.broadcast %c-65536_i32_148 : i32 to vector<8x16xi32>
    %357 = arith.andi %353, %356 : vector<8x16xi32>
    %358 = arith.ori %355, %357 : vector<8x16xi32>
    %c0_149 = arith.constant 0 : index
    %c0_150 = arith.constant 0 : index
    %c8_151 = arith.constant 8 : index
    %c16_152 = arith.constant 16 : index
    %359 = vector.load %arg5[%c0_149, %c0_150, %c8_151, %c16_152] : memref<1x8x16x32xi32, #tpu.memory_space<vmem>>, vector<1x8x1x16xi32>
    %360 = vector.shape_cast %359 : vector<1x8x1x16xi32> to vector<8x16xi32>
    %361 = vector.shape_cast %358 : vector<8x16xi32> to vector<1x8x1x16xi32>
    tpu.vector_store %arg5[%c0_149, %c0_150, %c8_151, %c16_152], %361 {strides = array<i32>} : memref<1x8x16x32xi32, #tpu.memory_space<vmem>>, vector<1x8x1x16xi32>,
    %c0_153 = arith.constant 0 : index
    %c0_154 = arith.constant 0 : index
    %c9 = arith.constant 9 : index
    %c0_155 = arith.constant 0 : index
    %362 = vector.load %arg2[%c0_153, %c0_154, %c9, %c0_155] : memref<1x4x16x16xf32, #tpu.memory_space<vmem>>, vector<1x4x1x16xf32>
    %363 = vector.shape_cast %362 : vector<1x4x1x16xf32> to vector<4x16xf32>
    %364 = arith.truncf %363 : vector<4x16xf32> to vector<4x16xbf16>
    %cst_156 = arith.constant dense<0.000000e+00> : vector<32x16xf32>
    %365 = tpu.matmul %0, %364, %cst_156 {dimension_numbers = #tpu.dot_dimension_numbers<[1], [0], [0], [1], [0, 0, 1, 1], [], []>} : vector<32x4xbf16>, vector<4x16xbf16>, vector<32x16xf32> -> vector<32x16xf32>
    %366 = vector.broadcast %1 : vector<32x1xf32> to vector<32x16xf32>
    %367 = arith.addf %365, %366 : vector<32x16xf32>
    %cst_157 = arith.constant 0.000000e+00 : f32
    %368 = vector.broadcast %cst_157 : f32 to vector<32x16xf32>
    %369 = arith.maximumf %367, %368 : vector<32x16xf32>
    %370 = vector.extract_strided_slice %369 {offsets = [0, 0], sizes = [8, 16], strides = [1, 1]} : vector<32x16xf32> to vector<8x16xf32>
    %371 = arith.truncf %370 : vector<8x16xf32> to vector<8x16xbf16>
    %372 = arith.extf %371 : vector<8x16xbf16> to vector<8x16xf32>
    %373 = tpu.bitcast %372 : vector<8x16xf32> -> vector<8x16xi32>
    %374 = vector.extract_strided_slice %369 {offsets = [8, 0], sizes = [8, 16], strides = [1, 1]} : vector<32x16xf32> to vector<8x16xf32>
    %375 = arith.truncf %374 : vector<8x16xf32> to vector<8x16xbf16>
    %376 = arith.extf %375 : vector<8x16xbf16> to vector<8x16xf32>
    %377 = tpu.bitcast %376 : vector<8x16xf32> -> vector<8x16xi32>
    %c16_i32_158 = arith.constant 16 : i32
    %378 = vector.broadcast %c16_i32_158 : i32 to vector<8x16xi32>
    %379 = arith.shrui %373, %378 : vector<8x16xi32>
    %c-65536_i32_159 = arith.constant -65536 : i32
    %380 = vector.broadcast %c-65536_i32_159 : i32 to vector<8x16xi32>
    %381 = arith.andi %377, %380 : vector<8x16xi32>
    %382 = arith.ori %379, %381 : vector<8x16xi32>
    %c0_160 = arith.constant 0 : index
    %c0_161 = arith.constant 0 : index
    %c9_162 = arith.constant 9 : index
    %c0_163 = arith.constant 0 : index
    %383 = vector.load %arg5[%c0_160, %c0_161, %c9_162, %c0_163] : memref<1x8x16x32xi32, #tpu.memory_space<vmem>>, vector<1x8x1x16xi32>
    %384 = vector.shape_cast %383 : vector<1x8x1x16xi32> to vector<8x16xi32>
    %385 = vector.shape_cast %382 : vector<8x16xi32> to vector<1x8x1x16xi32>
    tpu.vector_store %arg5[%c0_160, %c0_161, %c9_162, %c0_163], %385 {strides = array<i32>} : memref<1x8x16x32xi32, #tpu.memory_space<vmem>>, vector<1x8x1x16xi32>,
    %386 = vector.extract_strided_slice %369 {offsets = [16, 0], sizes = [8, 16], strides = [1, 1]} : vector<32x16xf32> to vector<8x16xf32>
    %387 = arith.truncf %386 : vector<8x16xf32> to vector<8x16xbf16>
    %388 = arith.extf %387 : vector<8x16xbf16> to vector<8x16xf32>
    %389 = tpu.bitcast %388 : vector<8x16xf32> -> vector<8x16xi32>
    %390 = vector.extract_strided_slice %369 {offsets = [24, 0], sizes = [8, 16], strides = [1, 1]} : vector<32x16xf32> to vector<8x16xf32>
    %391 = arith.truncf %390 : vector<8x16xf32> to vector<8x16xbf16>
    %392 = arith.extf %391 : vector<8x16xbf16> to vector<8x16xf32>
    %393 = tpu.bitcast %392 : vector<8x16xf32> -> vector<8x16xi32>
    %c16_i32_164 = arith.constant 16 : i32
    %394 = vector.broadcast %c16_i32_164 : i32 to vector<8x16xi32>
    %395 = arith.shrui %389, %394 : vector<8x16xi32>
    %c-65536_i32_165 = arith.constant -65536 : i32
    %396 = vector.broadcast %c-65536_i32_165 : i32 to vector<8x16xi32>
    %397 = arith.andi %393, %396 : vector<8x16xi32>
    %398 = arith.ori %395, %397 : vector<8x16xi32>
    %c0_166 = arith.constant 0 : index
    %c0_167 = arith.constant 0 : index
    %c9_168 = arith.constant 9 : index
    %c16_169 = arith.constant 16 : index
    %399 = vector.load %arg5[%c0_166, %c0_167, %c9_168, %c16_169] : memref<1x8x16x32xi32, #tpu.memory_space<vmem>>, vector<1x8x1x16xi32>
    %400 = vector.shape_cast %399 : vector<1x8x1x16xi32> to vector<8x16xi32>
    %401 = vector.shape_cast %398 : vector<8x16xi32> to vector<1x8x1x16xi32>
    tpu.vector_store %arg5[%c0_166, %c0_167, %c9_168, %c16_169], %401 {strides = array<i32>} : memref<1x8x16x32xi32, #tpu.memory_space<vmem>>, vector<1x8x1x16xi32>,
    %c0_170 = arith.constant 0 : index
    %c0_171 = arith.constant 0 : index
    %c10 = arith.constant 10 : index
    %c0_172 = arith.constant 0 : index
    %402 = vector.load %arg2[%c0_170, %c0_171, %c10, %c0_172] : memref<1x4x16x16xf32, #tpu.memory_space<vmem>>, vector<1x4x1x16xf32>
    %403 = vector.shape_cast %402 : vector<1x4x1x16xf32> to vector<4x16xf32>
    %404 = arith.truncf %403 : vector<4x16xf32> to vector<4x16xbf16>
    %cst_173 = arith.constant dense<0.000000e+00> : vector<32x16xf32>
    %405 = tpu.matmul %0, %404, %cst_173 {dimension_numbers = #tpu.dot_dimension_numbers<[1], [0], [0], [1], [0, 0, 1, 1], [], []>} : vector<32x4xbf16>, vector<4x16xbf16>, vector<32x16xf32> -> vector<32x16xf32>
    %406 = vector.broadcast %1 : vector<32x1xf32> to vector<32x16xf32>
    %407 = arith.addf %405, %406 : vector<32x16xf32>
    %cst_174 = arith.constant 0.000000e+00 : f32
    %408 = vector.broadcast %cst_174 : f32 to vector<32x16xf32>
    %409 = arith.maximumf %407, %408 : vector<32x16xf32>
    %410 = vector.extract_strided_slice %409 {offsets = [0, 0], sizes = [8, 16], strides = [1, 1]} : vector<32x16xf32> to vector<8x16xf32>
    %411 = arith.truncf %410 : vector<8x16xf32> to vector<8x16xbf16>
    %412 = arith.extf %411 : vector<8x16xbf16> to vector<8x16xf32>
    %413 = tpu.bitcast %412 : vector<8x16xf32> -> vector<8x16xi32>
    %414 = vector.extract_strided_slice %409 {offsets = [8, 0], sizes = [8, 16], strides = [1, 1]} : vector<32x16xf32> to vector<8x16xf32>
    %415 = arith.truncf %414 : vector<8x16xf32> to vector<8x16xbf16>
    %416 = arith.extf %415 : vector<8x16xbf16> to vector<8x16xf32>
    %417 = tpu.bitcast %416 : vector<8x16xf32> -> vector<8x16xi32>
    %c16_i32_175 = arith.constant 16 : i32
    %418 = vector.broadcast %c16_i32_175 : i32 to vector<8x16xi32>
    %419 = arith.shrui %413, %418 : vector<8x16xi32>
    %c-65536_i32_176 = arith.constant -65536 : i32
    %420 = vector.broadcast %c-65536_i32_176 : i32 to vector<8x16xi32>
    %421 = arith.andi %417, %420 : vector<8x16xi32>
    %422 = arith.ori %419, %421 : vector<8x16xi32>
    %c0_177 = arith.constant 0 : index
    %c0_178 = arith.constant 0 : index
    %c10_179 = arith.constant 10 : index
    %c0_180 = arith.constant 0 : index
    %423 = vector.load %arg5[%c0_177, %c0_178, %c10_179, %c0_180] : memref<1x8x16x32xi32, #tpu.memory_space<vmem>>, vector<1x8x1x16xi32>
    %424 = vector.shape_cast %423 : vector<1x8x1x16xi32> to vector<8x16xi32>
    %425 = vector.shape_cast %422 : vector<8x16xi32> to vector<1x8x1x16xi32>
    tpu.vector_store %arg5[%c0_177, %c0_178, %c10_179, %c0_180], %425 {strides = array<i32>} : memref<1x8x16x32xi32, #tpu.memory_space<vmem>>, vector<1x8x1x16xi32>,
    %426 = vector.extract_strided_slice %409 {offsets = [16, 0], sizes = [8, 16], strides = [1, 1]} : vector<32x16xf32> to vector<8x16xf32>
    %427 = arith.truncf %426 : vector<8x16xf32> to vector<8x16xbf16>
    %428 = arith.extf %427 : vector<8x16xbf16> to vector<8x16xf32>
    %429 = tpu.bitcast %428 : vector<8x16xf32> -> vector<8x16xi32>
    %430 = vector.extract_strided_slice %409 {offsets = [24, 0], sizes = [8, 16], strides = [1, 1]} : vector<32x16xf32> to vector<8x16xf32>
    %431 = arith.truncf %430 : vector<8x16xf32> to vector<8x16xbf16>
    %432 = arith.extf %431 : vector<8x16xbf16> to vector<8x16xf32>
    %433 = tpu.bitcast %432 : vector<8x16xf32> -> vector<8x16xi32>
    %c16_i32_181 = arith.constant 16 : i32
    %434 = vector.broadcast %c16_i32_181 : i32 to vector<8x16xi32>
    %435 = arith.shrui %429, %434 : vector<8x16xi32>
    %c-65536_i32_182 = arith.constant -65536 : i32
    %436 = vector.broadcast %c-65536_i32_182 : i32 to vector<8x16xi32>
    %437 = arith.andi %433, %436 : vector<8x16xi32>
    %438 = arith.ori %435, %437 : vector<8x16xi32>
    %c0_183 = arith.constant 0 : index
    %c0_184 = arith.constant 0 : index
    %c10_185 = arith.constant 10 : index
    %c16_186 = arith.constant 16 : index
    %439 = vector.load %arg5[%c0_183, %c0_184, %c10_185, %c16_186] : memref<1x8x16x32xi32, #tpu.memory_space<vmem>>, vector<1x8x1x16xi32>
    %440 = vector.shape_cast %439 : vector<1x8x1x16xi32> to vector<8x16xi32>
    %441 = vector.shape_cast %438 : vector<8x16xi32> to vector<1x8x1x16xi32>
    tpu.vector_store %arg5[%c0_183, %c0_184, %c10_185, %c16_186], %441 {strides = array<i32>} : memref<1x8x16x32xi32, #tpu.memory_space<vmem>>, vector<1x8x1x16xi32>,
    %c0_187 = arith.constant 0 : index
    %c0_188 = arith.constant 0 : index
    %c11 = arith.constant 11 : index
    %c0_189 = arith.constant 0 : index
    %442 = vector.load %arg2[%c0_187, %c0_188, %c11, %c0_189] : memref<1x4x16x16xf32, #tpu.memory_space<vmem>>, vector<1x4x1x16xf32>
    %443 = vector.shape_cast %442 : vector<1x4x1x16xf32> to vector<4x16xf32>
    %444 = arith.truncf %443 : vector<4x16xf32> to vector<4x16xbf16>
    %cst_190 = arith.constant dense<0.000000e+00> : vector<32x16xf32>
    %445 = tpu.matmul %0, %444, %cst_190 {dimension_numbers = #tpu.dot_dimension_numbers<[1], [0], [0], [1], [0, 0, 1, 1], [], []>} : vector<32x4xbf16>, vector<4x16xbf16>, vector<32x16xf32> -> vector<32x16xf32>
    %446 = vector.broadcast %1 : vector<32x1xf32> to vector<32x16xf32>
    %447 = arith.addf %445, %446 : vector<32x16xf32>
    %cst_191 = arith.constant 0.000000e+00 : f32
    %448 = vector.broadcast %cst_191 : f32 to vector<32x16xf32>
    %449 = arith.maximumf %447, %448 : vector<32x16xf32>
    %450 = vector.extract_strided_slice %449 {offsets = [0, 0], sizes = [8, 16], strides = [1, 1]} : vector<32x16xf32> to vector<8x16xf32>
    %451 = arith.truncf %450 : vector<8x16xf32> to vector<8x16xbf16>
    %452 = arith.extf %451 : vector<8x16xbf16> to vector<8x16xf32>
    %453 = tpu.bitcast %452 : vector<8x16xf32> -> vector<8x16xi32>
    %454 = vector.extract_strided_slice %449 {offsets = [8, 0], sizes = [8, 16], strides = [1, 1]} : vector<32x16xf32> to vector<8x16xf32>
    %455 = arith.truncf %454 : vector<8x16xf32> to vector<8x16xbf16>
    %456 = arith.extf %455 : vector<8x16xbf16> to vector<8x16xf32>
    %457 = tpu.bitcast %456 : vector<8x16xf32> -> vector<8x16xi32>
    %c16_i32_192 = arith.constant 16 : i32
    %458 = vector.broadcast %c16_i32_192 : i32 to vector<8x16xi32>
    %459 = arith.shrui %453, %458 : vector<8x16xi32>
    %c-65536_i32_193 = arith.constant -65536 : i32
    %460 = vector.broadcast %c-65536_i32_193 : i32 to vector<8x16xi32>
    %461 = arith.andi %457, %460 : vector<8x16xi32>
    %462 = arith.ori %459, %461 : vector<8x16xi32>
    %c0_194 = arith.constant 0 : index
    %c0_195 = arith.constant 0 : index
    %c11_196 = arith.constant 11 : index
    %c0_197 = arith.constant 0 : index
    %463 = vector.load %arg5[%c0_194, %c0_195, %c11_196, %c0_197] : memref<1x8x16x32xi32, #tpu.memory_space<vmem>>, vector<1x8x1x16xi32>
    %464 = vector.shape_cast %463 : vector<1x8x1x16xi32> to vector<8x16xi32>
    %465 = vector.shape_cast %462 : vector<8x16xi32> to vector<1x8x1x16xi32>
    tpu.vector_store %arg5[%c0_194, %c0_195, %c11_196, %c0_197], %465 {strides = array<i32>} : memref<1x8x16x32xi32, #tpu.memory_space<vmem>>, vector<1x8x1x16xi32>,
    %466 = vector.extract_strided_slice %449 {offsets = [16, 0], sizes = [8, 16], strides = [1, 1]} : vector<32x16xf32> to vector<8x16xf32>
    %467 = arith.truncf %466 : vector<8x16xf32> to vector<8x16xbf16>
    %468 = arith.extf %467 : vector<8x16xbf16> to vector<8x16xf32>
    %469 = tpu.bitcast %468 : vector<8x16xf32> -> vector<8x16xi32>
    %470 = vector.extract_strided_slice %449 {offsets = [24, 0], sizes = [8, 16], strides = [1, 1]} : vector<32x16xf32> to vector<8x16xf32>
    %471 = arith.truncf %470 : vector<8x16xf32> to vector<8x16xbf16>
    %472 = arith.extf %471 : vector<8x16xbf16> to vector<8x16xf32>
    %473 = tpu.bitcast %472 : vector<8x16xf32> -> vector<8x16xi32>
    %c16_i32_198 = arith.constant 16 : i32
    %474 = vector.broadcast %c16_i32_198 : i32 to vector<8x16xi32>
    %475 = arith.shrui %469, %474 : vector<8x16xi32>
    %c-65536_i32_199 = arith.constant -65536 : i32
    %476 = vector.broadcast %c-65536_i32_199 : i32 to vector<8x16xi32>
    %477 = arith.andi %473, %476 : vector<8x16xi32>
    %478 = arith.ori %475, %477 : vector<8x16xi32>
    %c0_200 = arith.constant 0 : index
    %c0_201 = arith.constant 0 : index
    %c11_202 = arith.constant 11 : index
    %c16_203 = arith.constant 16 : index
    %479 = vector.load %arg5[%c0_200, %c0_201, %c11_202, %c16_203] : memref<1x8x16x32xi32, #tpu.memory_space<vmem>>, vector<1x8x1x16xi32>
    %480 = vector.shape_cast %479 : vector<1x8x1x16xi32> to vector<8x16xi32>
    %481 = vector.shape_cast %478 : vector<8x16xi32> to vector<1x8x1x16xi32>
    tpu.vector_store %arg5[%c0_200, %c0_201, %c11_202, %c16_203], %481 {strides = array<i32>} : memref<1x8x16x32xi32, #tpu.memory_space<vmem>>, vector<1x8x1x16xi32>,
    %c0_204 = arith.constant 0 : index
    %c0_205 = arith.constant 0 : index
    %c12 = arith.constant 12 : index
    %c0_206 = arith.constant 0 : index
    %482 = vector.load %arg2[%c0_204, %c0_205, %c12, %c0_206] : memref<1x4x16x16xf32, #tpu.memory_space<vmem>>, vector<1x4x1x16xf32>
    %483 = vector.shape_cast %482 : vector<1x4x1x16xf32> to vector<4x16xf32>
    %484 = arith.truncf %483 : vector<4x16xf32> to vector<4x16xbf16>
    %cst_207 = arith.constant dense<0.000000e+00> : vector<32x16xf32>
    %485 = tpu.matmul %0, %484, %cst_207 {dimension_numbers = #tpu.dot_dimension_numbers<[1], [0], [0], [1], [0, 0, 1, 1], [], []>} : vector<32x4xbf16>, vector<4x16xbf16>, vector<32x16xf32> -> vector<32x16xf32>
    %486 = vector.broadcast %1 : vector<32x1xf32> to vector<32x16xf32>
    %487 = arith.addf %485, %486 : vector<32x16xf32>
    %cst_208 = arith.constant 0.000000e+00 : f32
    %488 = vector.broadcast %cst_208 : f32 to vector<32x16xf32>
    %489 = arith.maximumf %487, %488 : vector<32x16xf32>
    %490 = vector.extract_strided_slice %489 {offsets = [0, 0], sizes = [8, 16], strides = [1, 1]} : vector<32x16xf32> to vector<8x16xf32>
    %491 = arith.truncf %490 : vector<8x16xf32> to vector<8x16xbf16>
    %492 = arith.extf %491 : vector<8x16xbf16> to vector<8x16xf32>
    %493 = tpu.bitcast %492 : vector<8x16xf32> -> vector<8x16xi32>
    %494 = vector.extract_strided_slice %489 {offsets = [8, 0], sizes = [8, 16], strides = [1, 1]} : vector<32x16xf32> to vector<8x16xf32>
    %495 = arith.truncf %494 : vector<8x16xf32> to vector<8x16xbf16>
    %496 = arith.extf %495 : vector<8x16xbf16> to vector<8x16xf32>
    %497 = tpu.bitcast %496 : vector<8x16xf32> -> vector<8x16xi32>
    %c16_i32_209 = arith.constant 16 : i32
    %498 = vector.broadcast %c16_i32_209 : i32 to vector<8x16xi32>
    %499 = arith.shrui %493, %498 : vector<8x16xi32>
    %c-65536_i32_210 = arith.constant -65536 : i32
    %500 = vector.broadcast %c-65536_i32_210 : i32 to vector<8x16xi32>
    %501 = arith.andi %497, %500 : vector<8x16xi32>
    %502 = arith.ori %499, %501 : vector<8x16xi32>
    %c0_211 = arith.constant 0 : index
    %c0_212 = arith.constant 0 : index
    %c12_213 = arith.constant 12 : index
    %c0_214 = arith.constant 0 : index
    %503 = vector.load %arg5[%c0_211, %c0_212, %c12_213, %c0_214] : memref<1x8x16x32xi32, #tpu.memory_space<vmem>>, vector<1x8x1x16xi32>
    %504 = vector.shape_cast %503 : vector<1x8x1x16xi32> to vector<8x16xi32>
    %505 = vector.shape_cast %502 : vector<8x16xi32> to vector<1x8x1x16xi32>
    tpu.vector_store %arg5[%c0_211, %c0_212, %c12_213, %c0_214], %505 {strides = array<i32>} : memref<1x8x16x32xi32, #tpu.memory_space<vmem>>, vector<1x8x1x16xi32>,
    %506 = vector.extract_strided_slice %489 {offsets = [16, 0], sizes = [8, 16], strides = [1, 1]} : vector<32x16xf32> to vector<8x16xf32>
    %507 = arith.truncf %506 : vector<8x16xf32> to vector<8x16xbf16>
    %508 = arith.extf %507 : vector<8x16xbf16> to vector<8x16xf32>
    %509 = tpu.bitcast %508 : vector<8x16xf32> -> vector<8x16xi32>
    %510 = vector.extract_strided_slice %489 {offsets = [24, 0], sizes = [8, 16], strides = [1, 1]} : vector<32x16xf32> to vector<8x16xf32>
    %511 = arith.truncf %510 : vector<8x16xf32> to vector<8x16xbf16>
    %512 = arith.extf %511 : vector<8x16xbf16> to vector<8x16xf32>
    %513 = tpu.bitcast %512 : vector<8x16xf32> -> vector<8x16xi32>
    %c16_i32_215 = arith.constant 16 : i32
    %514 = vector.broadcast %c16_i32_215 : i32 to vector<8x16xi32>
    %515 = arith.shrui %509, %514 : vector<8x16xi32>
    %c-65536_i32_216 = arith.constant -65536 : i32
    %516 = vector.broadcast %c-65536_i32_216 : i32 to vector<8x16xi32>
    %517 = arith.andi %513, %516 : vector<8x16xi32>
    %518 = arith.ori %515, %517 : vector<8x16xi32>
    %c0_217 = arith.constant 0 : index
    %c0_218 = arith.constant 0 : index
    %c12_219 = arith.constant 12 : index
    %c16_220 = arith.constant 16 : index
    %519 = vector.load %arg5[%c0_217, %c0_218, %c12_219, %c16_220] : memref<1x8x16x32xi32, #tpu.memory_space<vmem>>, vector<1x8x1x16xi32>
    %520 = vector.shape_cast %519 : vector<1x8x1x16xi32> to vector<8x16xi32>
    %521 = vector.shape_cast %518 : vector<8x16xi32> to vector<1x8x1x16xi32>
    tpu.vector_store %arg5[%c0_217, %c0_218, %c12_219, %c16_220], %521 {strides = array<i32>} : memref<1x8x16x32xi32, #tpu.memory_space<vmem>>, vector<1x8x1x16xi32>,
    %c0_221 = arith.constant 0 : index
    %c0_222 = arith.constant 0 : index
    %c13 = arith.constant 13 : index
    %c0_223 = arith.constant 0 : index
    %522 = vector.load %arg2[%c0_221, %c0_222, %c13, %c0_223] : memref<1x4x16x16xf32, #tpu.memory_space<vmem>>, vector<1x4x1x16xf32>
    %523 = vector.shape_cast %522 : vector<1x4x1x16xf32> to vector<4x16xf32>
    %524 = arith.truncf %523 : vector<4x16xf32> to vector<4x16xbf16>
    %cst_224 = arith.constant dense<0.000000e+00> : vector<32x16xf32>
    %525 = tpu.matmul %0, %524, %cst_224 {dimension_numbers = #tpu.dot_dimension_numbers<[1], [0], [0], [1], [0, 0, 1, 1], [], []>} : vector<32x4xbf16>, vector<4x16xbf16>, vector<32x16xf32> -> vector<32x16xf32>
    %526 = vector.broadcast %1 : vector<32x1xf32> to vector<32x16xf32>
    %527 = arith.addf %525, %526 : vector<32x16xf32>
    %cst_225 = arith.constant 0.000000e+00 : f32
    %528 = vector.broadcast %cst_225 : f32 to vector<32x16xf32>
    %529 = arith.maximumf %527, %528 : vector<32x16xf32>
    %530 = vector.extract_strided_slice %529 {offsets = [0, 0], sizes = [8, 16], strides = [1, 1]} : vector<32x16xf32> to vector<8x16xf32>
    %531 = arith.truncf %530 : vector<8x16xf32> to vector<8x16xbf16>
    %532 = arith.extf %531 : vector<8x16xbf16> to vector<8x16xf32>
    %533 = tpu.bitcast %532 : vector<8x16xf32> -> vector<8x16xi32>
    %534 = vector.extract_strided_slice %529 {offsets = [8, 0], sizes = [8, 16], strides = [1, 1]} : vector<32x16xf32> to vector<8x16xf32>
    %535 = arith.truncf %534 : vector<8x16xf32> to vector<8x16xbf16>
    %536 = arith.extf %535 : vector<8x16xbf16> to vector<8x16xf32>
    %537 = tpu.bitcast %536 : vector<8x16xf32> -> vector<8x16xi32>
    %c16_i32_226 = arith.constant 16 : i32
    %538 = vector.broadcast %c16_i32_226 : i32 to vector<8x16xi32>
    %539 = arith.shrui %533, %538 : vector<8x16xi32>
    %c-65536_i32_227 = arith.constant -65536 : i32
    %540 = vector.broadcast %c-65536_i32_227 : i32 to vector<8x16xi32>
    %541 = arith.andi %537, %540 : vector<8x16xi32>
    %542 = arith.ori %539, %541 : vector<8x16xi32>
    %c0_228 = arith.constant 0 : index
    %c0_229 = arith.constant 0 : index
    %c13_230 = arith.constant 13 : index
    %c0_231 = arith.constant 0 : index
    %543 = vector.load %arg5[%c0_228, %c0_229, %c13_230, %c0_231] : memref<1x8x16x32xi32, #tpu.memory_space<vmem>>, vector<1x8x1x16xi32>
    %544 = vector.shape_cast %543 : vector<1x8x1x16xi32> to vector<8x16xi32>
    %545 = vector.shape_cast %542 : vector<8x16xi32> to vector<1x8x1x16xi32>
    tpu.vector_store %arg5[%c0_228, %c0_229, %c13_230, %c0_231], %545 {strides = array<i32>} : memref<1x8x16x32xi32, #tpu.memory_space<vmem>>, vector<1x8x1x16xi32>,
    %546 = vector.extract_strided_slice %529 {offsets = [16, 0], sizes = [8, 16], strides = [1, 1]} : vector<32x16xf32> to vector<8x16xf32>
    %547 = arith.truncf %546 : vector<8x16xf32> to vector<8x16xbf16>
    %548 = arith.extf %547 : vector<8x16xbf16> to vector<8x16xf32>
    %549 = tpu.bitcast %548 : vector<8x16xf32> -> vector<8x16xi32>
    %550 = vector.extract_strided_slice %529 {offsets = [24, 0], sizes = [8, 16], strides = [1, 1]} : vector<32x16xf32> to vector<8x16xf32>
    %551 = arith.truncf %550 : vector<8x16xf32> to vector<8x16xbf16>
    %552 = arith.extf %551 : vector<8x16xbf16> to vector<8x16xf32>
    %553 = tpu.bitcast %552 : vector<8x16xf32> -> vector<8x16xi32>
    %c16_i32_232 = arith.constant 16 : i32
    %554 = vector.broadcast %c16_i32_232 : i32 to vector<8x16xi32>
    %555 = arith.shrui %549, %554 : vector<8x16xi32>
    %c-65536_i32_233 = arith.constant -65536 : i32
    %556 = vector.broadcast %c-65536_i32_233 : i32 to vector<8x16xi32>
    %557 = arith.andi %553, %556 : vector<8x16xi32>
    %558 = arith.ori %555, %557 : vector<8x16xi32>
    %c0_234 = arith.constant 0 : index
    %c0_235 = arith.constant 0 : index
    %c13_236 = arith.constant 13 : index
    %c16_237 = arith.constant 16 : index
    %559 = vector.load %arg5[%c0_234, %c0_235, %c13_236, %c16_237] : memref<1x8x16x32xi32, #tpu.memory_space<vmem>>, vector<1x8x1x16xi32>
    %560 = vector.shape_cast %559 : vector<1x8x1x16xi32> to vector<8x16xi32>
    %561 = vector.shape_cast %558 : vector<8x16xi32> to vector<1x8x1x16xi32>
    tpu.vector_store %arg5[%c0_234, %c0_235, %c13_236, %c16_237], %561 {strides = array<i32>} : memref<1x8x16x32xi32, #tpu.memory_space<vmem>>, vector<1x8x1x16xi32>,
    %c0_238 = arith.constant 0 : index
    %c0_239 = arith.constant 0 : index
    %c14 = arith.constant 14 : index
    %c0_240 = arith.constant 0 : index
    %562 = vector.load %arg2[%c0_238, %c0_239, %c14, %c0_240] : memref<1x4x16x16xf32, #tpu.memory_space<vmem>>, vector<1x4x1x16xf32>
    %563 = vector.shape_cast %562 : vector<1x4x1x16xf32> to vector<4x16xf32>
    %564 = arith.truncf %563 : vector<4x16xf32> to vector<4x16xbf16>
    %cst_241 = arith.constant dense<0.000000e+00> : vector<32x16xf32>
    %565 = tpu.matmul %0, %564, %cst_241 {dimension_numbers = #tpu.dot_dimension_numbers<[1], [0], [0], [1], [0, 0, 1, 1], [], []>} : vector<32x4xbf16>, vector<4x16xbf16>, vector<32x16xf32> -> vector<32x16xf32>
    %566 = vector.broadcast %1 : vector<32x1xf32> to vector<32x16xf32>
    %567 = arith.addf %565, %566 : vector<32x16xf32>
    %cst_242 = arith.constant 0.000000e+00 : f32
    %568 = vector.broadcast %cst_242 : f32 to vector<32x16xf32>
    %569 = arith.maximumf %567, %568 : vector<32x16xf32>
    %570 = vector.extract_strided_slice %569 {offsets = [0, 0], sizes = [8, 16], strides = [1, 1]} : vector<32x16xf32> to vector<8x16xf32>
    %571 = arith.truncf %570 : vector<8x16xf32> to vector<8x16xbf16>
    %572 = arith.extf %571 : vector<8x16xbf16> to vector<8x16xf32>
    %573 = tpu.bitcast %572 : vector<8x16xf32> -> vector<8x16xi32>
    %574 = vector.extract_strided_slice %569 {offsets = [8, 0], sizes = [8, 16], strides = [1, 1]} : vector<32x16xf32> to vector<8x16xf32>
    %575 = arith.truncf %574 : vector<8x16xf32> to vector<8x16xbf16>
    %576 = arith.extf %575 : vector<8x16xbf16> to vector<8x16xf32>
    %577 = tpu.bitcast %576 : vector<8x16xf32> -> vector<8x16xi32>
    %c16_i32_243 = arith.constant 16 : i32
    %578 = vector.broadcast %c16_i32_243 : i32 to vector<8x16xi32>
    %579 = arith.shrui %573, %578 : vector<8x16xi32>
    %c-65536_i32_244 = arith.constant -65536 : i32
    %580 = vector.broadcast %c-65536_i32_244 : i32 to vector<8x16xi32>
    %581 = arith.andi %577, %580 : vector<8x16xi32>
    %582 = arith.ori %579, %581 : vector<8x16xi32>
    %c0_245 = arith.constant 0 : index
    %c0_246 = arith.constant 0 : index
    %c14_247 = arith.constant 14 : index
    %c0_248 = arith.constant 0 : index
    %583 = vector.load %arg5[%c0_245, %c0_246, %c14_247, %c0_248] : memref<1x8x16x32xi32, #tpu.memory_space<vmem>>, vector<1x8x1x16xi32>
    %584 = vector.shape_cast %583 : vector<1x8x1x16xi32> to vector<8x16xi32>
    %585 = vector.shape_cast %582 : vector<8x16xi32> to vector<1x8x1x16xi32>
    tpu.vector_store %arg5[%c0_245, %c0_246, %c14_247, %c0_248], %585 {strides = array<i32>} : memref<1x8x16x32xi32, #tpu.memory_space<vmem>>, vector<1x8x1x16xi32>,
    %586 = vector.extract_strided_slice %569 {offsets = [16, 0], sizes = [8, 16], strides = [1, 1]} : vector<32x16xf32> to vector<8x16xf32>
    %587 = arith.truncf %586 : vector<8x16xf32> to vector<8x16xbf16>
    %588 = arith.extf %587 : vector<8x16xbf16> to vector<8x16xf32>
    %589 = tpu.bitcast %588 : vector<8x16xf32> -> vector<8x16xi32>
    %590 = vector.extract_strided_slice %569 {offsets = [24, 0], sizes = [8, 16], strides = [1, 1]} : vector<32x16xf32> to vector<8x16xf32>
    %591 = arith.truncf %590 : vector<8x16xf32> to vector<8x16xbf16>
    %592 = arith.extf %591 : vector<8x16xbf16> to vector<8x16xf32>
    %593 = tpu.bitcast %592 : vector<8x16xf32> -> vector<8x16xi32>
    %c16_i32_249 = arith.constant 16 : i32
    %594 = vector.broadcast %c16_i32_249 : i32 to vector<8x16xi32>
    %595 = arith.shrui %589, %594 : vector<8x16xi32>
    %c-65536_i32_250 = arith.constant -65536 : i32
    %596 = vector.broadcast %c-65536_i32_250 : i32 to vector<8x16xi32>
    %597 = arith.andi %593, %596 : vector<8x16xi32>
    %598 = arith.ori %595, %597 : vector<8x16xi32>
    %c0_251 = arith.constant 0 : index
    %c0_252 = arith.constant 0 : index
    %c14_253 = arith.constant 14 : index
    %c16_254 = arith.constant 16 : index
    %599 = vector.load %arg5[%c0_251, %c0_252, %c14_253, %c16_254] : memref<1x8x16x32xi32, #tpu.memory_space<vmem>>, vector<1x8x1x16xi32>
    %600 = vector.shape_cast %599 : vector<1x8x1x16xi32> to vector<8x16xi32>
    %601 = vector.shape_cast %598 : vector<8x16xi32> to vector<1x8x1x16xi32>
    tpu.vector_store %arg5[%c0_251, %c0_252, %c14_253, %c16_254], %601 {strides = array<i32>} : memref<1x8x16x32xi32, #tpu.memory_space<vmem>>, vector<1x8x1x16xi32>,
    %c0_255 = arith.constant 0 : index
    %c0_256 = arith.constant 0 : index
    %c15 = arith.constant 15 : index
    %c0_257 = arith.constant 0 : index
    %602 = vector.load %arg2[%c0_255, %c0_256, %c15, %c0_257] : memref<1x4x16x16xf32, #tpu.memory_space<vmem>>, vector<1x4x1x16xf32>
    %603 = vector.shape_cast %602 : vector<1x4x1x16xf32> to vector<4x16xf32>
    %604 = arith.truncf %603 : vector<4x16xf32> to vector<4x16xbf16>
    %cst_258 = arith.constant dense<0.000000e+00> : vector<32x16xf32>
    %605 = tpu.matmul %0, %604, %cst_258 {dimension_numbers = #tpu.dot_dimension_numbers<[1], [0], [0], [1], [0, 0, 1, 1], [], []>} : vector<32x4xbf16>, vector<4x16xbf16>, vector<32x16xf32> -> vector<32x16xf32>
    %606 = vector.broadcast %1 : vector<32x1xf32> to vector<32x16xf32>
    %607 = arith.addf %605, %606 : vector<32x16xf32>
    %cst_259 = arith.constant 0.000000e+00 : f32
    %608 = vector.broadcast %cst_259 : f32 to vector<32x16xf32>
    %609 = arith.maximumf %607, %608 : vector<32x16xf32>
    %610 = vector.extract_strided_slice %609 {offsets = [0, 0], sizes = [8, 16], strides = [1, 1]} : vector<32x16xf32> to vector<8x16xf32>
    %611 = arith.truncf %610 : vector<8x16xf32> to vector<8x16xbf16>
    %612 = arith.extf %611 : vector<8x16xbf16> to vector<8x16xf32>
    %613 = tpu.bitcast %612 : vector<8x16xf32> -> vector<8x16xi32>
    %614 = vector.extract_strided_slice %609 {offsets = [8, 0], sizes = [8, 16], strides = [1, 1]} : vector<32x16xf32> to vector<8x16xf32>
    %615 = arith.truncf %614 : vector<8x16xf32> to vector<8x16xbf16>
    %616 = arith.extf %615 : vector<8x16xbf16> to vector<8x16xf32>
    %617 = tpu.bitcast %616 : vector<8x16xf32> -> vector<8x16xi32>
    %c16_i32_260 = arith.constant 16 : i32
    %618 = vector.broadcast %c16_i32_260 : i32 to vector<8x16xi32>
    %619 = arith.shrui %613, %618 : vector<8x16xi32>
    %c-65536_i32_261 = arith.constant -65536 : i32
    %620 = vector.broadcast %c-65536_i32_261 : i32 to vector<8x16xi32>
    %621 = arith.andi %617, %620 : vector<8x16xi32>
    %622 = arith.ori %619, %621 : vector<8x16xi32>
    %c0_262 = arith.constant 0 : index
    %c0_263 = arith.constant 0 : index
    %c15_264 = arith.constant 15 : index
    %c0_265 = arith.constant 0 : index
    %623 = vector.load %arg5[%c0_262, %c0_263, %c15_264, %c0_265] : memref<1x8x16x32xi32, #tpu.memory_space<vmem>>, vector<1x8x1x16xi32>
    %624 = vector.shape_cast %623 : vector<1x8x1x16xi32> to vector<8x16xi32>
    %625 = vector.shape_cast %622 : vector<8x16xi32> to vector<1x8x1x16xi32>
    tpu.vector_store %arg5[%c0_262, %c0_263, %c15_264, %c0_265], %625 {strides = array<i32>} : memref<1x8x16x32xi32, #tpu.memory_space<vmem>>, vector<1x8x1x16xi32>,
    %626 = vector.extract_strided_slice %609 {offsets = [16, 0], sizes = [8, 16], strides = [1, 1]} : vector<32x16xf32> to vector<8x16xf32>
    %627 = arith.truncf %626 : vector<8x16xf32> to vector<8x16xbf16>
    %628 = arith.extf %627 : vector<8x16xbf16> to vector<8x16xf32>
    %629 = tpu.bitcast %628 : vector<8x16xf32> -> vector<8x16xi32>
    %630 = vector.extract_strided_slice %609 {offsets = [24, 0], sizes = [8, 16], strides = [1, 1]} : vector<32x16xf32> to vector<8x16xf32>
    %631 = arith.truncf %630 : vector<8x16xf32> to vector<8x16xbf16>
    %632 = arith.extf %631 : vector<8x16xbf16> to vector<8x16xf32>
    %633 = tpu.bitcast %632 : vector<8x16xf32> -> vector<8x16xi32>
    %c16_i32_266 = arith.constant 16 : i32
    %634 = vector.broadcast %c16_i32_266 : i32 to vector<8x16xi32>
    %635 = arith.shrui %629, %634 : vector<8x16xi32>
    %c-65536_i32_267 = arith.constant -65536 : i32
    %636 = vector.broadcast %c-65536_i32_267 : i32 to vector<8x16xi32>
    %637 = arith.andi %633, %636 : vector<8x16xi32>
    %638 = arith.ori %635, %637 : vector<8x16xi32>
    %c0_268 = arith.constant 0 : index
    %c0_269 = arith.constant 0 : index
    %c15_270 = arith.constant 15 : index
    %c16_271 = arith.constant 16 : index
    %639 = vector.load %arg5[%c0_268, %c0_269, %c15_270, %c16_271] : memref<1x8x16x32xi32, #tpu.memory_space<vmem>>, vector<1x8x1x16xi32>
    %640 = vector.shape_cast %639 : vector<1x8x1x16xi32> to vector<8x16xi32>
    %641 = vector.shape_cast %638 : vector<8x16xi32> to vector<1x8x1x16xi32>
    tpu.vector_store %arg5[%c0_268, %c0_269, %c15_270, %c16_271], %641 {strides = array<i32>} : memref<1x8x16x32xi32, #tpu.memory_space<vmem>>, vector<1x8x1x16xi32>,
    return
  }
  func.func @transform_0(%arg0: i32, %arg1: i32) -> (i32, i32, i32, i32) {
    %c0_i32 = arith.constant 0 : i32
    %c0_i32_0 = arith.constant 0 : i32
    %c0_i32_1 = arith.constant 0 : i32
    return %arg0, %c0_i32, %arg1, %c0_i32_0 : i32, i32, i32, i32
  }
  func.func @transform_1(%arg0: i32, %arg1: i32) -> (i32, i32) {
    %c0_i32 = arith.constant 0 : i32
    %c0_i32_0 = arith.constant 0 : i32
    %c0_i32_1 = arith.constant 0 : i32
    return %c0_i32, %c0_i32_0 : i32, i32
  }
  func.func @transform_2(%arg0: i32, %arg1: i32) -> (i32, i32) {
    %c0_i32 = arith.constant 0 : i32
    %c0_i32_0 = arith.constant 0 : i32
    %c0_i32_1 = arith.constant 0 : i32
    return %c0_i32, %c0_i32_0 : i32, i32
  }
  func.func @transform_3(%arg0: i32, %arg1: i32) -> (i32, i32, i32, i32) {
    %c0_i32 = arith.constant 0 : i32
    %c0_i32_0 = arith.constant 0 : i32
    %c0_i32_1 = arith.constant 0 : i32
    return %arg0, %c0_i32, %arg1, %c0_i32_0 : i32, i32, i32, i32
  }
}

</mosaic_0001>

<bundles_post_ra>
// kernel: tpu_custom_call.1
= control target key start
LH: loop header
LB: loop body
LE: loop exit
PB: predicated region body
PF: predicated region fallthrough
CT: control target
= control target key end

     0   :  { %8 = vsyncpa [#allocation3], 0  ;;  %s7306_s0 = inlined_call_operand.hbm [shape: f32[2,4,16,16], index: 0, kind: input, shape index: {}]   ;;  %s7307_s1 = inlined_call_operand.vmem [shape: bf16[32,4], index: 1, kind: input, shape index: {}]   ;;  %s7308_s2 = inlined_call_operand.vmem [shape: f32[32,1], index: 2, kind: input, shape index: {}]   ;;  %s7309_s3 = inlined_call_operand.hbm [shape: u32[2,8,16,32], index: 3, kind: output, shape index: {}]  }
   0x1   :  { %10 = vsyncpa [#allocation3 + $0x1], 0 }
   0x2   :  { %11 = vsyncpa [#allocation4], 0 }
   0x3   :  { %13 = vsyncpa [#allocation4 + $0x1], 0  ;;  %s4935_s12 = smov 0   ;;  %s4937_s13 = smov 0  }
   0x4   :  { %s4939_s14 = smov 0   ;;  %s4941_s15 = smov 0  }
   0x5   :  { %s4943_s16 = smov 0   ;;  %s4945_s17 = smov 0  }
   0x6 LB: > { %s4508_s18 = sadd.s32 4294967295, %s4904_s17   ;;  %s4509_s19 = sadd.s32 4294967294, %s4904_s17   ;;  %s4904_s17 = sphi %s4945_s17, %s19_s17   ;;  %s4900_s16 = sphi %s4943_s16, %s7505_s16   ;;  %s4896_s15 = sphi %s4941_s15, %s7504_s15   ;;  %s4892_s14 = sphi %s4939_s14, %s7503_s14   ;;  %s4888_s13 = sphi %s4937_s13, %s7502_s13   ;;  %s4884_s12 = sphi %s4935_s12, %s7501_s12  }
   0x7   : > { %s31_s20 = sadd.s32 1, %s4900_s16  ;;  %s40_s21 = sadd.s32 1, %s4892_s14 }
   0x8   : > { %p33_p0 = scmp.ge.s32.totalorder %s31_s20, 2  ;;  %p47_p1 = scmp.ne.s32.totalorder %s4892_s14, %s4888_s13 }
   0x9   : > { %p48_p2 = scmp.eq.s32.totalorder %s4904_s17, 0  ;;  %p53_p3 = scmp.ne.s32.totalorder %s4888_s13, %s4884_s12 }
   0xa   : > { %s7507_s20 = smov (%p33_p0, %s31_s20), 0  ;;  %p54_p5 = scmp.eq.s32.totalorder %s4508_s18, 0 }
   0xb   : > { %p4976_p4 = por %p48_p2, %p47_p1  ;;  %s35_s23 = ssub.s32 %s4900_s16, %s7507_s20 }
   0xc   : > { %p121_p6 = scmp.eq.s32.totalorder %s4508_s18, 1  ;;  %p38_p7 = scmp.eq.s32.totalorder %s35_s23, 0 }
   0xd   : > { %p4982_p8 = por %p54_p5, %p53_p3  ;;  %p127_p10 = scmp.eq.s32.totalorder %s4509_s19, 1 }
   0xe   : > { %p4986_p9 = por %p121_p6, %p47_p1  ;;  %p4731_p13 = scmp.lt.s32.totalorder %s4904_s17, 2 }
   0xf   : > { %s4991_s26 = scalar_select %p38_p7, %s4892_s14, %s40_s21  }
  0x10   : > { %s7358_s25 = scalar_select %p4986_p9, 1, 0 }
  0x11   : > { %p4993_p11 = por %p127_p10, %p53_p3  ;;  %s153_s28 = sand.u32 1, %s4892_s14  }
  0x12   : > { %s4512_s29 = sshll.u32 %s153_s28, 6  ;;  %s4557_s30 = sshll.u32 %s4900_s16, 10 }
  0x13   : > { %s7359_s27 = scalar_select %p4993_p11, 1, 0 }
  0x14   : > { %s5004_s6 = scalar_lea.hbm %s7306_s0, %s4557_s30  ;;  %s157_s7 = scalar_lea.vmem [#allocation2], %s4512_s29 }
  0x15   : > { %s166_s8 = sshll.u32 %s157_s7, 4  ;;  %p5010_p0 = pnand %p4731_p13, %p4976_p4  ;;  %s5006_s8 = int_to_ptr.vmem [resolvable:$true] %s166_s8 }
  0x16   : > { %s5015_s10 = scalar_lea.sflag [#allocation3], %s153_s28  ;;  %s4792_s11 = scalar_lea.hbm %s5004_s6, 1024 }
  0x17   : > { %p4793_p2 = scmp.ne.s32.totalorder %s5004_s6, %s4792_s11  ;;  %p4794_p3 = pneg %p5010_p0 }
  0x18   : > { %s4797_s21 = scalar_lea.hbm %s7306_s0, 2048  ;;  %p4798_p4 = scmp.lt.u32.totalorder %s5004_s6, %s7306_s0 }
  0x19   : > { %p4795_p5 = pnand %p4794_p3, %p4793_p2  ;;  %p4799_p7 = scmp.lt.u32.totalorder %s4797_s21, %s4792_s11 }
  0x1a   : > { %p4801_p13 = scmp.lt.u32.totalorder %s4792_s11, %s5004_s6 }
  0x1b   : > { %p4796_p6 = pneg %p4795_p5  ;;  %p4800_p10 = por %p4799_p7, %p4798_p4 }
  0x1d   : > { %p4802_p12 = por %p4801_p13, %p4800_p10 }
  0x1f   : > { %p4803_p1 = pnand %p4802_p12, %p4796_p6 }
  0x21   : > { %4806 = shalt.err (!%p4803_p1)
}
  0x22   : > { %s4807_s28 = scalar_lea.vmem %s5006_s8, 1024  ;;  %s4906_s29 = smov [#allocation2]  }
  0x23   : > { %p4808_p2 = scmp.ne.s32.totalorder %s5006_s8, %s4807_s28  ;;  %s4812_s30 = sshll.u32 %s4906_s29, 4  ;;  %s4813_s30 = int_to_ptr.vmem [resolvable:$false] %s4812_s30 }
  0x24   : > { %s4814_s4 = scalar_lea.vmem %s4813_s30, 2048  ;;  %p4815_p9 = scmp.lt.s32.totalorder %s5006_s8, %s4813_s30 }
  0x25   : > { %p4810_p5 = pnand %p4808_p2, %p4794_p3  ;;  %p4816_p4 = scmp.lt.s32.totalorder %s4814_s4, %s4807_s28 }
  0x27   : > { %p4811_p11 = pneg %p4810_p5  ;;  %p4817_p7 = por %p4816_p4, %p4815_p9 }
  0x29   : > { %p4818_p10 = pnand %p4817_p7, %p4811_p11 }
  0x2b   : > { %4821 = shalt.err (!%p4818_p10)
}
  0x2c   : > { %s4907_s5 = smov 128   ;;  %s4908_s7 = smov 8  }
  0x2d   : > { %4726 = dma.hbm_to_vmem [thread:$0]  (!%p5010_p0), %s5004_s6, 1024, %s5006_s8, %s5015_s10, %s4907_s5, %s4907_s5, %s4908_s7  }
  0x2e   : > { %p174_p12 = scmp.lt.s32.totalorder %s4904_s17, 3  ;;  %p7361_p1 = scmp.ge.s32.totalorder %s4904_s17, 1 }
  0x30   : > { %p175_p3 = pnand %p7361_p1, %p174_p12 }
  0x32   : > { %178 = sbr.rel (%p175_p3) target bundleno = 795 (0x31b), region = 32 }
  0x39   : > { %s5047_s11 = sand.u32 1, %s4888_s13  }
  0x3a   : > { %s4516_s18 = sshll.u32 %s5047_s11, 6  ;;  %s181_s19 = scalar_lea.sflag [#allocation3], %s5047_s11 }
  0x3b   : > { %s5051_s21 = scalar_lea.vmem [#allocation2], %s4516_s18 }
  0x3c   : > { %4875 = dma.done.wait (%p4982_p8), %s181_s19, 1024  }
  0x3d   : > { %4877 = vsyncadd (%p4982_p8), %s181_s19, 4294966272  ;;  %v4909_v0 = vmov 0   ;;  %vm265_vm0 = vcmask 1041409   ;;  %vm268_vm1 = vcmask 1042434   ;;  %vm271_vm2 = vcmask 1043459   ;;  %v5068_v19 = vld [vmem:[%s7307_s1] sm:$0xff]  }
  0x3e   : > { %4789 = vset.pattern.permute.xlu1 %v4909_v0  ;;  %4788 = vset.pattern.permute.xlu0 %v4909_v0  ;;  %vm274_vm3 = vcmask 31744   ;;  %v218_v1 = vld [vmem:[%s5051_s21] sm:$0x1]  ;;  %v219_v2 = vld [vmem:[%s5051_s21 + $0x10] sm:$0x1]  ;;  %vm281_vm4 = vcmask 1041408  }
  0x3f   : > { %v220_v3 = vld [vmem:[%s5051_s21 + $0x20] sm:$0x1]  ;;  %v221_v4 = vld [vmem:[%s5051_s21 + $0x30] sm:$0x1]  ;;  %v222_v5 = vpack.c.bf16 %v218_v1, %v218_v1  ;;  %v223_v6 = vpack.c.bf16 %v219_v2, %v219_v2  ;;  %v520_v8 = vld [vmem:[%s5051_s21 + $0x1] sm:$0x1]  ;;  %4609 = vmatprep.mubr.msk.bf16.mxu0 %vm274_vm3, %v5068_v19  ;;  %4615 = vmatprep.mubr.msk.bf16.mxu1 %vm274_vm3, %v5068_v19 }
  0x40   : > { %v224_v7 = vpack.c.bf16 %v220_v3, %v220_v3  ;;  %v521_v9 = vld [vmem:[%s5051_s21 + $0x11] sm:$0x1]  ;;  %v225_v10 = vpack.c.bf16 %v221_v4, %v221_v4  ;;  %v522_v11 = vld [vmem:[%s5051_s21 + $0x21] sm:$0x1]  ;;  %v524_v13 = vpack.c.bf16 %v520_v8, %v520_v8  ;;  %v779_v24 = vld [vmem:[%s5051_s21 + $0x2] sm:$0x1] }
  0x41   : > { %v523_v12 = vld [vmem:[%s5051_s21 + $0x31] sm:$0x1]  ;;  %v525_v14 = vpack.c.bf16 %v521_v9, %v521_v9  ;;  %v260_v15 = vunpack.c.l.b16 %v222_v5  ;;  %v261_v16 = vunpack.c.l.b16 %v223_v6  ;;  %v526_v18 = vpack.c.bf16 %v522_v11, %v522_v11  ;;  %v780_v28 = vld [vmem:[%s5051_s21 + $0x12] sm:$0x1]  ;;  %v781_v29 = vld [vmem:[%s5051_s21 + $0x22] sm:$0x1] }
  0x42   : > { %v262_v17 = vunpack.c.l.b16 %v224_v7  ;;  %v263_v20 = vunpack.c.l.b16 %v225_v10  ;;  %v527_v21 = vpack.c.bf16 %v523_v12, %v523_v12  ;;  %v532_v22 = vunpack.c.l.b16 %v524_v13  ;;  %v782_v34 = vld [vmem:[%s5051_s21 + $0x32] sm:$0x1]  ;;  %v1038_v40 = vld [vmem:[%s5051_s21 + $0x3] sm:$0x1]  ;;  %v1039_v46 = vld [vmem:[%s5051_s21 + $0x13] sm:$0x1] }
  0x43   : > { %v533_v23 = vunpack.c.l.b16 %v525_v14  ;;  %v264_v25 = vrot.slane %v261_v16, 7  ;;  %v534_v27 = vunpack.c.l.b16 %v526_v18  ;;  %v783_v30 = vpack.c.bf16 %v779_v24, %v779_v24  ;;  %v216_v41 = vld [vmem:[%s7308_s2 + $0x10] sm:$0xff]  ;;  %v1040_v51 = vld [vmem:[%s5051_s21 + $0x23] sm:$0x1]  ;;  %v217_v53 = vld [vmem:[%s7308_s2 + $0x18] sm:$0xff]  ;;  %s4911_s7 = smov 16  }
  0x44   : > { %v267_v26 = vrot.slane %v262_v17, 6  ;;  %v270_v31 = vrot.slane %v263_v20, 5  ;;  %v535_v32 = vunpack.c.l.b16 %v527_v21  ;;  %v784_v35 = vpack.c.bf16 %v780_v28, %v780_v28  ;;  %238 = vperm.xlu1 %4789, %v216_v41   ;;  %v1041_v52 = vld [vmem:[%s5051_s21 + $0x33] sm:$0x1]  ;;  %v5097_v59 = vld [vmem:[%s7307_s1 + $0x8] sm:$0xff]   ;;  %v214_v11 = vld [vmem:[%s7308_s2] sm:$0xff] }
  0x45   : > { %v536_v33 = vrot.slane %v533_v23, 7  ;;  %v266_v36 = vsel %vm265_vm0, %v264_v25, %v260_v15  ;;  %v538_v37 = vrot.slane %v534_v27, 6  ;;  %v785_v38 = vpack.c.bf16 %v781_v29, %v781_v29  ;;  %v1297_v63 = vld [vmem:[%s5051_s21 + $0x4] sm:$0x1]  ;;  %v1298_v4 = vld [vmem:[%s5051_s21 + $0x14] sm:$0x1]  ;;  %228 = vperm.xlu0 %4788, %v214_v11  }
  0x46   : > { %v786_v39 = vpack.c.bf16 %v782_v34, %v782_v34  ;;  %v269_v42 = vsel %vm268_vm1, %v267_v26, %v266_v36  ;;  %v540_v44 = vrot.slane %v535_v32, 5  ;;  %v791_v45 = vunpack.c.l.b16 %v783_v30  ;;  %v1299_v5 = vld [vmem:[%s5051_s21 + $0x24] sm:$0x1]  ;;  %v1300_v10 = vld [vmem:[%s5051_s21 + $0x34] sm:$0x1]  ;;  %v215_v27 = vld [vmem:[%s7308_s2 + $0x8] sm:$0xff] }
  0x47   : > { %v537_v43 = vsel %vm265_vm0, %v536_v33, %v532_v22  ;;  %v272_v47 = vsel %vm271_vm2, %v270_v31, %v269_v42  ;;  %v792_v49 = vunpack.c.l.b16 %v784_v35  ;;  %v793_v50 = vunpack.c.l.b16 %v785_v38  ;;  %v1556_v21 = vld [vmem:[%s5051_s21 + $0x5] sm:$0x1]  ;;  %v1557_v26 = vld [vmem:[%s5051_s21 + $0x15] sm:$0x1]  ;;  %v1815_v38 = vld [vmem:[%s5051_s21 + $0x6] sm:$0x1] }
  0x48   : > { %v539_v48 = vsel %vm268_vm1, %v538_v37, %v537_v43  ;;  %v273_v54 = vpack.c.b16 %v272_v47, %v272_v47  ;;  %v794_v56 = vunpack.c.l.b16 %v786_v39  ;;  %v1042_v57 = vpack.c.bf16 %v1038_v40, %v1038_v40  ;;  %243 = vperm.xlu1 %4789, %v217_v53   ;;  %v1558_v32 = vld [vmem:[%s5051_s21 + $0x25] sm:$0x1]  ;;  %v1559_v33 = vld [vmem:[%s5051_s21 + $0x35] sm:$0x1]  ;;  %v1816_v47 = vld [vmem:[%s5051_s21 + $0x16] sm:$0x1] }
  0x49   : > { %v541_v55 = vsel %vm271_vm2, %v540_v44, %v539_v48  ;;  %v795_v60 = vrot.slane %v792_v49, 7  ;;  %v797_v61 = vrot.slane %v793_v50, 6  ;;  %v1043_v62 = vpack.c.bf16 %v1039_v46, %v1039_v46  ;;  %233 = vperm.xlu0 %4788, %v215_v27   ;;  %v1817_v48 = vld [vmem:[%s5051_s21 + $0x26] sm:$0x1]  ;;  %s4517_s18 = sshll.u32 %s5047_s11, 7  ;;  %p7498_p9 = scmp.ne.s32.totalorder %s7358_s25, 0 }
  0x4a   : > { %v542_v58 = vpack.c.b16 %v541_v55, %v541_v55  ;;  %4703 = vmatprep.subr.msk.bf16.mxu0 %vm281_vm4, %v273_v54  ;;  %v283_v0 = vsel %vm281_vm4, %v273_v54, 0  ;;  %v799_v1 = vrot.slane %v794_v56, 5  ;;  %v1044_v2 = vpack.c.bf16 %v1040_v51, %v1040_v51  ;;  %s6169_s19 = scalar_lea.vmem [#allocation5], %s4517_s18  ;;  %s4912_s22 = smov [#allocation5]  }
  0x4b   : > { %v1045_v3 = vpack.c.bf16 %v1041_v52, %v1041_v52  ;;  %4608 = vmatpush3.bf16.msra.mxu0 %v283_v0  ;;  %v796_v7 = vsel %vm265_vm0, %v795_v60, %v791_v45  ;;  %v1050_v8 = vunpack.c.l.b16 %v1042_v57  ;;  %v1051_v9 = vunpack.c.l.b16 %v1043_v62  ;;  %v1818_v52 = vld [vmem:[%s5051_s21 + $0x36] sm:$0x1]  ;;  %s4421_s24 = sshll.u32 %s6169_s19, 4  ;;  %s4826_s23 = sshll.u32 %s4912_s22, 4  ;;  %s7253_s24 = int_to_ptr.vmem [resolvable:$true] %s4421_s24  ;;  %s4827_s23 = int_to_ptr.vmem [resolvable:$false] %s4826_s23 }
  0x4c   : > { %4704 = vmatprep.subr.msk.bf16.mxu1 %vm281_vm4, %v542_v58  ;;  %v544_v6 = vsel %vm281_vm4, %v542_v58, 0  ;;  %v798_v12 = vsel %vm268_vm1, %v797_v61, %v796_v7  ;;  %v1052_v13 = vunpack.c.l.b16 %v1044_v2  ;;  %v1301_v15 = vpack.c.bf16 %v1297_v63, %v1297_v63  ;;  %v2074_v63 = vld [vmem:[%s5051_s21 + $0x7] sm:$0x1]  ;;  %s4822_s10 = scalar_lea.vmem %s7253_s24, 2048  ;;  %s4828_s28 = scalar_lea.vmem %s4827_s23, 4096 }
  0x4d   : > { %4614 = vmatpush3.bf16.msra.mxu1 %v544_v6  ;;  %v1053_v14 = vunpack.c.l.b16 %v1045_v3  ;;  %v800_v16 = vsel %vm271_vm2, %v799_v1, %v798_v12  ;;  %v1054_v17 = vrot.slane %v1051_v9, 7  ;;  %v1302_v18 = vpack.c.bf16 %v1298_v4, %v1298_v4  ;;  %v2075_v4 = vld [vmem:[%s5051_s21 + $0x17] sm:$0x1]  ;;  %v2076_v9 = vld [vmem:[%s5051_s21 + $0x27] sm:$0x1]  ;;  %p4823_p8 = scmp.ne.s32.totalorder %s7253_s24, %s4822_s10  ;;  %p4829_p6 = scmp.lt.s32.totalorder %s7253_s24, %s4827_s23 }
  0x4e   : > { %v1303_v20 = vpack.c.bf16 %v1299_v5, %v1299_v5  ;;  %4610 = vmatmul.mubr.msk.bf16.vlgmr.msra.gmra.mrb[0].mxu0 %vm274_vm3, %v5097_v59  ;;  %v801_v22 = vpack.c.b16 %v800_v16, %v800_v16  ;;  %v1056_v23 = vrot.slane %v1052_v13, 6  ;;  %v1304_v25 = vpack.c.bf16 %v1300_v10, %v1300_v10  ;;  %v2077_v10 = vld [vmem:[%s5051_s21 + $0x37] sm:$0x1]  ;;  %p4830_p13 = scmp.lt.s32.totalorder %s4828_s28, %s4822_s10 }
  0x4f   : > { %v1058_v24 = vrot.slane %v1053_v14, 5  ;;  %v1055_v28 = vsel %vm265_vm0, %v1054_v17, %v1050_v8  ;;  %4621 = vmatprep.mubr.msk.bf16.mxu0 %vm274_vm3, %v5068_v19  ;;  %v1309_v29 = vunpack.c.l.b16 %v1301_v15  ;;  %v1310_v30 = vunpack.c.l.b16 %v1302_v18  ;;  %v2333_v15 = vld [vmem:[%s5051_s21 + $0x8] sm:$0x1]  ;;  %p4824_p11 = pnand %p4823_p8, %p7498_p9 }
  0x50   : > { %4616 = vmatmul.mubr.msk.bf16.vlgmr.msra.gmra.mrb[0].mxu1 %vm274_vm3, %v5097_v59  ;;  %v1311_v31 = vunpack.c.l.b16 %v1303_v20  ;;  %4705 = vmatprep.subr.msk.bf16.mxu0 %vm281_vm4, %v801_v22  ;;  %v1057_v34 = vsel %vm268_vm1, %v1056_v23, %v1055_v28  ;;  %v803_v35 = vsel %vm281_vm4, %v801_v22, 0  ;;  %v1312_v36 = vunpack.c.l.b16 %v1304_v25  ;;  %v2334_v25 = vld [vmem:[%s5051_s21 + $0x18] sm:$0x1]  ;;  %p4831_p2 = por %p4830_p13, %p4829_p6 }
  0x51   : > { %4627 = vmatprep.mubr.msk.bf16.mxu1 %vm274_vm3, %v5068_v19  ;;  %v1560_v37 = vpack.c.bf16 %v1556_v21, %v1556_v21  ;;  %v1059_v39 = vsel %vm271_vm2, %v1058_v24, %v1057_v34  ;;  %4620 = vmatpush3.bf16.msra.mxu0 %v803_v35  ;;  %v1313_v40 = vrot.slane %v1310_v30, 7  ;;  %v1561_v42 = vpack.c.bf16 %v1557_v26, %v1557_v26  ;;  %v2335_v26 = vld [vmem:[%s5051_s21 + $0x28] sm:$0x1]  ;;  %v2336_v30 = vld [vmem:[%s5051_s21 + $0x38] sm:$0x1]  ;;  %p4825_p0 = pneg %p4824_p11 }
  0x52   : > { %v1315_v41 = vrot.slane %v1311_v31, 6  ;;  %v1060_v43 = vpack.c.b16 %v1059_v39, %v1059_v39  ;;  %v1317_v44 = vrot.slane %v1312_v36, 5  ;;  %v1562_v45 = vpack.c.bf16 %v1558_v32, %v1558_v32 }
  0x53   : > { %v1563_v46 = vpack.c.bf16 %v1559_v33, %v1559_v33  ;;  %v1314_v49 = vsel %vm265_vm0, %v1313_v40, %v1309_v29  ;;  %v1568_v50 = vunpack.c.l.b16 %v1560_v37  ;;  %v1569_v51 = vunpack.c.l.b16 %v1561_v42  ;;  %v2592_v40 = vld [vmem:[%s5051_s21 + $0x9] sm:$0x1]  ;;  %p4832_p5 = pnand %p4831_p2, %p4825_p0 }
  0x54   : > { %v1819_v53 = vpack.c.bf16 %v1815_v38, %v1815_v38  ;;  %4706 = vmatprep.subr.msk.bf16.mxu1 %vm281_vm4, %v1060_v43  ;;  %v1062_v54 = vsel %vm281_vm4, %v1060_v43, 0  ;;  %v1316_v55 = vsel %vm268_vm1, %v1315_v41, %v1314_v49  ;;  %v1570_v56 = vunpack.c.l.b16 %v1562_v45  ;;  %v2593_v45 = vld [vmem:[%s5051_s21 + $0x19] sm:$0x1] }
  0x55   : > { %v1571_v57 = vunpack.c.l.b16 %v1563_v46  ;;  %4626 = vmatpush3.bf16.msra.mxu1 %v1062_v54  ;;  %v1318_v58 = vsel %vm271_vm2, %v1317_v44, %v1316_v55  ;;  %v1572_v60 = vrot.slane %v1569_v51, 7  ;;  %v1820_v61 = vpack.c.bf16 %v1816_v47, %v1816_v47  ;;  %v2595_v51 = vld [vmem:[%s5051_s21 + $0x39] sm:$0x1] }
  0x56   : > { %v1821_v62 = vpack.c.bf16 %v1817_v48, %v1817_v48  ;;  %4622 = vmatmul.mubr.msk.bf16.vlgmr.msra.gmra.mrb[4].mxu0 %vm274_vm3, %v5097_v59  ;;  %v1319_v0 = vpack.c.b16 %v1318_v58, %v1318_v58  ;;  %v1574_v1 = vrot.slane %v1570_v56, 6  ;;  %v1822_v3 = vpack.c.bf16 %v1818_v52, %v1818_v52  ;;  %v2851_v56 = vld [vmem:[%s5051_s21 + $0xa] sm:$0x1] }
  0x57   : > { %v1576_v2 = vrot.slane %v1571_v57, 5  ;;  %v1573_v5 = vsel %vm265_vm0, %v1572_v60, %v1568_v50  ;;  %4633 = vmatprep.mubr.msk.bf16.mxu0 %vm274_vm3, %v5068_v19  ;;  %v1827_v6 = vunpack.c.l.b16 %v1819_v53  ;;  %v1828_v7 = vunpack.c.l.b16 %v1820_v61  ;;  %v2594_v50 = vld [vmem:[%s5051_s21 + $0x29] sm:$0x1] }
  0x58   : > { %v1829_v8 = vunpack.c.l.b16 %v1821_v62  ;;  %4628 = vmatmul.mubr.msk.bf16.vlgmr.msra.gmra.mrb[4].mxu1 %vm274_vm3, %v5097_v59  ;;  %4707 = vmatprep.subr.msk.bf16.mxu0 %vm281_vm4, %v1319_v0  ;;  %v1575_v11 = vsel %vm268_vm1, %v1574_v1, %v1573_v5  ;;  %v1321_v12 = vsel %vm281_vm4, %v1319_v0, 0  ;;  %v1830_v13 = vunpack.c.l.b16 %v1822_v3  ;;  %v2853_v3 = vld [vmem:[%s5051_s21 + $0x2a] sm:$0x1] }
  0x59   : > { %v2078_v14 = vpack.c.bf16 %v2074_v63, %v2074_v63  ;;  %v1577_v16 = vsel %vm271_vm2, %v1576_v2, %v1575_v11  ;;  %4632 = vmatpush3.bf16.msra.mxu0 %v1321_v12  ;;  %4639 = vmatprep.mubr.msk.bf16.mxu1 %vm274_vm3, %v5068_v19  ;;  %v1831_v17 = vrot.slane %v1828_v7, 7  ;;  %v2079_v20 = vpack.c.bf16 %v2075_v4, %v2075_v4  ;;  %v2852_v2 = vld [vmem:[%s5051_s21 + $0x1a] sm:$0x1] }
  0x5a   : > { %v1833_v18 = vrot.slane %v1829_v8, 6  ;;  %v1578_v21 = vpack.c.b16 %v1577_v16, %v1577_v16  ;;  %v1835_v22 = vrot.slane %v1830_v13, 5  ;;  %v2080_v23 = vpack.c.bf16 %v2076_v9, %v2076_v9  ;;  %v2854_v7 = vld [vmem:[%s5051_s21 + $0x3a] sm:$0x1] }
  0x5b   : > { %v2081_v24 = vpack.c.bf16 %v2077_v10, %v2077_v10  ;;  %v1832_v27 = vsel %vm265_vm0, %v1831_v17, %v1827_v6  ;;  %v2086_v28 = vunpack.c.l.b16 %v2078_v14  ;;  %v2087_v29 = vunpack.c.l.b16 %v2079_v20  ;;  %v3110_v17 = vld [vmem:[%s5051_s21 + $0xb] sm:$0x1] }
  0x5c   : > { %v2337_v31 = vpack.c.bf16 %v2333_v15, %v2333_v15  ;;  %4708 = vmatprep.subr.msk.bf16.mxu1 %vm281_vm4, %v1578_v21  ;;  %v1580_v32 = vsel %vm281_vm4, %v1578_v21, 0  ;;  %v1834_v33 = vsel %vm268_vm1, %v1833_v18, %v1832_v27  ;;  %v2088_v34 = vunpack.c.l.b16 %v2080_v23  ;;  %v3111_v23 = vld [vmem:[%s5051_s21 + $0x1b] sm:$0x1] }
  0x5d   : > { %v2089_v35 = vunpack.c.l.b16 %v2081_v24  ;;  %4638 = vmatpush3.bf16.msra.mxu1 %v1580_v32  ;;  %v1836_v36 = vsel %vm271_vm2, %v1835_v22, %v1834_v33  ;;  %v2090_v37 = vrot.slane %v2087_v29, 7  ;;  %v2338_v38 = vpack.c.bf16 %v2334_v25, %v2334_v25  ;;  %v3113_v29 = vld [vmem:[%s5051_s21 + $0x3b] sm:$0x1] }
  0x5e   : > { %v2339_v39 = vpack.c.bf16 %v2335_v26, %v2335_v26  ;;  %4634 = vmatmul.mubr.msk.bf16.vlgmr.msra.gmra.mrb[8].mxu0 %vm274_vm3, %v5097_v59  ;;  %v1837_v41 = vpack.c.b16 %v1836_v36, %v1836_v36  ;;  %v2092_v42 = vrot.slane %v2088_v34, 6  ;;  %v2340_v44 = vpack.c.bf16 %v2336_v30, %v2336_v30  ;;  %v3369_v34 = vld [vmem:[%s5051_s21 + $0xc] sm:$0x1] }
  0x5f   : > { %v2094_v43 = vrot.slane %v2089_v35, 5  ;;  %v2091_v46 = vsel %vm265_vm0, %v2090_v37, %v2086_v28  ;;  %4645 = vmatprep.mubr.msk.bf16.mxu0 %vm274_vm3, %v5068_v19  ;;  %v2345_v47 = vunpack.c.l.b16 %v2337_v31  ;;  %v2346_v48 = vunpack.c.l.b16 %v2338_v38  ;;  %v3112_v28 = vld [vmem:[%s5051_s21 + $0x2b] sm:$0x1] }
  0x60   : > { %v2347_v49 = vunpack.c.l.b16 %v2339_v39  ;;  %4640 = vmatmul.mubr.msk.bf16.vlgmr.msra.gmra.mrb[8].mxu1 %vm274_vm3, %v5097_v59  ;;  %4709 = vmatprep.subr.msk.bf16.mxu0 %vm281_vm4, %v1837_v41  ;;  %v2093_v52 = vsel %vm268_vm1, %v2092_v42, %v2091_v46  ;;  %v1839_v53 = vsel %vm281_vm4, %v1837_v41, 0  ;;  %v2348_v54 = vunpack.c.l.b16 %v2340_v44  ;;  %v3371_v44 = vld [vmem:[%s5051_s21 + $0x2c] sm:$0x1] }
  0x61   : > { %v2596_v55 = vpack.c.bf16 %v2592_v40, %v2592_v40  ;;  %v2095_v57 = vsel %vm271_vm2, %v2094_v43, %v2093_v52  ;;  %4644 = vmatpush3.bf16.msra.mxu0 %v1839_v53  ;;  %4651 = vmatprep.mubr.msk.bf16.mxu1 %vm274_vm3, %v5068_v19  ;;  %v2349_v58 = vrot.slane %v2346_v48, 7  ;;  %v2597_v61 = vpack.c.bf16 %v2593_v45, %v2593_v45  ;;  %v3370_v43 = vld [vmem:[%s5051_s21 + $0x1c] sm:$0x1] }
  0x62   : > { %v2351_v60 = vrot.slane %v2347_v49, 6  ;;  %v2096_v62 = vpack.c.b16 %v2095_v57, %v2095_v57  ;;  %v2353_v63 = vrot.slane %v2348_v54, 5  ;;  %v2598_v0 = vpack.c.bf16 %v2594_v50, %v2594_v50  ;;  %v3372_v48 = vld [vmem:[%s5051_s21 + $0x3c] sm:$0x1] }
  0x63   : > { %v2599_v1 = vpack.c.bf16 %v2595_v51, %v2595_v51  ;;  %v2350_v4 = vsel %vm265_vm0, %v2349_v58, %v2345_v47  ;;  %v2604_v5 = vunpack.c.l.b16 %v2596_v55  ;;  %v2605_v6 = vunpack.c.l.b16 %v2597_v61  ;;  %v3628_v58 = vld [vmem:[%s5051_s21 + $0xd] sm:$0x1] }
  0x64   : > { %v2855_v8 = vpack.c.bf16 %v2851_v56, %v2851_v56  ;;  %4710 = vmatprep.subr.msk.bf16.mxu1 %vm281_vm4, %v2096_v62  ;;  %v2098_v9 = vsel %vm281_vm4, %v2096_v62, 0  ;;  %v2352_v10 = vsel %vm268_vm1, %v2351_v60, %v2350_v4  ;;  %v2606_v11 = vunpack.c.l.b16 %v2598_v0  ;;  %v3629_v0 = vld [vmem:[%s5051_s21 + $0x1d] sm:$0x1] }
  0x65   : > { %v2607_v12 = vunpack.c.l.b16 %v2599_v1  ;;  %4650 = vmatpush3.bf16.msra.mxu1 %v2098_v9  ;;  %v2354_v13 = vsel %vm271_vm2, %v2353_v63, %v2352_v10  ;;  %v2608_v14 = vrot.slane %v2605_v6, 7  ;;  %v2856_v15 = vpack.c.bf16 %v2852_v2, %v2852_v2  ;;  %v3631_v6 = vld [vmem:[%s5051_s21 + $0x3d] sm:$0x1] }
  0x66   : > { %v2857_v16 = vpack.c.bf16 %v2853_v3, %v2853_v3  ;;  %4646 = vmatmul.mubr.msk.bf16.vlgmr.msra.gmra.mrb[12].mxu0 %vm274_vm3, %v5097_v59  ;;  %v2355_v18 = vpack.c.b16 %v2354_v13, %v2354_v13  ;;  %v2610_v20 = vrot.slane %v2606_v11, 6  ;;  %v2858_v22 = vpack.c.bf16 %v2854_v7, %v2854_v7  ;;  %v3887_v11 = vld [vmem:[%s5051_s21 + $0xe] sm:$0x1] }
  0x67   : > { %v2612_v21 = vrot.slane %v2607_v12, 5  ;;  %v2609_v24 = vsel %vm265_vm0, %v2608_v14, %v2604_v5  ;;  %4657 = vmatprep.mubr.msk.bf16.mxu0 %vm274_vm3, %v5068_v19  ;;  %v2863_v25 = vunpack.c.l.b16 %v2855_v8  ;;  %v2864_v26 = vunpack.c.l.b16 %v2856_v15  ;;  %v3630_v5 = vld [vmem:[%s5051_s21 + $0x2d] sm:$0x1] }
  0x68   : > { %v2865_v27 = vunpack.c.l.b16 %v2857_v16  ;;  %4652 = vmatmul.mubr.msk.bf16.vlgmr.msra.gmra.mrb[12].mxu1 %vm274_vm3, %v5097_v59  ;;  %4711 = vmatprep.subr.msk.bf16.mxu0 %vm281_vm4, %v2355_v18  ;;  %v2611_v30 = vsel %vm268_vm1, %v2610_v20, %v2609_v24  ;;  %v2357_v31 = vsel %vm281_vm4, %v2355_v18, 0  ;;  %v2866_v32 = vunpack.c.l.b16 %v2858_v22  ;;  %v3889_v22 = vld [vmem:[%s5051_s21 + $0x2e] sm:$0x1] }
  0x69   : > { %v3114_v33 = vpack.c.bf16 %v3110_v17, %v3110_v17  ;;  %v2613_v35 = vsel %vm271_vm2, %v2612_v21, %v2611_v30  ;;  %4656 = vmatpush3.bf16.msra.mxu0 %v2357_v31  ;;  %4663 = vmatprep.mubr.msk.bf16.mxu1 %vm274_vm3, %v5068_v19  ;;  %v2867_v36 = vrot.slane %v2864_v26, 7  ;;  %v3115_v38 = vpack.c.bf16 %v3111_v23, %v3111_v23  ;;  %v3888_v21 = vld [vmem:[%s5051_s21 + $0x1e] sm:$0x1] }
  0x6a   : > { %v2869_v37 = vrot.slane %v2865_v27, 6  ;;  %v2614_v39 = vpack.c.b16 %v2613_v35, %v2613_v35  ;;  %v2871_v40 = vrot.slane %v2866_v32, 5  ;;  %v3116_v41 = vpack.c.bf16 %v3112_v28, %v3112_v28  ;;  %v3890_v26 = vld [vmem:[%s5051_s21 + $0x3e] sm:$0x1] }
  0x6b   : > { %v3117_v42 = vpack.c.bf16 %v3113_v29, %v3113_v29  ;;  %v2868_v45 = vsel %vm265_vm0, %v2867_v36, %v2863_v25  ;;  %v3122_v46 = vunpack.c.l.b16 %v3114_v33  ;;  %v3123_v47 = vunpack.c.l.b16 %v3115_v38  ;;  %v4146_v36 = vld [vmem:[%s5051_s21 + $0xf] sm:$0x1] }
  0x6c   : > { %v3373_v49 = vpack.c.bf16 %v3369_v34, %v3369_v34  ;;  %4712 = vmatprep.subr.msk.bf16.mxu1 %vm281_vm4, %v2614_v39  ;;  %v2616_v50 = vsel %vm281_vm4, %v2614_v39, 0  ;;  %v2870_v51 = vsel %vm268_vm1, %v2869_v37, %v2868_v45  ;;  %v3124_v52 = vunpack.c.l.b16 %v3116_v41  ;;  %v4147_v41 = vld [vmem:[%s5051_s21 + $0x1f] sm:$0x1] }
  0x6d   : > { %v3125_v53 = vunpack.c.l.b16 %v3117_v42  ;;  %4662 = vmatpush3.bf16.msra.mxu1 %v2616_v50  ;;  %v2872_v54 = vsel %vm271_vm2, %v2871_v40, %v2870_v51  ;;  %v3126_v55 = vrot.slane %v3123_v47, 7  ;;  %v3374_v56 = vpack.c.bf16 %v3370_v43, %v3370_v43  ;;  %v4149_v47 = vld [vmem:[%s5051_s21 + $0x3f] sm:$0x1] }
  0x6e   : > { %v3375_v57 = vpack.c.bf16 %v3371_v44, %v3371_v44  ;;  %4658 = vmatmul.mubr.msk.bf16.vlgmr.msra.gmra.mrb[16].mxu0 %vm274_vm3, %v5097_v59  ;;  %v2873_v60 = vpack.c.b16 %v2872_v54, %v2872_v54  ;;  %v3128_v61 = vrot.slane %v3124_v52, 6  ;;  %v3376_v63 = vpack.c.bf16 %v3372_v48, %v3372_v48 }
  0x6f   : > { %v3130_v62 = vrot.slane %v3125_v53, 5  ;;  %v3127_v1 = vsel %vm265_vm0, %v3126_v55, %v3122_v46  ;;  %4669 = vmatprep.mubr.msk.bf16.mxu0 %vm274_vm3, %v5068_v19  ;;  %v3381_v2 = vunpack.c.l.b16 %v3373_v49  ;;  %v3382_v3 = vunpack.c.l.b16 %v3374_v56  ;;  %v4148_v46 = vld [vmem:[%s5051_s21 + $0x2f] sm:$0x1]  ;;  %s4558_s21 = sshll.u32 %s4896_s15, 11  ;;  %s4406_s15 = scalar_lea.sflag [#allocation4], %s5047_s11 }
  0x70   : > { %v3383_v4 = vunpack.c.l.b16 %v3375_v57  ;;  %4664 = vmatmul.mubr.msk.bf16.vlgmr.msra.gmra.mrb[16].mxu1 %vm274_vm3, %v5097_v59  ;;  %4713 = vmatprep.subr.msk.bf16.mxu0 %vm281_vm4, %v2873_v60  ;;  %v3129_v7 = vsel %vm268_vm1, %v3128_v61, %v3127_v1  ;;  %v2875_v8 = vsel %vm281_vm4, %v2873_v60, 0  ;;  %v3384_v9 = vunpack.c.l.b16 %v3376_v63  ;;  %s7251_s9 = scalar_lea.hbm %s7309_s3, %s4558_s21 }
  0x71   : > { %v3632_v10 = vpack.c.bf16 %v3628_v58, %v3628_v58  ;;  %v3131_v12 = vsel %vm271_vm2, %v3130_v62, %v3129_v7  ;;  %4668 = vmatpush3.bf16.msra.mxu0 %v2875_v8  ;;  %4675 = vmatprep.mubr.msk.bf16.mxu1 %vm274_vm3, %v5068_v19  ;;  %v3385_v13 = vrot.slane %v3382_v3, 7  ;;  %v3633_v15 = vpack.c.bf16 %v3629_v0, %v3629_v0 }
  0x72   : > { %v3387_v14 = vrot.slane %v3383_v4, 6  ;;  %v3132_v16 = vpack.c.b16 %v3131_v12, %v3131_v12  ;;  %v3389_v17 = vrot.slane %v3384_v9, 5  ;;  %v3634_v18 = vpack.c.bf16 %v3630_v5, %v3630_v5 }
  0x73   : > { %v3635_v20 = vpack.c.bf16 %v3631_v6, %v3631_v6  ;;  %v3386_v23 = vsel %vm265_vm0, %v3385_v13, %v3381_v2  ;;  %v3640_v24 = vunpack.c.l.b16 %v3632_v10  ;;  %v3641_v25 = vunpack.c.l.b16 %v3633_v15 }
  0x74   : > { %v3891_v27 = vpack.c.bf16 %v3887_v11, %v3887_v11  ;;  %4714 = vmatprep.subr.msk.bf16.mxu1 %vm281_vm4, %v3132_v16  ;;  %v3134_v28 = vsel %vm281_vm4, %v3132_v16, 0  ;;  %v3388_v29 = vsel %vm268_vm1, %v3387_v14, %v3386_v23  ;;  %v3642_v30 = vunpack.c.l.b16 %v3634_v18 }
  0x75   : > { %v3643_v31 = vunpack.c.l.b16 %v3635_v20  ;;  %4674 = vmatpush3.bf16.msra.mxu1 %v3134_v28  ;;  %v3390_v32 = vsel %vm271_vm2, %v3389_v17, %v3388_v29  ;;  %v3644_v33 = vrot.slane %v3641_v25, 7  ;;  %v3892_v34 = vpack.c.bf16 %v3888_v21, %v3888_v21 }
  0x76   : > { %v3893_v35 = vpack.c.bf16 %v3889_v22, %v3889_v22  ;;  %4670 = vmatmul.mubr.msk.bf16.vlgmr.msra.gmra.mrb[20].mxu0 %vm274_vm3, %v5097_v59  ;;  %v3391_v37 = vpack.c.b16 %v3390_v32, %v3390_v32  ;;  %v3646_v38 = vrot.slane %v3642_v30, 6  ;;  %v3894_v40 = vpack.c.bf16 %v3890_v26, %v3890_v26 }
  0x77   : > { %v3648_v39 = vrot.slane %v3643_v31, 5  ;;  %v3645_v42 = vsel %vm265_vm0, %v3644_v33, %v3640_v24  ;;  %4681 = vmatprep.mubr.msk.bf16.mxu0 %vm274_vm3, %v5068_v19  ;;  %v3899_v43 = vunpack.c.l.b16 %v3891_v27  ;;  %v3900_v44 = vunpack.c.l.b16 %v3892_v34 }
  0x78   : > { %v3901_v45 = vunpack.c.l.b16 %v3893_v35  ;;  %4676 = vmatmul.mubr.msk.bf16.vlgmr.msra.gmra.mrb[20].mxu1 %vm274_vm3, %v5097_v59  ;;  %4715 = vmatprep.subr.msk.bf16.mxu0 %vm281_vm4, %v3391_v37  ;;  %v3647_v48 = vsel %vm268_vm1, %v3646_v38, %v3645_v42  ;;  %v3393_v49 = vsel %vm281_vm4, %v3391_v37, 0  ;;  %v3902_v50 = vunpack.c.l.b16 %v3894_v40 }
  0x79   : > { %v4150_v51 = vpack.c.bf16 %v4146_v36, %v4146_v36  ;;  %v3649_v52 = vsel %vm271_vm2, %v3648_v39, %v3647_v48  ;;  %4680 = vmatpush3.bf16.msra.mxu0 %v3393_v49  ;;  %4687 = vmatprep.mubr.msk.bf16.mxu1 %vm274_vm3, %v5068_v19  ;;  %v3903_v53 = vrot.slane %v3900_v44, 7  ;;  %v4151_v55 = vpack.c.bf16 %v4147_v41, %v4147_v41 }
  0x7a   : > { %v3905_v54 = vrot.slane %v3901_v45, 6  ;;  %v3650_v56 = vpack.c.b16 %v3649_v52, %v3649_v52  ;;  %v3907_v57 = vrot.slane %v3902_v50, 5  ;;  %v4152_v58 = vpack.c.bf16 %v4148_v46, %v4148_v46 }
  0x7b   : > { %v4153_v60 = vpack.c.bf16 %v4149_v47, %v4149_v47  ;;  %v3904_v61 = vsel %vm265_vm0, %v3903_v53, %v3899_v43  ;;  %v4158_v62 = vunpack.c.l.b16 %v4150_v51  ;;  %v4159_v63 = vunpack.c.l.b16 %v4151_v55 }
  0x7c   : > { %4716 = vmatprep.subr.msk.bf16.mxu1 %vm281_vm4, %v3650_v56  ;;  %v3652_v0 = vsel %vm281_vm4, %v3650_v56, 0  ;;  %v3906_v1 = vsel %vm268_vm1, %v3905_v54, %v3904_v61  ;;  %v4160_v2 = vunpack.c.l.b16 %v4152_v58  ;;  %vm396_vm5 = vcmask 122880  }
  0x7d   : > { %v4161_v3 = vunpack.c.l.b16 %v4153_v60  ;;  %4686 = vmatpush3.bf16.msra.mxu1 %v3652_v0  ;;  %v3908_v4 = vsel %vm271_vm2, %v3907_v57, %v3906_v1  ;;  %v4162_v5 = vrot.slane %v4159_v63, 7  ;;  %vm511_vm6 = vcmask 254080  }
  0x7e   : > { %4682 = vmatmul.mubr.msk.bf16.vlgmr.msra.gmra.mrb[24].mxu0 %vm274_vm3, %v5097_v59  ;;  %v3909_v6 = vpack.c.b16 %v3908_v4, %v3908_v4  ;;  %v4164_v7 = vrot.slane %v4160_v2, 6 }
  0x7f   : > { %v4166_v8 = vrot.slane %v4161_v3, 5  ;;  %v4163_v9 = vsel %vm265_vm0, %v4162_v5, %v4158_v62  ;;  %4693 = vmatprep.mubr.msk.bf16.mxu0 %vm274_vm3, %v5068_v19 }
  0x80   : > { %4688 = vmatmul.mubr.msk.bf16.vlgmr.msra.gmra.mrb[24].mxu1 %vm274_vm3, %v5097_v59  ;;  %4717 = vmatprep.subr.msk.bf16.mxu0 %vm281_vm4, %v3909_v6  ;;  %v4165_v10 = vsel %vm268_vm1, %v4164_v7, %v4163_v9  ;;  %v3911_v11 = vsel %vm281_vm4, %v3909_v6, 0 }
  0x81   : > { %v4167_v12 = vsel %vm271_vm2, %v4166_v8, %v4165_v10  ;;  %4692 = vmatpush3.bf16.msra.mxu0 %v3911_v11  ;;  %4699 = vmatprep.mubr.msk.bf16.mxu1 %vm274_vm3, %v5068_v19 }
  0x82   : > { %v4168_v13 = vpack.c.b16 %v4167_v12, %v4167_v12 }
  0x84   : > { %4718 = vmatprep.subr.msk.bf16.mxu1 %vm281_vm4, %v4168_v13  ;;  %v4170_v14 = vsel %vm281_vm4, %v4168_v13, 0 }
  0x85   : > { %4698 = vmatpush3.bf16.msra.mxu1 %v4170_v14 }
  0x86   : > { %4694 = vmatmul.mubr.msk.bf16.vlgmr.msra.gmra.mrb[28].mxu0 %vm274_vm3, %v5097_v59 }
  0x88   : > { %4700 = vmatmul.mubr.msk.bf16.vlgmr.msra.gmra.mrb[28].mxu1 %vm274_vm3, %v5097_v59 }
  0xc3   : > { %v5287_v15 = vpop.permute.xlu1 %238 }
  0xc4   : > { %v5289_v16 = vpop.permute.xlu0 %228 }
  0xc7   : > { %v5291_v17 = vpop.permute.xlu1 %243 }
  0xc8   : > { %v5293_v19 = vpop.permute.xlu0 %233 }
 0x121   : > { %v4611_v18 = vpop.f32.mrb[0].mxu0 }
 0x122   : > { %v328_v20 = vadd.f32 %v4611_v18, %v5287_v15  ;;  %v319_v22 = vpop.f32.mrb[1].mxu0 }
 0x123   : > { %v4617_v21 = vpop.f32.mrb[0].mxu1  ;;  %v320_v24 = vadd.f32 %v319_v22, %v5289_v16  ;;  %v4612_v26 = vpop.f32.mrb[2].mxu0 }
 0x124   : > { %v589_v23 = vadd.f32 %v4617_v21, %v5287_v15  ;;  %v580_v25 = vpop.f32.mrb[1].mxu1  ;;  %v336_v59 = vmax.f32 %v328_v20, 0.0  ;;  %v331_v28 = vadd.f32 %v4612_v26, %v5291_v17  ;;  %v322_v30 = vpop.f32.mrb[3].mxu0 }
 0x125   : > { %v581_v27 = vadd.f32 %v580_v25, %v5289_v16  ;;  %v4618_v29 = vpop.f32.mrb[2].mxu1  ;;  %v334_v32 = vmax.f32 %v320_v24, 0.0  ;;  %v323_v34 = vadd.f32 %v322_v30, %v5293_v19 }
 0x126   : > { %v597_v31 = vmax.f32 %v589_v23, 0.0  ;;  %v592_v33 = vadd.f32 %v4618_v29, %v5291_v17  ;;  %v583_v35 = vpop.f32.mrb[3].mxu1  ;;  %v405_v36 = vpack.c.bf16 %v336_v59, %v336_v59  ;;  %v337_v38 = vmax.f32 %v331_v28, 0.0 }
 0x127   : > { %v595_v37 = vmax.f32 %v581_v27, 0.0  ;;  %v584_v39 = vadd.f32 %v583_v35, %v5293_v19  ;;  %v338_v41 = vpack.c.bf16 %v334_v32, %v334_v32  ;;  %v335_v43 = vmax.f32 %v323_v34, 0.0 }
 0x128   : > { %v665_v40 = vpack.c.bf16 %v597_v31, %v597_v31  ;;  %v598_v42 = vmax.f32 %v592_v33, 0.0  ;;  %v406_v44 = vunpack.c.l.bf16 %v405_v36  ;;  %v408_v46 = vpack.c.bf16 %v337_v38, %v337_v38 }
 0x129   : > { %v599_v45 = vpack.c.bf16 %v595_v37, %v595_v37  ;;  %v596_v47 = vmax.f32 %v584_v39, 0.0  ;;  %v339_v49 = vunpack.c.l.bf16 %v338_v41  ;;  %v341_v51 = vpack.c.bf16 %v335_v43, %v335_v43  ;;  %v4623_v52 = vpop.f32.mrb[4].mxu0 }
 0x12a   : > { %v666_v48 = vunpack.c.l.bf16 %v665_v40  ;;  %v668_v50 = vpack.c.bf16 %v598_v42, %v598_v42  ;;  %v411_v53 = vshrl.u32 %v406_v44, 16  ;;  %v409_v55 = vunpack.c.l.bf16 %v408_v46  ;;  %v839_v57 = vpop.f32.mrb[5].mxu0 }
 0x12b   : > { %v600_v54 = vunpack.c.l.bf16 %v599_v45  ;;  %v602_v56 = vpack.c.bf16 %v596_v47, %v596_v47  ;;  %v344_v60 = vshrl.u32 %v339_v49, 16  ;;  %v342_v62 = vunpack.c.l.bf16 %v341_v51  ;;  %v4629_v63 = vpop.f32.mrb[4].mxu1  ;;  %v4624_v0 = vpop.f32.mrb[6].mxu0 }
 0x12c   : > { %v671_v58 = vshrl.u32 %v666_v48, 16  ;;  %v669_v61 = vunpack.c.l.bf16 %v668_v50  ;;  %v5303_v2 = vor.u32 %v411_v53, %v409_v55  ;;  %v848_v4 = vadd.f32 %v4623_v52, %v5287_v15  ;;  %v1098_v5 = vpop.f32.mrb[5].mxu1  ;;  %v842_v6 = vpop.f32.mrb[7].mxu0 }
 0x12d   : > { %v605_v1 = vshrl.u32 %v600_v54, 16  ;;  %v603_v3 = vunpack.c.l.bf16 %v602_v56  ;;  %v5308_v8 = vor.u32 %v344_v60, %v342_v62  ;;  %v4630_v9 = vpop.f32.mrb[6].mxu1  ;;  %v1107_v11 = vadd.f32 %v4629_v63, %v5287_v15 }
 0x12e   : > { %v5306_v7 = vor.u32 %v671_v58, %v669_v61  ;;  %v1101_v12 = vpop.f32.mrb[7].mxu1  ;;  %v856_v13 = vmax.f32 %v848_v4, 0.0  ;;  %v840_v14 = vadd.f32 %v839_v57, %v5289_v16  ;;  %v4910_v28 = vmov 1966171168  }
 0x12f   : > { %v5310_v10 = vor.u32 %v605_v1, %v603_v3  ;;  %v1115_v20 = vmax.f32 %v1107_v11, 0.0  ;;  %v349_v29 = vunpack.c.l.s4 %v4910_v28  ;;  %v1099_v34 = vadd.f32 %v1098_v5, %v5289_v16 }
 0x130   : > { %v924_v22 = vpack.c.bf16 %v856_v13, %v856_v13  ;;  %v854_v23 = vmax.f32 %v840_v14, 0.0  ;;  %v851_v35 = vadd.f32 %v4624_v0, %v5291_v17  ;;  %v351_v36 = vlaneseq }
 0x131   : > { %v4635_v18 = vpop.f32.mrb[8].mxu0  ;;  %v1183_v30 = vpack.c.bf16 %v1115_v20, %v1115_v20  ;;  %v1110_v38 = vadd.f32 %v4630_v9, %v5291_v17  ;;  %v843_v39 = vadd.f32 %v842_v6, %v5293_v19  ;;  %v1113_v41 = vmax.f32 %v1099_v34, 0.0 }
 0x132   : > { %v1357_v21 = vpop.f32.mrb[9].mxu0  ;;  %v925_v32 = vunpack.c.l.bf16 %v924_v22  ;;  %v858_v33 = vpack.c.bf16 %v854_v23, %v854_v23  ;;  %v857_v42 = vmax.f32 %v851_v35, 0.0  ;;  %v1102_v43 = vadd.f32 %v1101_v12, %v5293_v19 }
 0x133   : > { %v4641_v24 = vpop.f32.mrb[8].mxu1  ;;  %v5314_v25 = vpop.f32.mrb[10].mxu0  ;;  %v1184_v37 = vunpack.c.l.bf16 %v1183_v30  ;;  %v350_v45 = vunpack.c.0.s8 %v349_v29  ;;  %v1116_v46 = vmax.f32 %v1110_v38, 0.0  ;;  %v855_v47 = vmax.f32 %v843_v39, 0.0 }
 0x134   : > { %v5316_v26 = vpop.f32.mrb[9].mxu1  ;;  %v5318_v59 = vpop.f32.mrb[11].mxu0  ;;  %v859_v40 = vunpack.c.l.bf16 %v858_v33  ;;  %v1366_v48 = vadd.f32 %v4635_v18, %v5287_v15  ;;  %v930_v50 = vshrl.u32 %v925_v32, 16  ;;  %v1117_v51 = vpack.c.bf16 %v1113_v41, %v1113_v41 }
 0x135   : > { %v5320_v27 = vpop.f32.mrb[10].mxu1  ;;  %v927_v52 = vpack.c.bf16 %v857_v42, %v857_v42  ;;  %v1114_v53 = vmax.f32 %v1102_v43, 0.0  ;;  %v1189_v56 = vshrl.u32 %v1184_v37, 16  ;;  %v1186_v58 = vpack.c.bf16 %v1116_v46, %v1116_v46 }
 0x136   : > { %v5322_v31 = vpop.f32.mrb[11].mxu1  ;;  %v864_v57 = vshrl.u32 %v859_v40, 16  ;;  %v861_v60 = vpack.c.bf16 %v855_v47, %v855_v47  ;;  %v1118_v63 = vunpack.c.l.bf16 %v1117_v51  ;;  %v1374_v3 = vmax.f32 %v1366_v48, 0.0 }
 0x137   : > { %v928_v0 = vunpack.c.l.bf16 %v927_v52  ;;  %v1120_v1 = vpack.c.bf16 %v1114_v53, %v1114_v53  ;;  %v352_v5 = vshrl.u32 %v351_v36, 7  ;;  %v1187_v6 = vunpack.c.l.bf16 %v1186_v58 }
 0x138   : > { %v862_v9 = vunpack.c.l.bf16 %v861_v60  ;;  %v1625_v11 = vadd.f32 %v4641_v24, %v5287_v15  ;;  %v1123_v13 = vshrl.u32 %v1118_v63, 16  ;;  %v1358_v20 = vadd.f32 %v1357_v21, %v5289_v16 }
 0x139   : > { %v5329_v44 = vpop.f32.mrb[12].mxu0  ;;  %v5347_v14 = vor.u32 %v930_v50, %v928_v0  ;;  %v1121_v18 = vunpack.c.l.bf16 %v1120_v1  ;;  %v5350_v22 = vor.u32 %v1189_v56, %v1187_v6  ;;  %v1442_v29 = vpack.c.bf16 %v1374_v3, %v1374_v3 }
 0x13a   : > { %v5332_v49 = vpop.f32.mrb[13].mxu0  ;;  %v5352_v23 = vor.u32 %v864_v57, %v862_v9  ;;  %v5358_v32 = vsub.s32 %v350_v45, %v352_v5  ;;  %v1633_v24 = vmax.f32 %v1625_v11, 0.0  ;;  %v1372_v34 = vmax.f32 %v1358_v20, 0.0 }
 0x13b   : > { %v5334_v54 = vpop.f32.mrb[12].mxu1  ;;  %v5336_v55 = vpop.f32.mrb[14].mxu0  ;;  %v5354_v28 = vor.u32 %v1123_v13, %v1121_v18  ;;  %v1443_v38 = vunpack.c.l.bf16 %v1442_v29  ;;  %v5380_v46 = vsub.s32 0, %v352_v5  ;;  %v1617_v48 = vadd.f32 %v5316_v26, %v5289_v16 }
 0x13c   : > { %v5338_v61 = vpop.f32.mrb[13].mxu1  ;;  %v5340_v62 = vpop.f32.mrb[15].mxu0  ;;  %v421_v40 = vrot.slane %v5303_v2, %v5358_v32  ;;  %v1701_v41 = vpack.c.bf16 %v1633_v24, %v1633_v24  ;;  %v1376_v43 = vpack.c.bf16 %v1372_v34, %v1372_v34  ;;  %v5378_v45 = vrot.slane %v5306_v7, %v5358_v32 }
 0x13d   : > { %v5342_v4 = vpop.f32.mrb[14].mxu1  ;;  %v1448_v47 = vshrl.u32 %v1443_v38, 16  ;;  %v1369_v52 = vadd.f32 %v5314_v25, %v5291_v17  ;;  %v1628_v53 = vadd.f32 %v5320_v27, %v5291_v17  ;;  %v1631_v60 = vmax.f32 %v1617_v48, 0.0 }
 0x13e   : > { %v5345_v12 = vpop.f32.mrb[15].mxu1  ;;  %v1702_v51 = vunpack.c.l.bf16 %v1701_v41  ;;  %v5391_v56 = vrot.slane %v421_v40, %v5358_v32  ;;  %v1377_v58 = vunpack.c.l.bf16 %v1376_v43  ;;  %v429_v63 = vcombine.high %v421_v40, %v421_v40 }
 0x13f   : > { %v1620_v26 = vadd.f32 %v5322_v31, %v5293_v19  ;;  %v1375_v3 = vmax.f32 %v1369_v52, 0.0  ;;  %v1634_v25 = vmax.f32 %v1628_v53, 0.0  ;;  %v5405_v5 = vrot.slane %v5378_v45, %v5358_v32 }
 0x140   : > { %v466_v27 = vrot.slane %v5391_v56, %v5380_v46  ;;  %v1635_v11 = vpack.c.bf16 %v1631_v60, %v1631_v60  ;;  %v5412_v31 = vrot.slane %v429_v63, %v5358_v32  ;;  %v1361_v18 = vadd.f32 %v5318_v59, %v5293_v19 }
 0x141   : > { %v5356_v30 = vpop.f32.mrb[16].mxu0  ;;  %v1632_v13 = vmax.f32 %v1620_v26, 0.0  ;;  %v1707_v29 = vshrl.u32 %v1702_v51, 16  ;;  %v1445_v24 = vpack.c.bf16 %v1375_v3, %v1375_v3  ;;  %v1704_v34 = vpack.c.bf16 %v1634_v25, %v1634_v25 }
 0x142   : > { %v5360_v33 = vpop.f32.mrb[17].mxu0  ;;  %495 = vrot.lane.b32.xlu0 %v466_v27, %s4911_s7  ;;  %v1884_v38 = vadd.f32 %v5329_v44, %v5287_v15  ;;  %v1636_v41 = vunpack.c.l.bf16 %v1635_v11  ;;  %v470_v43 = vrot.slane %v5412_v31, %v5380_v46  ;;  %v1373_v52 = vmax.f32 %v1361_v18, 0.0 }
 0x143   : > { %v5362_v35 = vpop.f32.mrb[16].mxu1  ;;  %v5364_v36 = vpop.f32.mrb[18].mxu0  ;;  %v1638_v48 = vpack.c.bf16 %v1632_v13, %v1632_v13  ;;  %v1446_v59 = vunpack.c.l.bf16 %v1445_v24  ;;  %v1705_v53 = vunpack.c.l.bf16 %v1704_v34  ;;  %v726_v51 = vrot.slane %v5405_v5, %v5380_v46 }
 0x144   : > { %v5366_v21 = vpop.f32.mrb[17].mxu1  ;;  %v5368_v37 = vpop.f32.mrb[19].mxu0  ;;  %v2143_v60 = vadd.f32 %v5334_v54, %v5287_v15  ;;  %v1382_v63 = vshrl.u32 %v1377_v58, 16  ;;  %v1641_v26 = vshrl.u32 %v1636_v41, 16  ;;  %497 = vrot.lane.b32.xlu1 %v470_v43, %s4911_s7  ;;  %v1379_v3 = vpack.c.bf16 %v1373_v52, %v1373_v52 }
 0x145   : > { %v5370_v39 = vpop.f32.mrb[18].mxu1  ;;  %v1639_v44 = vunpack.c.l.bf16 %v1638_v48  ;;  %v5432_v27 = vor.u32 %v1448_v47, %v1446_v59  ;;  %v5434_v11 = vor.u32 %v1707_v29, %v1705_v53  ;;  %v1892_v13 = vmax.f32 %v1884_v38, 0.0 }
 0x146   : > { %v5374_v42 = vpop.f32.mrb[19].mxu1  ;;  %755 = vrot.lane.b32.xlu0 %v726_v51, %s4911_s7  ;;  %v2135_v18 = vadd.f32 %v5338_v61, %v5289_v16  ;;  %v1380_v58 = vunpack.c.l.bf16 %v1379_v3  ;;  %v2151_v43 = vmax.f32 %v2143_v60, 0.0  ;;  %v689_v38 = vcombine.high %v5378_v45, %v5378_v45 }
 0x147   : > { %7362 = vst [vmem:[#allocation8_spill] sm:$0xff] %v5434_v11  ;;  %v5441_v54 = vor.u32 %v1641_v26, %v1639_v44  ;;  %v1960_v52 = vpack.c.bf16 %v1892_v13, %v1892_v13  ;;  %v347_v26 = vcombine.high %v5308_v8, %v5308_v8  ;;  %v5470_v45 = vrot.slane %v5308_v8, %v5358_v32 }
 0x148   : > { %v5451_v48 = vor.u32 %v1382_v63, %v1380_v58  ;;  %v2149_v59 = vmax.f32 %v2135_v18, 0.0  ;;  %v2219_v51 = vpack.c.bf16 %v2151_v43, %v2151_v43  ;;  %v5462_v60 = vrot.slane %v689_v38, %v5358_v32 }
 0x149   : > { %v5384_v50 = vpop.f32.mrb[20].mxu0  ;;  %v1876_v63 = vadd.f32 %v5332_v49, %v5289_v16  ;;  %v1961_v3 = vunpack.c.l.bf16 %v1960_v52  ;;  %v414_v38 = vcombine.high %v5303_v2, %v5303_v2  ;;  %v608_v49 = vcombine.high %v5310_v10, %v5310_v10 }
 0x14a   : > { %v5393_v57 = vpop.f32.mrb[21].mxu0  ;;  %v2153_v13 = vpack.c.bf16 %v2149_v59, %v2149_v59  ;;  %v361_v52 = vrot.slane %v347_v26, %v5358_v32  ;;  %v730_v59 = vrot.slane %v5462_v60, %v5380_v46  ;;  %v362_v2 = vcombine.high %v5470_v45, %v5470_v45 }
 0x14b   : > { %v5397_v0 = vpop.f32.mrb[20].mxu1  ;;  %v5399_v1 = vpop.f32.mrb[22].mxu0  ;;  %v2138_v11 = vadd.f32 %v5345_v12, %v5293_v19  ;;  %v2402_v12 = vadd.f32 %v5356_v30, %v5287_v15 }
 0x14c   : > { %v5407_v6 = vpop.f32.mrb[21].mxu1  ;;  %v5409_v9 = vpop.f32.mrb[23].mxu0  ;;  %757 = vrot.lane.b32.xlu1 %v730_v59, %s4911_s7  ;;  %v363_v30 = vcombine.high %v361_v52, %v361_v52 }
 0x14d   : > { %v5416_v20 = vpop.f32.mrb[22].mxu1  ;;  %v2150_v59 = vmax.f32 %v2138_v11, 0.0 }
 0x14e   : > { %v5421_v40 = vpop.f32.mrb[23].mxu1 }
 0x151   : > { %v5430_v25 = vpop.f32.mrb[24].mxu0 }
 0x152   : > { %v5439_v24 = vpop.f32.mrb[25].mxu0 }
 0x153   : > { %7363 = vst [vmem:[#allocation9_spill] sm:$0xff] %v5439_v24  ;;  %v5443_v34 = vpop.f32.mrb[24].mxu1  ;;  %v5445_v41 = vpop.f32.mrb[26].mxu0 }
 0x154   : > { %7364 = vst [vmem:[#allocation10_spill] sm:$0xff] %v5445_v41  ;;  %v5447_v47 = vpop.f32.mrb[25].mxu1  ;;  %v5449_v29 = vpop.f32.mrb[27].mxu0 }
 0x155   : > { %7365 = vst [vmem:[#allocation11_spill] sm:$0xff] %v5449_v29  ;;  %v5455_v61 = vpop.f32.mrb[26].mxu1  ;;  %v2220_v29 = vunpack.c.l.bf16 %v2219_v51 }
 0x156   : > { %7366 = vst [vmem:[#allocation12_spill] sm:$0xff] %v5455_v61  ;;  %v5457_v53 = vpop.f32.mrb[27].mxu1  ;;  %v2154_v61 = vunpack.c.l.bf16 %v2153_v13 }
 0x157   : > { %7367 = vst [vmem:[#allocation13_spill] sm:$0xff] %v5457_v53  ;;  %v1966_v53 = vshrl.u32 %v1961_v3, 16  ;;  %v428_v3 = vrot.slane %v414_v38, %v5358_v32 }
 0x158   : > { %v2159_v11 = vshrl.u32 %v2154_v61, 16  ;;  %v2410_v61 = vmax.f32 %v2402_v12, 0.0 }
 0x159   : > { %v5466_v44 = vpop.f32.mrb[28].mxu0  ;;  %v430_v24 = vcombine.high %v428_v3, %v428_v3 }
 0x15a   : > { %7368 = vst [vmem:[#allocation14_spill] sm:$0xff] %v5466_v44  ;;  %v5472_v18 = vpop.f32.mrb[29].mxu0  ;;  %v615_v44 = vrot.slane %v5310_v10, %v5358_v32  ;;  %v2146_v10 = vadd.f32 %v5342_v4, %v5291_v17 }
 0x15b   : > { %7369 = vst [vmem:[#allocation15_spill] sm:$0xff] %v5472_v18  ;;  %v5474_v58 = vpop.f32.mrb[28].mxu1  ;;  %v5476_v43 = vpop.f32.mrb[30].mxu0  ;;  %v1890_v18 = vmax.f32 %v1876_v63, 0.0  ;;  %v459_v63 = vcombine.high %v5391_v56, %v5391_v56  ;;  %v5508_v56 = vrot.slane %v428_v3, %v5358_v32  ;;  %v5538_v3 = vrot.slane %v362_v2, %v5358_v32 }
 0x15c   : > { %7370 = vst [vmem:[#allocation16_spill] sm:$0xff] %v5474_v58  ;;  %7371 = vst [vmem:[#allocation17_spill] sm:$0xff] %v5476_v43  ;;  %v5484_v8 = vpop.f32.mrb[29].mxu1  ;;  %v1887_v43 = vadd.f32 %v5336_v55, %v5291_v17  ;;  %v461_v55 = vcombine.high %v5412_v31, %v5412_v31  ;;  %v1879_v31 = vadd.f32 %v5340_v62, %v5293_v19 }
 0x15d   : > { %7372 = vst [vmem:[#allocation18_spill] sm:$0xff] %v5484_v8  ;;  %v5491_v58 = vpop.f32.mrb[30].mxu1  ;;  %v1894_v51 = vpack.c.bf16 %v1890_v18, %v1890_v18  ;;  %v2225_v8 = vshrl.u32 %v2220_v29, 16  ;;  %v474_v4 = vrot.slane %v459_v63, %v5380_v46  ;;  %v622_v29 = vrot.slane %v608_v49, %v5358_v32  ;;  %398 = vst.msk [vmem:[%s6169_s19 + $0x10] sm:$0x1] %vm396_vm5, %v5538_v3 }
 0x15e   : > { %7373 = vst [vmem:[#allocation19_spill] sm:$0xff] %v5491_v58  ;;  %v1893_v26 = vmax.f32 %v1887_v43, 0.0  ;;  %v2152_v58 = vmax.f32 %v2146_v10, 0.0  ;;  %v478_v18 = vrot.slane %v461_v55, %v5380_v46  ;;  %v623_v63 = vcombine.high %v615_v44, %v615_v44 }
 0x15f   : > { %v1895_v13 = vunpack.c.l.bf16 %v1894_v51  ;;  %499 = vrot.lane.b32.xlu0 %v474_v4, %s4911_s7  ;;  %v2156_v51 = vpack.c.bf16 %v2150_v59, %v2150_v59  ;;  %v5547_v12 = vrot.slane %v622_v29, %v5358_v32  ;;  %v2478_v2 = vpack.c.bf16 %v2410_v61, %v2410_v61 }
 0x160   : > { %v1963_v41 = vpack.c.bf16 %v1893_v26, %v1893_v26  ;;  %v2222_v43 = vpack.c.bf16 %v2152_v58, %v2152_v58  ;;  %501 = vrot.lane.b32.xlu1 %v478_v18, %s4911_s7  ;;  %v2661_v58 = vadd.f32 %v5362_v35, %v5287_v15  ;;  %v1891_v26 = vmax.f32 %v1879_v31, 0.0 }
 0x161   : > { %v1900_v55 = vshrl.u32 %v1895_v13, 16  ;;  %v2157_v4 = vunpack.c.l.bf16 %v2156_v51  ;;  %v5527_v35 = vrot.slane %v5470_v45, %v5358_v32  ;;  %v624_v13 = vcombine.high %v622_v29, %v622_v29  ;;  %661 = vst.msk [vmem:[%s6169_s19 + $0x41] sm:$0x1] %vm396_vm5, %v5547_v12 }
 0x162   : > { %v1964_v10 = vunpack.c.l.bf16 %v1963_v41  ;;  %v2223_v38 = vunpack.c.l.bf16 %v2222_v43  ;;  %v482_v41 = vrot.slane %v5508_v56, %v5380_v46  ;;  %v1897_v18 = vpack.c.bf16 %v1891_v26, %v1891_v26 }
 0x163   : > { %v2669_v43 = vmax.f32 %v2661_v58, 0.0  ;;  %v5535_v31 = vrot.slane %v361_v52, %v5358_v32  ;;  %v5541_v45 = vrot.slane %v615_v44, %v5358_v32  ;;  %v5550_v58 = vrot.slane %v623_v63, %v5358_v32  ;;  %397 = vst.msk [vmem:[%s6169_s19] sm:$0x1] %vm396_vm5, %v5527_v35 }
 0x164   : > { %v5519_v62 = vor.u32 %v1966_v53, %v1964_v10  ;;  %v5523_v49 = vor.u32 %v2225_v8, %v2223_v38  ;;  %503 = vrot.lane.b32.xlu0 %v482_v41, %s4911_s7  ;;  %v5530_v53 = vor.u32 %v2159_v11, %v2157_v4  ;;  %v1898_v59 = vunpack.c.l.bf16 %v1897_v18 }
 0x165   : > { %v2653_v8 = vadd.f32 %v5366_v21, %v5289_v16  ;;  %v5544_v10 = vrot.slane %v430_v24, %v5358_v32  ;;  %v2394_v21 = vadd.f32 %v5360_v33, %v5289_v16  ;;  %v5557_v52 = vrot.slane %v363_v30, %v5358_v32  ;;  %401 = vst.msk [vmem:[%s6169_s19 + $0x40] sm:$0x1] %vm396_vm5, %v5535_v31 }
 0x166   : > { %7374 = vst [vmem:[#allocation20_spill] sm:$0xff] %v5519_v62  ;;  %7375 = vst [vmem:[#allocation21_spill] sm:$0xff] %v5523_v49  ;;  %v5552_v11 = vor.u32 %v1900_v55, %v1898_v59  ;;  %v2737_v44 = vpack.c.bf16 %v2669_v43, %v2669_v43  ;;  %v674_v29 = vcombine.high %v5306_v7, %v5306_v7  ;;  %v2479_v43 = vunpack.c.l.bf16 %v2478_v2 }
 0x167   : > { %v486_v24 = vrot.slane %v5544_v10, %v5380_v46  ;;  %v5564_v38 = vrot.slane %v624_v13, %v5358_v32  ;;  %v2667_v51 = vmax.f32 %v2653_v8, 0.0  ;;  %v2408_v55 = vmax.f32 %v2394_v21, 0.0  ;;  %402 = vst.msk [vmem:[%s6169_s19 + $0x50] sm:$0x1] %vm396_vm5, %v5557_v52  ;;  %657 = vst.msk [vmem:[%s6169_s19 + $0x1] sm:$0x1] %vm396_vm5, %v5541_v45 }
 0x168   : > { %v2405_v18 = vadd.f32 %v5364_v36, %v5291_v17  ;;  %v867_v61 = vcombine.high %v5352_v23, %v5352_v23  ;;  %v2738_v13 = vunpack.c.l.bf16 %v2737_v44  ;;  %v5591_v21 = vrot.slane %v5347_v14, %v5358_v32  ;;  %658 = vst.msk [vmem:[%s6169_s19 + $0x11] sm:$0x1] %vm396_vm5, %v5550_v58 }
 0x169   : > { %7376 = vst [vmem:[#allocation22_spill] sm:$0xff] %v5564_v38  ;;  %505 = vrot.lane.b32.xlu1 %v486_v24, %s4911_s7  ;;  %v2671_v24 = vpack.c.bf16 %v2667_v51, %v2667_v51  ;;  %v5597_v7 = vrot.slane %v5350_v22, %v5358_v32  ;;  %v874_v2 = vrot.slane %v5352_v23, %v5358_v32  ;;  %v2484_v33 = vshrl.u32 %v2479_v43, 16 }
 0x16a   : > { %v2412_v44 = vpack.c.bf16 %v2408_v55, %v2408_v55  ;;  %v1126_v59 = vcombine.high %v5354_v28, %v5354_v28  ;;  %v1133_v4 = vrot.slane %v5354_v28, %v5358_v32  ;;  %v2411_v63 = vmax.f32 %v2405_v18, 0.0 }
 0x16b   : > { %v2664_v51 = vadd.f32 %v5370_v39, %v5291_v17  ;;  %v881_v30 = vrot.slane %v867_v61, %v5358_v32  ;;  %v2743_v41 = vshrl.u32 %v2738_v13, 16  ;;  %v719_v26 = vcombine.high %v5405_v5, %v5405_v5 }
 0x16c   : > { %v2672_v36 = vunpack.c.l.bf16 %v2671_v24  ;;  %v2481_v23 = vpack.c.bf16 %v2411_v63, %v2411_v63  ;;  %v721_v8 = vcombine.high %v5462_v60, %v5462_v60  ;;  %v2413_v49 = vunpack.c.l.bf16 %v2412_v44  ;;  %v5619_v63 = vpop.f32.mrb[31].mxu1 }
 0x16d   : > { %v2670_v55 = vmax.f32 %v2664_v51, 0.0  ;;  %v734_v28 = vrot.slane %v719_v26, %v5380_v46  ;;  %v2656_v18 = vadd.f32 %v5374_v42, %v5293_v19  ;;  %v688_v39 = vrot.slane %v674_v29, %v5358_v32  ;;  %v5631_v51 = vpop.f32.mrb[31].mxu0 }
 0x16e   : > { %v2482_v61 = vunpack.c.l.bf16 %v2481_v23  ;;  %v738_v13 = vrot.slane %v721_v8, %v5380_v46  ;;  %v2397_v5 = vadd.f32 %v5368_v37, %v5293_v19  ;;  %v882_v24 = vcombine.high %v874_v2, %v874_v2 }
 0x16f   : > { %v2740_v43 = vpack.c.bf16 %v2670_v55, %v2670_v55  ;;  %759 = vrot.lane.b32.xlu0 %v734_v28, %s4911_s7  ;;  %v2668_v60 = vmax.f32 %v2656_v18, 0.0  ;;  %v5623_v26 = vrot.slane %v688_v39, %v5358_v32  ;;  %v2920_v42 = vadd.f32 %v5384_v50, %v5287_v15 }
 0x170   : > { %v1140_v29 = vrot.slane %v1126_v59, %v5358_v32  ;;  %v5628_v44 = vor.u32 %v2484_v33, %v2482_v61  ;;  %761 = vrot.lane.b32.xlu1 %v738_v13, %s4911_s7  ;;  %v2409_v37 = vmax.f32 %v2397_v5, 0.0  ;;  %v5634_v23 = vrot.slane %v874_v2, %v5358_v32 }
 0x171   : > { %v2741_v8 = vunpack.c.l.bf16 %v2740_v43  ;;  %v2677_v55 = vshrl.u32 %v2672_v36, 16  ;;  %v2674_v28 = vpack.c.bf16 %v2668_v60, %v2668_v60  ;;  %v742_v18 = vrot.slane %v5623_v26, %v5380_v46 }
 0x172   : > { %7377 = vst [vmem:[#allocation23_spill] sm:$0xff] %v5628_v44  ;;  %v1141_v62 = vcombine.high %v1133_v4, %v1133_v4  ;;  %v2418_v50 = vshrl.u32 %v2413_v49, 16  ;;  %v2415_v33 = vpack.c.bf16 %v2409_v37, %v2409_v37  ;;  %v883_v59 = vcombine.high %v881_v30, %v881_v30  ;;  %916 = vst.msk [vmem:[%s6169_s19 + $0x2] sm:$0x1] %vm396_vm5, %v5634_v23 }
 0x173   : > { %v5638_v38 = vor.u32 %v2743_v41, %v2741_v8  ;;  %v2675_v61 = vunpack.c.l.bf16 %v2674_v28  ;;  %763 = vrot.lane.b32.xlu0 %v742_v18, %s4911_s7  ;;  %v2928_v43 = vmax.f32 %v2920_v42, 0.0  ;;  %v3179_v13 = vadd.f32 %v5397_v0, %v5287_v15 }
 0x174   : > { %v1142_v2 = vcombine.high %v1140_v29, %v1140_v29  ;;  %v2416_v5 = vunpack.c.l.bf16 %v2415_v33  ;;  %v3171_v36 = vadd.f32 %v5407_v6, %v5289_v16  ;;  %v690_v60 = vcombine.high %v688_v39, %v688_v39 }
 0x175   : > { %7378 = vst [vmem:[#allocation24_spill] sm:$0xff] %v5638_v38  ;;  %v5646_v44 = vrot.slane %v881_v30, %v5358_v32  ;;  %v5649_v49 = vrot.slane %v882_v24, %v5358_v32  ;;  %v5652_v41 = vrot.slane %v1133_v4, %v5358_v32  ;;  %v5654_v8 = vor.u32 %v2677_v55, %v2675_v61 }
 0x176   : > { %v5658_v42 = vor.u32 %v2418_v50, %v2416_v5  ;;  %v5661_v37 = vrot.slane %v690_v60, %v5358_v32  ;;  %v2912_v6 = vadd.f32 %v5393_v57, %v5289_v16  ;;  %v5666_v30 = vrot.slane %v1140_v29, %v5358_v32 }
 0x177   : > { %v5669_v39 = vrot.slane %v1141_v62, %v5358_v32  ;;  %v2996_v4 = vpack.c.bf16 %v2928_v43, %v2928_v43  ;;  %v3187_v24 = vmax.f32 %v3179_v13, 0.0  ;;  %v5672_v55 = vrot.slane %v883_v59, %v5358_v32  ;;  %917 = vst.msk [vmem:[%s6169_s19 + $0x12] sm:$0x1] %vm396_vm5, %v5649_v49  ;;  %920 = vst.msk [vmem:[%s6169_s19 + $0x42] sm:$0x1] %vm396_vm5, %v5646_v44 }
 0x178   : > { %7379 = vst [vmem:[#allocation25_spill] sm:$0xff] %v5666_v30  ;;  %v5675_v28 = vrot.slane %v1142_v2, %v5358_v32  ;;  %v3185_v18 = vmax.f32 %v3171_v36, 0.0  ;;  %v746_v50 = vrot.slane %v5661_v37, %v5380_v46  ;;  %v1644_v29 = vcombine.high %v5441_v54, %v5441_v54  ;;  %1175 = vst.msk [vmem:[%s6169_s19 + $0x3] sm:$0x1] %vm396_vm5, %v5652_v41 }
 0x179   : > { %v5685_v62 = vrot.slane %v5441_v54, %v5358_v32  ;;  %v2926_v33 = vmax.f32 %v2912_v6, 0.0  ;;  %v1385_v43 = vcombine.high %v5451_v48, %v5451_v48  ;;  %v2923_v13 = vadd.f32 %v5399_v1, %v5291_v17  ;;  %921 = vst.msk [vmem:[%s6169_s19 + $0x52] sm:$0x1] %vm396_vm5, %v5672_v55  ;;  %1176 = vst.msk [vmem:[%s6169_s19 + $0x13] sm:$0x1] %vm396_vm5, %v5669_v39 }
 0x17a   : > { %7380 = vst [vmem:[#allocation26_spill] sm:$0xff] %v5675_v28  ;;  %765 = vrot.lane.b32.xlu1 %v746_v50, %s4911_s7  ;;  %v2997_v5 = vunpack.c.l.bf16 %v2996_v4  ;;  %v3255_v36 = vpack.c.bf16 %v3187_v24, %v3187_v24  ;;  %v3189_v57 = vpack.c.bf16 %v3185_v18, %v3185_v18  ;;  %v5708_v1 = vrot.slane %v5432_v27, %v5358_v32 }
 0x17b   : > { %v1658_v2 = vrot.slane %v1644_v29, %v5358_v32  ;;  %v1659_v4 = vcombine.high %v5685_v62, %v5685_v62  ;;  %v2930_v24 = vpack.c.bf16 %v2926_v33, %v2926_v33  ;;  %v5715_v54 = vrot.slane %v5685_v62, %v5358_v32 }
 0x17c   : > { %v1392_v6 = vrot.slane %v5451_v48, %v5358_v32  ;;  %v1399_v60 = vrot.slane %v1385_v43, %v5358_v32  ;;  %v2929_v18 = vmax.f32 %v2923_v13, 0.0  ;;  %v3002_v59 = vshrl.u32 %v2997_v5, 16 }
 0x17d   : > { %7381 = vst [vmem:[#allocation27_spill] sm:$0xff] %v5715_v54  ;;  %v3256_v61 = vunpack.c.l.bf16 %v3255_v36  ;;  %v3182_v0 = vadd.f32 %v5416_v20, %v5291_v17  ;;  %v460_v29 = vcombine.high %v5508_v56, %v5508_v56  ;;  %v3190_v50 = vunpack.c.l.bf16 %v3189_v57 }
 0x17e   : > { %v2999_v33 = vpack.c.bf16 %v2929_v18, %v2929_v18  ;;  %v462_v62 = vcombine.high %v5544_v10, %v5544_v10  ;;  %v3174_v38 = vadd.f32 %v5421_v40, %v5293_v19  ;;  %v2931_v48 = vunpack.c.l.bf16 %v2930_v24 }
 0x17f   : > { %v3188_v28 = vmax.f32 %v3182_v0, 0.0  ;;  %v490_v43 = vrot.slane %v460_v29, %v5380_v46  ;;  %v720_v13 = vcombine.high %v5623_v26, %v5623_v26  ;;  %v2915_v56 = vadd.f32 %v5409_v9, %v5293_v19 }
 0x180   : > { %v3000_v5 = vunpack.c.l.bf16 %v2999_v33  ;;  %v494_v20 = vrot.slane %v462_v62, %v5380_v46  ;;  %v3186_v36 = vmax.f32 %v3174_v38, 0.0  ;;  %v3261_v57 = vshrl.u32 %v3256_v61, 16 }
 0x181   : > { %v3258_v18 = vpack.c.bf16 %v3188_v28, %v3188_v28  ;;  %507 = vrot.lane.b32.xlu0 %v490_v43, %s4911_s7  ;;  %v3438_v40 = vadd.f32 %v5430_v25, %v5287_v15  ;;  %v3697_v10 = vadd.f32 %v5443_v34, %v5287_v15  ;;  %v3195_v0 = vshrl.u32 %v3190_v50, 16 }
 0x182   : > { %v5739_v24 = vor.u32 %v3002_v59, %v3000_v5  ;;  %509 = vrot.lane.b32.xlu1 %v494_v20, %s4911_s7  ;;  %v3192_v26 = vpack.c.bf16 %v3186_v36, %v3186_v36  ;;  %v2927_v38 = vmax.f32 %v2915_v56, 0.0  ;;  %v1660_v29 = vcombine.high %v1658_v2, %v1658_v2 }
 0x183   : > { %v3259_v33 = vunpack.c.l.bf16 %v3258_v18  ;;  %v750_v9 = vrot.slane %v720_v13, %v5380_v46  ;;  %v722_v28 = vcombine.high %v5661_v37, %v5661_v37  ;;  %v2936_v61 = vshrl.u32 %v2931_v48, 16 }
 0x184   : > { %7382 = vst [vmem:[#allocation28_spill] sm:$0xff] %v5739_v24  ;;  %v3193_v62 = vunpack.c.l.bf16 %v3192_v26  ;;  %v2933_v25 = vpack.c.bf16 %v2927_v38, %v2927_v38  ;;  %v3446_v43 = vmax.f32 %v3438_v40, 0.0  ;;  %v1400_v30 = vcombine.high %v1392_v6, %v1392_v6  ;;  %v7388_v38 = vld [vmem:[#allocation10_spill] sm:$0xff] }
 0x185   : > { %v5745_v34 = vor.u32 %v3261_v57, %v3259_v33  ;;  %767 = vrot.lane.b32.xlu0 %v750_v9, %s4911_s7  ;;  %v3705_v59 = vmax.f32 %v3697_v10, 0.0  ;;  %v3689_v50 = vadd.f32 %v5447_v47, %v5289_v16  ;;  %v1401_v5 = vcombine.high %v1399_v60, %v1399_v60  ;;  %v7386_v57 = vld [vmem:[#allocation9_spill] sm:$0xff]  ;;  %v7389_v9 = vld [vmem:[#allocation8_spill] sm:$0xff] }
 0x186   : > { %v5750_v20 = vor.u32 %v3195_v0, %v3193_v62  ;;  %v2934_v13 = vunpack.c.l.bf16 %v2933_v25  ;;  %v754_v36 = vrot.slane %v722_v28, %v5380_v46  ;;  %v5754_v37 = vrot.slane %v1658_v2, %v5358_v32 }
 0x187   : > { %7383 = vst [vmem:[#allocation29_spill] sm:$0xff] %v5745_v34  ;;  %v5757_v48 = vrot.slane %v1659_v4, %v5358_v32  ;;  %v2162_v56 = vcombine.high %v5530_v53, %v5530_v53  ;;  %v3430_v18 = vadd.f32 %v7386_v57, %v5289_v16  ;;  %v5764_v47 = vrot.slane %v1660_v29, %v5358_v32 }
 0x188   : > { %7384 = vst [vmem:[#allocation30_spill] sm:$0xff] %v5754_v37  ;;  %v5767_v40 = vrot.slane %v1392_v6, %v5358_v32  ;;  %v5769_v10 = vor.u32 %v2936_v61, %v2934_v13  ;;  %v3514_v0 = vpack.c.bf16 %v3446_v43, %v3446_v43  ;;  %769 = vrot.lane.b32.xlu1 %v754_v36, %s4911_s7  ;;  %v3703_v26 = vmax.f32 %v3689_v50, 0.0 }
 0x189   : > { %7385 = vst [vmem:[#allocation31_spill] sm:$0xff] %v5757_v48  ;;  %7387 = vst [vmem:[#allocation9_spill] sm:$0xff] %v5764_v47  ;;  %v2169_v2 = vrot.slane %v5530_v53, %v5358_v32  ;;  %v3773_v4 = vpack.c.bf16 %v3705_v59, %v3705_v59  ;;  %v3441_v33 = vadd.f32 %v7388_v38, %v5291_v17  ;;  %v3444_v43 = vmax.f32 %v3430_v18, 0.0  ;;  %v7392_v18 = vld [vmem:[#allocation12_spill] sm:$0xff] }
 0x18a   : > { %v5778_v29 = vrot.slane %v7389_v9, %v5358_v32  ;;  %v5781_v6 = vrot.slane %v1399_v60, %v5358_v32  ;;  %v5784_v28 = vrot.slane %v1400_v30, %v5358_v32  ;;  %v5787_v61 = vrot.slane %v1401_v5, %v5358_v32  ;;  %1434 = vst.msk [vmem:[%s6169_s19 + $0x4] sm:$0x1] %vm396_vm5, %v5767_v40 }
 0x18b   : > { %v5794_v25 = vrot.slane %v2162_v56, %v5358_v32  ;;  %v3515_v59 = vunpack.c.l.bf16 %v3514_v0  ;;  %v3447_v50 = vmax.f32 %v3441_v33, 0.0  ;;  %v2177_v13 = vcombine.high %v2169_v2, %v2169_v2 }
 0x18c   : > { %7390 = vst [vmem:[#allocation10_spill] sm:$0xff] %v5781_v6  ;;  %7391 = vst [vmem:[#allocation8_spill] sm:$0xff] %v5787_v61  ;;  %v3774_v36 = vunpack.c.l.bf16 %v3773_v4  ;;  %v3707_v57 = vpack.c.bf16 %v3703_v26, %v3703_v26  ;;  %v5809_v62 = vrot.slane %v2169_v2, %v5358_v32  ;;  %v1903_v33 = vcombine.high %v5552_v11, %v5552_v11 }
 0x18d   : > { %v2178_v0 = vcombine.high %v5794_v25, %v5794_v25  ;;  %v1910_v4 = vrot.slane %v5552_v11, %v5358_v32  ;;  %v3448_v26 = vpack.c.bf16 %v3444_v43, %v3444_v43  ;;  %v5819_v5 = vrot.slane %v5794_v25, %v5358_v32  ;;  %1435 = vst.msk [vmem:[%s6169_s19 + $0x14] sm:$0x1] %vm396_vm5, %v5784_v28 }
 0x18e   : > { %v3520_v60 = vshrl.u32 %v3515_v59, 16  ;;  %v3517_v53 = vpack.c.bf16 %v3447_v50, %v3447_v50  ;;  %v3700_v2 = vadd.f32 %v7392_v18, %v5291_v17  ;;  %v5824_v38 = vrot.slane %v2177_v13, %v5358_v32  ;;  %v7393_v59 = vld [vmem:[#allocation13_spill] sm:$0xff]  ;;  %2211 = vst.msk [vmem:[%s6169_s19 + $0x7] sm:$0x1] %vm396_vm5, %v5809_v62 }
 0x18f   : > { %v3779_v56 = vshrl.u32 %v3774_v36, 16  ;;  %v3708_v30 = vunpack.c.l.bf16 %v3707_v57  ;;  %v5828_v34 = vrot.slane %v5591_v21, %v5358_v32  ;;  %v948_v25 = vcombine.high %v5591_v21, %v5591_v21  ;;  %v7394_v36 = vld [vmem:[#allocation11_spill] sm:$0xff]  ;;  %2215 = vst.msk [vmem:[%s6169_s19 + $0x47] sm:$0x1] %vm396_vm5, %v5819_v5 }
 0x190   : > { %v3518_v11 = vunpack.c.l.bf16 %v3517_v53  ;;  %v3706_v43 = vmax.f32 %v3700_v2, 0.0  ;;  %v3692_v50 = vadd.f32 %v7393_v59, %v5293_v19  ;;  %v3449_v24 = vunpack.c.l.bf16 %v3448_v26  ;;  %2212 = vst.msk [vmem:[%s6169_s19 + $0x17] sm:$0x1] %vm396_vm5, %v5824_v38 }
 0x191   : > { %v985_v18 = vrot.slane %v5828_v34, %v5380_v46  ;;  %v5838_v13 = vrot.slane %v5597_v7, %v5358_v32  ;;  %v3433_v57 = vadd.f32 %v7394_v36, %v5293_v19  ;;  %v5845_v2 = vrot.slane %v948_v25, %v5358_v32 }
 0x192   : > { %v5842_v47 = vor.u32 %v3520_v60, %v3518_v11  ;;  %v3776_v53 = vpack.c.bf16 %v3706_v43, %v3706_v43  ;;  %v3704_v21 = vmax.f32 %v3692_v50, 0.0  ;;  %v1917_v59 = vrot.slane %v1903_v33, %v5358_v32 }
 0x193   : > { %v2680_v26 = vcombine.high %v5654_v8, %v5654_v8  ;;  %v2687_v37 = vrot.slane %v5654_v8, %v5358_v32  ;;  %1014 = vrot.lane.b32.xlu0 %v985_v18, %s4911_s7  ;;  %v3445_v48 = vmax.f32 %v3433_v57, 0.0  ;;  %v2421_v60 = vcombine.high %v5658_v42, %v5658_v42 }
 0x194   : > { %7395 = vst [vmem:[#allocation12_spill] sm:$0xff] %v5842_v47  ;;  %v3713_v11 = vshrl.u32 %v3708_v30, 16  ;;  %v3777_v43 = vunpack.c.l.bf16 %v3776_v53  ;;  %v989_v25 = vrot.slane %v5845_v2, %v5380_v46  ;;  %v3454_v50 = vshrl.u32 %v3449_v24, 16  ;;  %v7397_v30 = vld [vmem:[#allocation14_spill] sm:$0xff] }
 0x195   : > { %v3710_v36 = vpack.c.bf16 %v3704_v21, %v3704_v21  ;;  %v1244_v33 = vrot.slane %v5838_v13, %v5380_v46  ;;  %v3451_v47 = vpack.c.bf16 %v3445_v48, %v3445_v48  ;;  %v1918_v54 = vcombine.high %v1910_v4, %v1910_v4  ;;  %v7398_v21 = vld [vmem:[#allocation16_spill] sm:$0xff] }
 0x196   : > { %v2428_v8 = vrot.slane %v5658_v42, %v5358_v32  ;;  %v5861_v18 = vor.u32 %v3779_v56, %v3777_v43  ;;  %1016 = vrot.lane.b32.xlu1 %v989_v25, %s4911_s7  ;;  %v3956_v57 = vadd.f32 %v7397_v30, %v5287_v15  ;;  %v2694_v53 = vrot.slane %v2680_v26, %v5358_v32 }
 0x197   : > { %v3711_v61 = vunpack.c.l.bf16 %v3710_v36  ;;  %1273 = vrot.lane.b32.xlu0 %v1244_v33, %s4911_s7  ;;  %v3452_v24 = vunpack.c.l.bf16 %v3451_v47  ;;  %v4215_v48 = vadd.f32 %v7398_v21, %v5287_v15  ;;  %v1919_v42 = vcombine.high %v1917_v59, %v1917_v59 }
 0x198   : > { %7396 = vst [vmem:[#allocation13_spill] sm:$0xff] %v5861_v18  ;;  %v5873_v56 = vrot.slane %v1910_v4, %v5358_v32  ;;  %v2435_v43 = vrot.slane %v2421_v60, %v5358_v32  ;;  %v5877_v25 = vrot.slane %v2178_v0, %v5358_v32  ;;  %v2695_v26 = vcombine.high %v2687_v37, %v2687_v37 }
 0x199   : > { %v5879_v36 = vor.u32 %v3713_v11, %v3711_v61  ;;  %v5881_v33 = vor.u32 %v3454_v50, %v3452_v24  ;;  %v2436_v30 = vcombine.high %v2428_v8, %v2428_v8  ;;  %v3964_v21 = vmax.f32 %v3956_v57, 0.0 }
 0x19a   : > { %v5888_v4 = vrot.slane %v1917_v59, %v5358_v32  ;;  %v5891_v60 = vrot.slane %v1918_v54, %v5358_v32  ;;  %v2696_v0 = vcombine.high %v2694_v53, %v2694_v53  ;;  %v4223_v6 = vmax.f32 %v4215_v48, 0.0  ;;  %1952 = vst.msk [vmem:[%s6169_s19 + $0x6] sm:$0x1] %vm396_vm5, %v5873_v56  ;;  %2216 = vst.msk [vmem:[%s6169_s19 + $0x57] sm:$0x1] %vm396_vm5, %v5877_v25 }
 0x19b   : > { %v5894_v61 = vrot.slane %v1919_v42, %v5358_v32  ;;  %v5897_v11 = vrot.slane %v2687_v37, %v5358_v32  ;;  %v2437_v50 = vcombine.high %v2435_v43, %v2435_v43  ;;  %v5900_v24 = vrot.slane %v2428_v8, %v5358_v32 }
 0x19c   : > { %v5905_v59 = vrot.slane %v2694_v53, %v5358_v32  ;;  %v5908_v54 = vrot.slane %v2695_v26, %v5358_v32  ;;  %v5911_v48 = vrot.slane %v2435_v43, %v5358_v32  ;;  %v5916_v42 = vrot.slane %v2436_v30, %v5358_v32  ;;  %1953 = vst.msk [vmem:[%s6169_s19 + $0x16] sm:$0x1] %vm396_vm5, %v5891_v60 }
 0x19d   : > { %7399 = vst [vmem:[#allocation11_spill] sm:$0xff] %v5897_v11  ;;  %v4032_v8 = vpack.c.bf16 %v3964_v21, %v3964_v21  ;;  %v1207_v15 = vcombine.high %v5597_v7, %v5597_v7  ;;  %v5925_v47 = vrot.slane %v2696_v0, %v5358_v32  ;;  %v4291_v43 = vpack.c.bf16 %v4223_v6, %v4223_v6  ;;  %v7404_v0 = vld [vmem:[#allocation17_spill] sm:$0xff]  ;;  %v7405_v6 = vld [vmem:[#allocation19_spill] sm:$0xff] }
 0x19e   : > { %7400 = vst [vmem:[#allocation14_spill] sm:$0xff] %v5905_v59  ;;  %7401 = vst [vmem:[#allocation16_spill] sm:$0xff] %v5908_v54  ;;  %v5932_v21 = vrot.slane %v2437_v50, %v5358_v32  ;;  %v3198_v37 = vcombine.high %v5750_v20, %v5750_v20  ;;  %v3205_v50 = vrot.slane %v5750_v20, %v5358_v32 }
 0x19f   : > { %7402 = vst [vmem:[#allocation32_spill] sm:$0xff] %v5925_v47  ;;  %v4033_v26 = vunpack.c.l.bf16 %v4032_v8  ;;  %v1229_v7 = vrot.slane %v1207_v15, %v5358_v32  ;;  %v4292_v57 = vunpack.c.l.bf16 %v4291_v43  ;;  %v3959_v18 = vadd.f32 %v7404_v0, %v5291_v17  ;;  %1956 = vst.msk [vmem:[%s6169_s19 + $0x46] sm:$0x1] %vm396_vm5, %v5888_v4 }
 0x1a0   : > { %7403 = vst [vmem:[#allocation33_spill] sm:$0xff] %v5932_v21  ;;  %v4218_v59 = vadd.f32 %v7405_v6, %v5291_v17  ;;  %v978_v20 = vcombine.high %v5828_v34, %v5828_v34  ;;  %v980_v15 = vcombine.high %v5845_v2, %v5845_v2  ;;  %v3212_v8 = vrot.slane %v3198_v37, %v5358_v32 }
 0x1a1   : > { %v1248_v30 = vrot.slane %v1229_v7, %v5380_v46  ;;  %v3965_v43 = vmax.f32 %v3959_v18, 0.0  ;;  %v7406_v0 = vcombine.high %v5347_v14, %v5347_v14  ;;  %v3213_v6 = vcombine.high %v3205_v50, %v3205_v50  ;;  %1957 = vst.msk [vmem:[%s6169_s19 + $0x56] sm:$0x1] %vm396_vm5, %v5894_v61  ;;  %2470 = vst.msk [vmem:[%s6169_s19 + $0x8] sm:$0x1] %vm396_vm5, %v5900_v24 }
 0x1a2   : > { %v4224_v53 = vmax.f32 %v4218_v59, 0.0  ;;  %v2939_v54 = vcombine.high %v5769_v10, %v5769_v10  ;;  %v4038_v47 = vshrl.u32 %v4033_v26, 16  ;;  %v993_v34 = vrot.slane %v978_v20, %v5380_v46  ;;  %2471 = vst.msk [vmem:[%s6169_s19 + $0x18] sm:$0x1] %vm396_vm5, %v5916_v42  ;;  %2474 = vst.msk [vmem:[%s6169_s19 + $0x48] sm:$0x1] %vm396_vm5, %v5911_v48 }
 0x1a3   : > { %v947_v17 = vrot.slane %v7406_v0, %v5358_v32  ;;  %1275 = vrot.lane.b32.xlu1 %v1248_v30, %s4911_s7  ;;  %v4297_v11 = vshrl.u32 %v4292_v57, 16  ;;  %v4035_v2 = vpack.c.bf16 %v3965_v43, %v3965_v43  ;;  %v5975_v59 = vrot.slane %v3205_v50, %v5358_v32 }
 0x1a4   : > { %v4294_v21 = vpack.c.bf16 %v4224_v53, %v4224_v53  ;;  %1018 = vrot.lane.b32.xlu0 %v993_v34, %s4911_s7  ;;  %v997_v14 = vrot.slane %v980_v15, %v5380_v46  ;;  %v7407_v26 = vcombine.high %v5350_v22, %v5350_v22  ;;  %v3214_v20 = vcombine.high %v3212_v8, %v3212_v8 }
 0x1a5   : > { %v5972_v18 = vrot.slane %v947_v17, %v5358_v32  ;;  %v949_v37 = vcombine.high %v947_v17, %v947_v17  ;;  %v2946_v57 = vrot.slane %v5769_v10, %v5358_v32  ;;  %v4036_v53 = vunpack.c.l.bf16 %v4035_v2  ;;  %3247 = vst.msk [vmem:[%s6169_s19 + $0xb] sm:$0x1] %vm396_vm5, %v5975_v59 }
 0x1a6   : > { %v1206_v30 = vrot.slane %v7407_v26, %v5358_v32  ;;  %v4295_v43 = vunpack.c.l.bf16 %v4294_v21  ;;  %v5986_v0 = vrot.slane %v3212_v8, %v5358_v32  ;;  %v1237_v22 = vcombine.high %v5838_v13, %v5838_v13 }
 0x1a7   : > { %1020 = vrot.lane.b32.xlu1 %v997_v14, %s4911_s7  ;;  %v1001_v50 = vrot.slane %v5972_v18, %v5380_v46  ;;  %v5992_v15 = vrot.slane %v949_v37, %v5358_v32  ;;  %v2953_v17 = vrot.slane %v2939_v54, %v5358_v32  ;;  %v3716_v10 = vcombine.high %v5879_v36, %v5879_v36 }
 0x1a8   : > { %7408 = vst [vmem:[#allocation17_spill] sm:$0xff] %v5986_v0  ;;  %v5999_v21 = vor.u32 %v4038_v47, %v4036_v53  ;;  %v6001_v8 = vor.u32 %v4297_v11, %v4295_v43  ;;  %v3457_v34 = vcombine.high %v5881_v33, %v5881_v33  ;;  %v1239_v14 = vcombine.high %v1229_v7, %v1229_v7 }
 0x1a9   : > { %1022 = vrot.lane.b32.xlu0 %v1001_v50, %s4911_s7  ;;  %v1005_v2 = vrot.slane %v5992_v15, %v5380_v46  ;;  %v1208_v37 = vcombine.high %v1206_v30, %v1206_v30  ;;  %v6009_v13 = vrot.slane %v3213_v6, %v5358_v32  ;;  %v2954_v47 = vcombine.high %v2946_v57, %v2946_v57 }
 0x1aa   : > { %7409 = vst [vmem:[#allocation19_spill] sm:$0xff] %v5999_v21  ;;  %7410 = vst [vmem:[#allocation34_spill] sm:$0xff] %v6001_v8  ;;  %v6014_v11 = vrot.slane %v2946_v57, %v5358_v32  ;;  %v6017_v26 = vrot.slane %v3214_v20, %v5358_v32  ;;  %v1252_v7 = vrot.slane %v1237_v22, %v5380_v46 }
 0x1ab   : > { %7411 = vst [vmem:[#allocation35_spill] sm:$0xff] %v6009_v13  ;;  %1024 = vrot.lane.b32.xlu1 %v1005_v2, %s4911_s7  ;;  %v1222_v6 = vrot.slane %v1206_v30, %v5358_v32  ;;  %v2955_v43 = vcombine.high %v2953_v17, %v2953_v17  ;;  %v3723_v50 = vrot.slane %v5879_v36, %v5358_v32 }
 0x1ac   : > { %7412 = vst [vmem:[#allocation36_spill] sm:$0xff] %v6017_v26  ;;  %v3730_v54 = vrot.slane %v3716_v10, %v5358_v32  ;;  %v3464_v57 = vrot.slane %v5881_v33, %v5358_v32  ;;  %v6030_v20 = vrot.slane %v2953_v17, %v5358_v32  ;;  %v3471_v53 = vrot.slane %v3457_v34, %v5358_v32  ;;  %v7413_v10 = vld [vmem:[#allocation18_spill] sm:$0xff]  ;;  %v7414_v17 = vld [vmem:[#allocation15_spill] sm:$0xff] }
 0x1ad   : > { %1277 = vrot.lane.b32.xlu0 %v1252_v7, %s4911_s7  ;;  %v1256_v22 = vrot.slane %v1239_v14, %v5380_v46  ;;  %v1236_v30 = vrot.slane %v1208_v37, %v5358_v32  ;;  %v6039_v36 = vrot.slane %v2954_v47, %v5358_v32  ;;  %v4207_v33 = vadd.f32 %v7413_v10, %v5289_v16 }
 0x1ae   : > { %v3948_v8 = vadd.f32 %v7414_v17, %v5289_v16  ;;  %v1260_v37 = vrot.slane %v1222_v6, %v5380_v46  ;;  %v979_v47 = vcombine.high %v5972_v18, %v5972_v18  ;;  %v6054_v7 = vrot.slane %v2955_v43, %v5358_v32  ;;  %2988 = vst.msk [vmem:[%s6169_s19 + $0xa] sm:$0x1] %vm396_vm5, %v6014_v11 }
 0x1af   : > { %1279 = vrot.lane.b32.xlu1 %v1256_v22, %s4911_s7  ;;  %v3731_v10 = vcombine.high %v3723_v50, %v3723_v50  ;;  %v3732_v2 = vcombine.high %v3730_v54, %v3730_v54  ;;  %v3472_v21 = vcombine.high %v3464_v57, %v3464_v57  ;;  %v3473_v17 = vcombine.high %v3471_v53, %v3471_v53 }
 0x1b0   : > { %v1264_v34 = vrot.slane %v1236_v30, %v5380_v46  ;;  %v981_v22 = vcombine.high %v5992_v15, %v5992_v15  ;;  %v6065_v43 = vrot.slane %v3723_v50, %v5358_v32  ;;  %v4221_v14 = vmax.f32 %v4207_v33, 0.0  ;;  %2989 = vst.msk [vmem:[%s6169_s19 + $0x1a] sm:$0x1] %vm396_vm5, %v6039_v36  ;;  %2992 = vst.msk [vmem:[%s6169_s19 + $0x4a] sm:$0x1] %vm396_vm5, %v6030_v20 }
 0x1b1   : > { %1281 = vrot.lane.b32.xlu0 %v1260_v37, %s4911_s7  ;;  %v3962_v26 = vmax.f32 %v3948_v8, 0.0  ;;  %v6068_v0 = vrot.slane %v3730_v54, %v5358_v32  ;;  %v6071_v16 = vrot.slane %v3464_v57, %v5358_v32  ;;  %v1009_v37 = vrot.slane %v979_v47, %v5380_v46  ;;  %2993 = vst.msk [vmem:[%s6169_s19 + $0x5a] sm:$0x1] %vm396_vm5, %v6054_v7 }
 0x1b2   : > { %v1238_v13 = vcombine.high %v1222_v6, %v1222_v6  ;;  %v6076_v15 = vrot.slane %v3731_v10, %v5358_v32  ;;  %v6079_v18 = vrot.slane %v3732_v2, %v5358_v32  ;;  %v6082_v50 = vrot.slane %v3471_v53, %v5358_v32  ;;  %3765 = vst.msk [vmem:[%s6169_s19 + $0xd] sm:$0x1] %vm396_vm5, %v6065_v43 }
 0x1b3   : > { %1283 = vrot.lane.b32.xlu1 %v1264_v34, %s4911_s7  ;;  %v6085_v8 = vrot.slane %v3472_v21, %v5358_v32  ;;  %v6088_v54 = vrot.slane %v3473_v17, %v5358_v32  ;;  %v1013_v6 = vrot.slane %v981_v22, %v5380_v46  ;;  %v1240_v57 = vcombine.high %v1236_v30, %v1236_v30 }
 0x1b4   : > { %v1466_v33 = vcombine.high %v5708_v1, %v5708_v1  ;;  %v2987_v2 = vcombine.high %v6054_v7, %v6054_v7  ;;  %v6098_v21 = vpack.c.bf16 %v4221_v14, %v4221_v14  ;;  %v6100_v34 = vpack.c.bf16 %v3962_v26, %v3962_v26  ;;  %v6102_v47 = vpop.permute.xlu0 %495  ;;  %3506 = vst.msk [vmem:[%s6169_s19 + $0xc] sm:$0x1] %vm396_vm5, %v6071_v16 }
 0x1b5   : > { %1026 = vrot.lane.b32.xlu0 %v1009_v37, %s4911_s7  ;;  %v3502_v30 = vcombine.high %v6071_v16, %v6071_v16  ;;  %v1268_v17 = vrot.slane %v1238_v13, %v5380_v46  ;;  %v6112_v22 = vrot.slane %v5708_v1, %v5358_v32  ;;  %v3504_v10 = vcombine.high %v6085_v8, %v6085_v8 }
 0x1b6   : > { %v1272_v1 = vrot.slane %v1240_v57, %v5380_v46  ;;  %v1725_v26 = vcombine.high %v5778_v29, %v5778_v29  ;;  %v6136_v37 = vadd.f32 %v5619_v63, %v5293_v19  ;;  %v6143_v57 = vrot.slane %v5778_v29, %v5358_v32  ;;  %2995 = vst.msk [vmem:[%s6169_s19 + $0x7a] sm:$0x1] %vm396_vm5, %v2987_v2  ;;  %v7476_v2 = vld [vmem:[#allocation17_spill] sm:$0xff] }
 0x1b7   : > { %1028 = vrot.lane.b32.xlu1 %v1013_v6, %s4911_s7  ;;  %v6128_v6 = vrot.slane %v1466_v33, %v5358_v32  ;;  %v7415_v33 = vcombine.high %v5432_v27, %v5432_v27  ;;  %v6153_v53 = vadd.f32 %v5631_v51, %v5293_v19  ;;  %v1710_v29 = vcombine.high %v7389_v9, %v7389_v9 }
 0x1b8   : > { %v4222_v63 = vmax.f32 %v6136_v37, 0.0  ;;  %v6158_v13 = vpop.permute.xlu0 %755  ;;  %v7416_v51 = vcombine.high %v5527_v35, %v5527_v35  ;;  %v7418_v35 = vcombine.high %v5535_v31, %v5535_v31  ;;  %v7420_v31 = vcombine.high %v5541_v45, %v5541_v45  ;;  %3251 = vst.msk [vmem:[%s6169_s19 + $0x4b] sm:$0x1] %vm396_vm5, %v7476_v2  ;;  %3507 = vst.msk [vmem:[%s6169_s19 + $0x1c] sm:$0x1] %vm396_vm5, %v6085_v8 }
 0x1b9   : > { %1285 = vrot.lane.b32.xlu0 %v1268_v17, %s4911_s7  ;;  %v1503_v17 = vrot.slane %v6112_v22, %v5380_v46  ;;  %v6149_v14 = vrot.slane %v7415_v33, %v5358_v32  ;;  %v1507_v27 = vrot.slane %v6128_v6, %v5380_v46  ;;  %v6166_v33 = vrot.slane %v1725_v26, %v5358_v32 }
 0x1ba   : > { %v3963_v19 = vmax.f32 %v6153_v53, 0.0  ;;  %399 = vst.msk [vmem:[%s6169_s19 + $0x20] sm:$0x1] %vm396_vm5, %v7416_v51  ;;  %v7417_v26 = vcombine.high %v5538_v3, %v5538_v3  ;;  %403 = vst.msk [vmem:[%s6169_s19 + $0x60] sm:$0x1] %vm396_vm5, %v7418_v35  ;;  %v7419_v3 = vcombine.high %v5557_v52, %v5557_v52  ;;  %v7421_v52 = vcombine.high %v5550_v58, %v5550_v58  ;;  %v7432_v35 = vld [vmem:[#allocation26_spill] sm:$0xff] }
 0x1bb   : > { %1287 = vrot.lane.b32.xlu1 %v1272_v1, %s4911_s7  ;;  %v6156_v1 = vpop.permute.xlu1 %497  ;;  %659 = vst.msk [vmem:[%s6169_s19 + $0x21] sm:$0x1] %vm396_vm5, %v7420_v31  ;;  %v7423_v45 = vcombine.high %v5547_v12, %v5547_v12  ;;  %v7425_v12 = vcombine.high %v5634_v23, %v5634_v23  ;;  %v7426_v51 = vcombine.high %v5649_v49, %v5649_v49  ;;  %1180 = vst.msk [vmem:[%s6169_s19 + $0x53] sm:$0x1] %vm396_vm5, %v7432_v35 }
 0x1bc   : > { %400 = vst.msk [vmem:[%s6169_s19 + $0x30] sm:$0x1] %vm396_vm5, %v7417_v26  ;;  %404 = vst.msk [vmem:[%s6169_s19 + $0x70] sm:$0x1] %vm396_vm5, %v7419_v3  ;;  %v7427_v23 = vcombine.high %v5646_v44, %v5646_v44  ;;  %v7428_v49 = vcombine.high %v5672_v55, %v5672_v55  ;;  %v7429_v44 = vcombine.high %v5652_v41, %v5652_v41  ;;  %v7431_v26 = vld [vmem:[#allocation25_spill] sm:$0xff] }
 0x1bd   : > { %1532 = vrot.lane.b32.xlu0 %v1503_v17, %s4911_s7  ;;  %660 = vst.msk [vmem:[%s6169_s19 + $0x31] sm:$0x1] %vm396_vm5, %v7421_v52  ;;  %v7422_v17 = vld [vmem:[#allocation22_spill] sm:$0xff]  ;;  %663 = vst.msk [vmem:[%s6169_s19 + $0x61] sm:$0x1] %vm396_vm5, %v7423_v45  ;;  %v7430_v55 = vcombine.high %v5669_v39, %v5669_v39  ;;  %v7433_v41 = vcombine.high %v7431_v26, %v7431_v26  ;;  %v7434_v39 = vcombine.high %v7432_v35, %v7432_v35  ;;  %v7441_v45 = vld [vmem:[#allocation27_spill] sm:$0xff] }
 0x1be   : > { %662 = vst.msk [vmem:[%s6169_s19 + $0x51] sm:$0x1] %vm396_vm5, %v7422_v17  ;;  %v7424_v58 = vcombine.high %v7422_v17, %v7422_v17  ;;  %918 = vst.msk [vmem:[%s6169_s19 + $0x22] sm:$0x1] %vm396_vm5, %v7425_v12  ;;  %v7435_v3 = vcombine.high %v5767_v40, %v5767_v40  ;;  %v7436_v31 = vcombine.high %v5784_v28, %v5784_v28  ;;  %v7437_v52 = vld [vmem:[#allocation10_spill] sm:$0xff]  ;;  %v7438_v17 = vld [vmem:[#allocation8_spill] sm:$0xff] }
 0x1bf   : > { %919 = vst.msk [vmem:[%s6169_s19 + $0x32] sm:$0x1] %vm396_vm5, %v7426_v51  ;;  %922 = vst.msk [vmem:[%s6169_s19 + $0x62] sm:$0x1] %vm396_vm5, %v7427_v23  ;;  %v7439_v40 = vcombine.high %v7437_v52, %v7437_v52  ;;  %v7440_v28 = vcombine.high %v7438_v17, %v7438_v17  ;;  %v7443_v12 = vcombine.high %v7441_v45, %v7441_v45  ;;  %v7445_v23 = vld [vmem:[#allocation30_spill] sm:$0xff]  ;;  %1534 = vrot.lane.b32.xlu1 %v1507_v27, %s4911_s7  ;;  %v758_v27 = vpop.permute.xlu1 %757 }
 0x1c0   : > { %664 = vst.msk [vmem:[%s6169_s19 + $0x71] sm:$0x1] %vm396_vm5, %v7424_v58  ;;  %923 = vst.msk [vmem:[%s6169_s19 + $0x72] sm:$0x1] %vm396_vm5, %v7428_v49  ;;  %v7442_v58 = vld [vmem:[#allocation31_spill] sm:$0xff]  ;;  %v7446_v49 = vld [vmem:[#allocation9_spill] sm:$0xff]  ;;  %v7450_v35 = vcombine.high %v5891_v60, %v5891_v60  ;;  %v7452_v60 = vcombine.high %v5894_v61, %v5894_v61  ;;  %v7454_v61 = vcombine.high %v5824_v38, %v5824_v38 }
 0x1c1   : > { %1177 = vst.msk [vmem:[%s6169_s19 + $0x23] sm:$0x1] %vm396_vm5, %v7429_v44  ;;  %1178 = vst.msk [vmem:[%s6169_s19 + $0x33] sm:$0x1] %vm396_vm5, %v7430_v55  ;;  %v7444_v51 = vcombine.high %v7442_v58, %v7442_v58  ;;  %v7447_v44 = vcombine.high %v7445_v23, %v7445_v23  ;;  %v7448_v55 = vcombine.high %v7446_v49, %v7446_v49 }
 0x1c2   : > { %1179 = vst.msk [vmem:[%s6169_s19 + $0x43] sm:$0x1] %vm396_vm5, %v7431_v26  ;;  %1181 = vst.msk [vmem:[%s6169_s19 + $0x63] sm:$0x1] %vm396_vm5, %v7433_v41  ;;  %v7449_v26 = vcombine.high %v5873_v56, %v5873_v56  ;;  %v7451_v56 = vcombine.high %v5888_v4, %v5888_v4  ;;  %v7453_v4 = vcombine.high %v5809_v62, %v5809_v62  ;;  %v7459_v41 = vld [vmem:[#allocation33_spill] sm:$0xff] }
 0x1c3   : > { %1182 = vst.msk [vmem:[%s6169_s19 + $0x73] sm:$0x1] %vm396_vm5, %v7434_v39  ;;  %1436 = vst.msk [vmem:[%s6169_s19 + $0x24] sm:$0x1] %vm396_vm5, %v7435_v3  ;;  %v7455_v62 = vcombine.high %v5819_v5, %v5819_v5  ;;  %v7456_v38 = vcombine.high %v5877_v25, %v5877_v25  ;;  %v7457_v5 = vcombine.high %v5900_v24, %v5900_v24  ;;  %v7462_v39 = vld [vmem:[#allocation11_spill] sm:$0xff]  ;;  %v7463_v3 = vld [vmem:[#allocation16_spill] sm:$0xff] }
 0x1c4   : > { %1437 = vst.msk [vmem:[%s6169_s19 + $0x34] sm:$0x1] %vm396_vm5, %v7436_v31  ;;  %1438 = vst.msk [vmem:[%s6169_s19 + $0x44] sm:$0x1] %vm396_vm5, %v7437_v52  ;;  %v7458_v25 = vcombine.high %v5916_v42, %v5916_v42  ;;  %v7460_v24 = vcombine.high %v5911_v48, %v5911_v48  ;;  %v7461_v42 = vcombine.high %v7459_v41, %v7459_v41  ;;  %v7466_v52 = vld [vmem:[#allocation14_spill] sm:$0xff] }
 0x1c5   : > { %1439 = vst.msk [vmem:[%s6169_s19 + $0x54] sm:$0x1] %vm396_vm5, %v7438_v17  ;;  %1440 = vst.msk [vmem:[%s6169_s19 + $0x64] sm:$0x1] %vm396_vm5, %v7439_v40  ;;  %v7464_v48 = vcombine.high %v7462_v39, %v7462_v39  ;;  %v7465_v31 = vcombine.high %v7463_v3, %v7463_v3  ;;  %v7467_v17 = vld [vmem:[#allocation32_spill] sm:$0xff]  ;;  %v7468_v40 = vcombine.high %v7466_v52, %v7466_v52 }
 0x1c6   : > { %1441 = vst.msk [vmem:[%s6169_s19 + $0x74] sm:$0x1] %vm396_vm5, %v7440_v28  ;;  %1693 = vst.msk [vmem:[%s6169_s19 + $0x5] sm:$0x1] %vm396_vm5, %v7441_v45  ;;  %v7469_v28 = vcombine.high %v7467_v17, %v7467_v17  ;;  %v7470_v45 = vcombine.high %v6014_v11, %v6014_v11  ;;  %v7472_v11 = vcombine.high %v6030_v20, %v6030_v20 }
 0x1c7   : > { %1694 = vst.msk [vmem:[%s6169_s19 + $0x15] sm:$0x1] %vm396_vm5, %v7442_v58  ;;  %1695 = vst.msk [vmem:[%s6169_s19 + $0x25] sm:$0x1] %vm396_vm5, %v7443_v12  ;;  %v7471_v58 = vcombine.high %v6039_v36, %v6039_v36  ;;  %v7473_v36 = vld [vmem:[#allocation35_spill] sm:$0xff]  ;;  %v7474_v20 = vcombine.high %v5975_v59, %v5975_v59  ;;  %v7477_v12 = vld [vmem:[#allocation36_spill] sm:$0xff]  ;;  %v7478_v59 = vcombine.high %v7476_v2, %v7476_v2 }
 0x1c8   : > { %1696 = vst.msk [vmem:[%s6169_s19 + $0x35] sm:$0x1] %vm396_vm5, %v7444_v51  ;;  %1697 = vst.msk [vmem:[%s6169_s19 + $0x45] sm:$0x1] %vm396_vm5, %v7445_v23  ;;  %v7475_v7 = vcombine.high %v7473_v36, %v7473_v36  ;;  %v7479_v51 = vcombine.high %v7477_v12, %v7477_v12  ;;  %v7480_v23 = vcombine.high %v6082_v50, %v6082_v50 }
 0x1c9   : > { %1698 = vst.msk [vmem:[%s6169_s19 + $0x55] sm:$0x1] %vm396_vm5, %v7446_v49  ;;  %1699 = vst.msk [vmem:[%s6169_s19 + $0x65] sm:$0x1] %vm396_vm5, %v7447_v44  ;;  %v7481_v16 = vcombine.high %v6088_v54, %v6088_v54  ;;  %v7482_v8 = vcombine.high %v6065_v43, %v6065_v43  ;;  %v7485_v43 = vcombine.high %v6079_v18, %v6079_v18 }
 0x1ca   : > { %1700 = vst.msk [vmem:[%s6169_s19 + $0x75] sm:$0x1] %vm396_vm5, %v7448_v55  ;;  %1954 = vst.msk [vmem:[%s6169_s19 + $0x26] sm:$0x1] %vm396_vm5, %v7449_v26  ;;  %v4228_v44 = vpack.c.bf16 %v4222_v63, %v4222_v63  ;;  %v1498_v53 = vcombine.high %v6128_v6, %v6128_v6  ;;  %v6655_v63 = vrot.slane %v6149_v14, %v5358_v32 }
 0x1cb   : > { %1955 = vst.msk [vmem:[%s6169_s19 + $0x36] sm:$0x1] %vm396_vm5, %v7450_v35  ;;  %1958 = vst.msk [vmem:[%s6169_s19 + $0x66] sm:$0x1] %vm396_vm5, %v7451_v56  ;;  %v1757_v9 = vcombine.high %v6166_v33, %v6166_v33 }
 0x1cc   : > { %1959 = vst.msk [vmem:[%s6169_s19 + $0x76] sm:$0x1] %vm396_vm5, %v7452_v60  ;;  %2213 = vst.msk [vmem:[%s6169_s19 + $0x27] sm:$0x1] %vm396_vm5, %v7453_v4  ;;  %v4229_v37 = vunpack.c.l.bf16 %v4228_v44  ;;  %v1515_v35 = vrot.slane %v1498_v53, %v5380_v46  ;;  %v1519_v56 = vrot.slane %v6655_v63, %v5380_v46 }
 0x1cd   : > { %2214 = vst.msk [vmem:[%s6169_s19 + $0x37] sm:$0x1] %vm396_vm5, %v7454_v61  ;;  %2217 = vst.msk [vmem:[%s6169_s19 + $0x67] sm:$0x1] %vm396_vm5, %v7455_v62 }
 0x1ce   : > { %2218 = vst.msk [vmem:[%s6169_s19 + $0x77] sm:$0x1] %vm396_vm5, %v7456_v38  ;;  %2472 = vst.msk [vmem:[%s6169_s19 + $0x28] sm:$0x1] %vm396_vm5, %v7457_v5 }
 0x1cf   : > { %2473 = vst.msk [vmem:[%s6169_s19 + $0x38] sm:$0x1] %vm396_vm5, %v7458_v25  ;;  %2475 = vst.msk [vmem:[%s6169_s19 + $0x58] sm:$0x1] %vm396_vm5, %v7459_v41 }
 0x1d0   : > { %2476 = vst.msk [vmem:[%s6169_s19 + $0x68] sm:$0x1] %vm396_vm5, %v7460_v24  ;;  %2477 = vst.msk [vmem:[%s6169_s19 + $0x78] sm:$0x1] %vm396_vm5, %v7461_v42 }
 0x1d1   : > { %2729 = vst.msk [vmem:[%s6169_s19 + $0x9] sm:$0x1] %vm396_vm5, %v7462_v39  ;;  %2730 = vst.msk [vmem:[%s6169_s19 + $0x19] sm:$0x1] %vm396_vm5, %v7463_v3  ;;  %v500_v38 = vpop.permute.xlu0 %499 }
 0x1d2   : > { %2731 = vst.msk [vmem:[%s6169_s19 + $0x29] sm:$0x1] %vm396_vm5, %v7464_v48  ;;  %2732 = vst.msk [vmem:[%s6169_s19 + $0x39] sm:$0x1] %vm396_vm5, %v7465_v31  ;;  %v502_v5 = vpop.permute.xlu1 %501 }
 0x1d3   : > { %2733 = vst.msk [vmem:[%s6169_s19 + $0x49] sm:$0x1] %vm396_vm5, %v7466_v52  ;;  %2734 = vst.msk [vmem:[%s6169_s19 + $0x59] sm:$0x1] %vm396_vm5, %v7467_v17 }
 0x1d4   : > { %2735 = vst.msk [vmem:[%s6169_s19 + $0x69] sm:$0x1] %vm396_vm5, %v7468_v40  ;;  %2736 = vst.msk [vmem:[%s6169_s19 + $0x79] sm:$0x1] %vm396_vm5, %v7469_v28 }
 0x1d5   : > { %2990 = vst.msk [vmem:[%s6169_s19 + $0x2a] sm:$0x1] %vm396_vm5, %v7470_v45  ;;  %2991 = vst.msk [vmem:[%s6169_s19 + $0x3a] sm:$0x1] %vm396_vm5, %v7471_v58 }
 0x1d6   : > { %2994 = vst.msk [vmem:[%s6169_s19 + $0x6a] sm:$0x1] %vm396_vm5, %v7472_v11  ;;  %3248 = vst.msk [vmem:[%s6169_s19 + $0x1b] sm:$0x1] %vm396_vm5, %v7473_v36 }
 0x1d7   : > { %3249 = vst.msk [vmem:[%s6169_s19 + $0x2b] sm:$0x1] %vm396_vm5, %v7474_v20  ;;  %3250 = vst.msk [vmem:[%s6169_s19 + $0x3b] sm:$0x1] %vm396_vm5, %v7475_v7  ;;  %v504_v20 = vpop.permute.xlu0 %503 }
 0x1d8   : > { %3252 = vst.msk [vmem:[%s6169_s19 + $0x5b] sm:$0x1] %vm396_vm5, %v7477_v12  ;;  %3253 = vst.msk [vmem:[%s6169_s19 + $0x6b] sm:$0x1] %vm396_vm5, %v7478_v59 }
 0x1d9   : > { %3254 = vst.msk [vmem:[%s6169_s19 + $0x7b] sm:$0x1] %vm396_vm5, %v7479_v51  ;;  %3508 = vst.msk [vmem:[%s6169_s19 + $0x2c] sm:$0x1] %vm396_vm5, %v3502_v30  ;;  %v7487_v30 = vunpack.c.l.bf16 %v6100_v34  ;;  %v3969_v34 = vpack.c.bf16 %v3963_v19, %v3963_v19 }
 0x1da   : > { %3509 = vst.msk [vmem:[%s6169_s19 + $0x3c] sm:$0x1] %vm396_vm5, %v3504_v10  ;;  %3510 = vst.msk [vmem:[%s6169_s19 + $0x4c] sm:$0x1] %vm396_vm5, %v6082_v50  ;;  %v7483_v50 = vcombine.high %v6076_v15, %v6076_v15 }
 0x1db   : > { %3511 = vst.msk [vmem:[%s6169_s19 + $0x5c] sm:$0x1] %vm396_vm5, %v6088_v54  ;;  %3512 = vst.msk [vmem:[%s6169_s19 + $0x6c] sm:$0x1] %vm396_vm5, %v7480_v23  ;;  %v7484_v54 = vcombine.high %v6068_v0, %v6068_v0  ;;  %v3972_v49 = vshrl.u32 %v7487_v30, 16  ;;  %v1774_v23 = vrot.slane %v1757_v9, %v5380_v46 }
 0x1dc   : > { %3513 = vst.msk [vmem:[%s6169_s19 + $0x7c] sm:$0x1] %vm396_vm5, %v7481_v16  ;;  %3766 = vst.msk [vmem:[%s6169_s19 + $0x1d] sm:$0x1] %vm396_vm5, %v6076_v15  ;;  %v7486_v15 = vunpack.c.l.bf16 %v6098_v21  ;;  %v1467_v21 = vcombine.high %v6149_v14, %v6149_v14  ;;  %v1755_v14 = vcombine.high %v6143_v57, %v6143_v57 }
 0x1dd   : > { %3767 = vst.msk [vmem:[%s6169_s19 + $0x2d] sm:$0x1] %vm396_vm5, %v7482_v8  ;;  %3768 = vst.msk [vmem:[%s6169_s19 + $0x3d] sm:$0x1] %vm396_vm5, %v7483_v50 }
 0x1de   : > { %3769 = vst.msk [vmem:[%s6169_s19 + $0x4d] sm:$0x1] %vm396_vm5, %v6068_v0  ;;  %3770 = vst.msk [vmem:[%s6169_s19 + $0x5d] sm:$0x1] %vm396_vm5, %v6079_v18  ;;  %v4231_v10 = vshrl.u32 %v7486_v15, 16  ;;  %v1762_v0 = vrot.slane %v6143_v57, %v5380_v46  ;;  %v1496_v18 = vcombine.high %v6112_v22, %v6112_v22  ;;  %v1766_v22 = vrot.slane %v6166_v33, %v5380_v46  ;;  %v7488_v15 = vld [vmem:[#allocation20_spill] sm:$0xff] }
 0x1df   : > { %3771 = vst.msk [vmem:[%s6169_s19 + $0x6d] sm:$0x1] %vm396_vm5, %v7484_v54  ;;  %3772 = vst.msk [vmem:[%s6169_s19 + $0x7d] sm:$0x1] %vm396_vm5, %v7485_v43  ;;  %v6666_v55 = vrot.slane %v1467_v21, %v5358_v32  ;;  %v1770_v7 = vrot.slane %v1755_v14, %v5380_v46  ;;  %v1497_v54 = vcombine.high %v6655_v63, %v6655_v63  ;;  %v506_v43 = vpop.permute.xlu1 %505 }
 0x1e0   : > { %512 = vst.msk [vmem:[%s6169_s19] sm:$0x1] %vm511_vm6, %v6102_v47  ;;  %513 = vst.msk [vmem:[%s6169_s19 + $0x10] sm:$0x1] %vm511_vm6, %v6156_v1  ;;  %1791 = vrot.lane.b32.xlu0 %v1762_v0, %s4911_s7  ;;  %v3970_v47 = vunpack.c.l.bf16 %v3969_v34  ;;  %v6661_v1 = vrot.slane %v1710_v29, %v5358_v32  ;;  %1793 = vrot.lane.b32.xlu1 %v1766_v22, %s4911_s7  ;;  %v1511_v19 = vrot.slane %v1496_v18, %v5380_v46  ;;  %v7489_v18 = vld [vmem:[#allocation21_spill] sm:$0xff] }
 0x1e1   : > { %771 = vst.msk [vmem:[%s6169_s19 + $0x1] sm:$0x1] %vm511_vm6, %v6158_v13  ;;  %v4233_v13 = vor.u32 %v4231_v10, %v4229_v37  ;;  %772 = vst.msk [vmem:[%s6169_s19 + $0x11] sm:$0x1] %vm511_vm6, %v758_v27  ;;  %v1523_v25 = vrot.slane %v6666_v55, %v5380_v46  ;;  %v1976_v10 = vrot.slane %v7488_v15, %v5358_v32 }
 0x1e2   : > { %v3974_v6 = vor.u32 %v3972_v49, %v3970_v47  ;;  %v1726_v57 = vcombine.high %v6661_v1, %v6661_v1  ;;  %514 = vst.msk [vmem:[%s6169_s19 + $0x20] sm:$0x1] %vm511_vm6, %v500_v38  ;;  %515 = vst.msk [vmem:[%s6169_s19 + $0x30] sm:$0x1] %vm511_vm6, %v502_v5  ;;  %v1740_v45 = vrot.slane %v6661_v1, %v5358_v32 }
 0x1e3   : > { %v4234_v29 = vcombine.high %v4233_v13, %v4233_v13  ;;  %v4241_v26 = vrot.slane %v4233_v13, %v5358_v32  ;;  %516 = vst.msk [vmem:[%s6169_s19 + $0x40] sm:$0x1] %vm511_vm6, %v504_v20  ;;  %v1499_v49 = vcombine.high %v6666_v55, %v6666_v55  ;;  %517 = vst.msk [vmem:[%s6169_s19 + $0x50] sm:$0x1] %vm511_vm6, %v506_v43  ;;  %v762_v14 = vpop.permute.xlu1 %761  ;;  %v7490_v20 = vld [vmem:[#allocation23_spill] sm:$0xff] }
 0x1e4   : > { %1536 = vrot.lane.b32.xlu0 %v1511_v19, %s4911_s7  ;;  %v3975_v60 = vcombine.high %v3974_v6, %v3974_v6  ;;  %v3982_v4 = vrot.slane %v3974_v6, %v5358_v32  ;;  %1538 = vrot.lane.b32.xlu1 %v1515_v35, %s4911_s7  ;;  %v1754_v16 = vrot.slane %v1726_v57, %v5358_v32  ;;  %v760_v19 = vpop.permute.xlu0 %759 }
 0x1e5   : > { %v4248_v33 = vrot.slane %v4234_v29, %v5358_v32  ;;  %v4249_v61 = vcombine.high %v4241_v26, %v4241_v26  ;;  %v4257_v62 = vrot.slane %v4241_v26, %v5358_v32  ;;  %v1778_v50 = vrot.slane %v1740_v45, %v5380_v46  ;;  %773 = vst.msk [vmem:[%s6169_s19 + $0x21] sm:$0x1] %vm511_vm6, %v760_v19 }
 0x1e6   : > { %v3989_v41 = vrot.slane %v3975_v60, %v5358_v32  ;;  %v3990_v24 = vcombine.high %v3982_v4, %v3982_v4  ;;  %v3998_v42 = vrot.slane %v3982_v4, %v5358_v32  ;;  %v1782_v30 = vrot.slane %v1754_v16, %v5380_v46  ;;  %774 = vst.msk [vmem:[%s6169_s19 + $0x31] sm:$0x1] %vm511_vm6, %v762_v14 }
 0x1e7   : > { %v4250_v39 = vcombine.high %v4248_v33, %v4248_v33  ;;  %v4264_v3 = vrot.slane %v4248_v33, %v5358_v32  ;;  %v4271_v48 = vrot.slane %v4249_v61, %v5358_v32  ;;  %v4279_v31 = vcombine.high %v4257_v62, %v4257_v62  ;;  %4283 = vst.msk [vmem:[%s6169_s19 + $0xf] sm:$0x1] %vm396_vm5, %v4257_v62 }
 0x1e8   : > { %1540 = vrot.lane.b32.xlu0 %v1519_v56, %s4911_s7  ;;  %v3991_v52 = vcombine.high %v3989_v41, %v3989_v41  ;;  %v4005_v17 = vrot.slane %v3989_v41, %v5358_v32  ;;  %v4012_v40 = vrot.slane %v3990_v24, %v5358_v32  ;;  %v4020_v28 = vcombine.high %v3998_v42, %v3998_v42  ;;  %v764_v35 = vpop.permute.xlu0 %763 }
 0x1e9   : > { %4024 = vst.msk [vmem:[%s6169_s19 + $0xe] sm:$0x1] %vm396_vm5, %v3998_v42  ;;  %v4278_v58 = vrot.slane %v4250_v39, %v5358_v32  ;;  %v4280_v11 = vcombine.high %v4264_v3, %v4264_v3  ;;  %v4281_v36 = vcombine.high %v4271_v48, %v4271_v48  ;;  %4284 = vst.msk [vmem:[%s6169_s19 + $0x1f] sm:$0x1] %vm396_vm5, %v4271_v48  ;;  %1542 = vrot.lane.b32.xlu1 %v1523_v25, %s4911_s7 }
 0x1ea   : > { %4285 = vst.msk [vmem:[%s6169_s19 + $0x2f] sm:$0x1] %vm396_vm5, %v4279_v31  ;;  %4287 = vst.msk [vmem:[%s6169_s19 + $0x4f] sm:$0x1] %vm396_vm5, %v4264_v3  ;;  %v4019_v2 = vrot.slane %v3991_v52, %v5358_v32  ;;  %v4021_v12 = vcombine.high %v4005_v17, %v4005_v17  ;;  %v4022_v59 = vcombine.high %v4012_v40, %v4012_v40 }
 0x1eb   : > { %4025 = vst.msk [vmem:[%s6169_s19 + $0x1e] sm:$0x1] %vm396_vm5, %v4012_v40  ;;  %4026 = vst.msk [vmem:[%s6169_s19 + $0x2e] sm:$0x1] %vm396_vm5, %v4020_v28  ;;  %v4282_v51 = vcombine.high %v4278_v58, %v4278_v58  ;;  %v1527_v44 = vrot.slane %v1497_v54, %v5380_v46  ;;  %v1756_v0 = vcombine.high %v1740_v45, %v1740_v45 }
 0x1ec   : > { %4028 = vst.msk [vmem:[%s6169_s19 + $0x4e] sm:$0x1] %vm396_vm5, %v4005_v17  ;;  %4286 = vst.msk [vmem:[%s6169_s19 + $0x3f] sm:$0x1] %vm396_vm5, %v4281_v36  ;;  %1795 = vrot.lane.b32.xlu0 %v1770_v7, %s4911_s7  ;;  %v4023_v8 = vcombine.high %v4019_v2, %v4019_v2  ;;  %v2235_v21 = vrot.slane %v7489_v18, %v5358_v32  ;;  %v1531_v34 = vrot.slane %v1499_v49, %v5380_v46  ;;  %v766_v24 = vpop.permute.xlu1 %765 }
 0x1ed   : > { %4288 = vst.msk [vmem:[%s6169_s19 + $0x5f] sm:$0x1] %vm396_vm5, %v4278_v58  ;;  %4289 = vst.msk [vmem:[%s6169_s19 + $0x6f] sm:$0x1] %vm396_vm5, %v4280_v11  ;;  %1797 = vrot.lane.b32.xlu1 %v1774_v23, %s4911_s7  ;;  %v1758_v37 = vcombine.high %v1754_v16, %v1754_v16  ;;  %v1984_v22 = vcombine.high %v1976_v10, %v1976_v10  ;;  %v1786_v53 = vrot.slane %v1756_v0, %v5380_v46  ;;  %v7491_v16 = vld [vmem:[#allocation24_spill] sm:$0xff] }
 0x1ee   : > { %4027 = vst.msk [vmem:[%s6169_s19 + $0x3e] sm:$0x1] %vm396_vm5, %v4022_v59  ;;  %4029 = vst.msk [vmem:[%s6169_s19 + $0x5e] sm:$0x1] %vm396_vm5, %v4019_v2  ;;  %v1992_v63 = vrot.slane %v1976_v10, %v5358_v32  ;;  %v1969_v47 = vcombine.high %v7488_v15, %v7488_v15  ;;  %v2243_v27 = vcombine.high %v2235_v21, %v2235_v21 }
 0x1ef   : > { %4030 = vst.msk [vmem:[%s6169_s19 + $0x6e] sm:$0x1] %vm396_vm5, %v4021_v12  ;;  %4290 = vst.msk [vmem:[%s6169_s19 + $0x7f] sm:$0x1] %vm396_vm5, %v4282_v51  ;;  %v1790_v1 = vrot.slane %v1758_v37, %v5380_v46  ;;  %v2006_v13 = vrot.slane %v1984_v22, %v5358_v32  ;;  %v2251_v6 = vrot.slane %v2235_v21, %v5358_v32 }
 0x1f0   : > { %4031 = vst.msk [vmem:[%s6169_s19 + $0x7e] sm:$0x1] %vm396_vm5, %v4023_v8  ;;  %1799 = vrot.lane.b32.xlu0 %v1778_v50, %s4911_s7  ;;  %v2021_v55 = vrot.slane %v1992_v63, %v5380_v46  ;;  %v2265_v29 = vrot.slane %v2243_v27, %v5358_v32  ;;  %v1983_v26 = vrot.slane %v1969_v47, %v5358_v32 }
 0x1f1   : > { %1801 = vrot.lane.b32.xlu1 %v1782_v30, %s4911_s7  ;;  %v2025_v9 = vrot.slane %v2006_v13, %v5380_v46  ;;  %v2280_v56 = vrot.slane %v2251_v6, %v5380_v46  ;;  %v2014_v60 = vcombine.high %v1992_v63, %v1992_v63  ;;  %775 = vst.msk [vmem:[%s6169_s19 + $0x41] sm:$0x1] %vm511_vm6, %v764_v35  ;;  %776 = vst.msk [vmem:[%s6169_s19 + $0x51] sm:$0x1] %vm511_vm6, %v766_v24 }
 0x1f2   : > { %v2228_v4 = vcombine.high %v7489_v18, %v7489_v18  ;;  %v2284_v57 = vrot.slane %v2265_v29, %v5380_v46  ;;  %v2016_v33 = vcombine.high %v2006_v13, %v2006_v13  ;;  %v1985_v61 = vcombine.high %v1983_v26, %v1983_v26 }
 0x1f3   : > { %v2029_v62 = vrot.slane %v2014_v60, %v5380_v46  ;;  %v1999_v38 = vrot.slane %v1983_v26, %v5358_v32  ;;  %v2273_v39 = vcombine.high %v2251_v6, %v2251_v6  ;;  %v2275_v48 = vcombine.high %v2265_v29, %v2265_v29  ;;  %v508_v45 = vpop.permute.xlu0 %507 }
 0x1f4   : > { %1544 = vrot.lane.b32.xlu0 %v1527_v44, %s4911_s7  ;;  %v2033_v5 = vrot.slane %v2016_v33, %v5380_v46  ;;  %v2013_v25 = vrot.slane %v1985_v61, %v5358_v32  ;;  %v2242_v41 = vrot.slane %v2228_v4, %v5358_v32  ;;  %518 = vst.msk [vmem:[%s6169_s19 + $0x60] sm:$0x1] %vm511_vm6, %v508_v45  ;;  %v510_v36 = vpop.permute.xlu1 %509 }
 0x1f5   : > { %1546 = vrot.lane.b32.xlu1 %v1531_v34, %s4911_s7  ;;  %v2037_v42 = vrot.slane %v1999_v38, %v5380_v46  ;;  %v2288_v52 = vrot.slane %v2273_v39, %v5380_v46  ;;  %v2292_v40 = vrot.slane %v2275_v48, %v5380_v46  ;;  %v2015_v11 = vcombine.high %v1999_v38, %v1999_v38 }
 0x1f6   : > { %v2041_v3 = vrot.slane %v2013_v25, %v5380_v46  ;;  %v2244_v31 = vcombine.high %v2242_v41, %v2242_v41  ;;  %v2258_v17 = vrot.slane %v2242_v41, %v5358_v32  ;;  %519 = vst.msk [vmem:[%s6169_s19 + $0x70] sm:$0x1] %vm511_vm6, %v510_v36  ;;  %v2494_v7 = vrot.slane %v7490_v20, %v5358_v32 }
 0x1f7   : > { %v2017_v12 = vcombine.high %v2013_v25, %v2013_v25  ;;  %v768_v59 = vpop.permute.xlu0 %767  ;;  %v2045_v51 = vrot.slane %v2015_v11, %v5380_v46  ;;  %v2753_v8 = vrot.slane %v7491_v16, %v5358_v32  ;;  %v2487_v49 = vcombine.high %v7490_v20, %v7490_v20 }
 0x1f8   : > { %1803 = vrot.lane.b32.xlu0 %v1786_v53, %s4911_s7  ;;  %v2272_v28 = vrot.slane %v2244_v31, %v5358_v32  ;;  %v2296_v58 = vrot.slane %v2258_v17, %v5380_v46  ;;  %v2274_v23 = vcombine.high %v2258_v17, %v2258_v17  ;;  %777 = vst.msk [vmem:[%s6169_s19 + $0x61] sm:$0x1] %vm511_vm6, %v768_v59  ;;  %v7493_v17 = vld [vmem:[#allocation29_spill] sm:$0xff] }
 0x1f9   : > { %1805 = vrot.lane.b32.xlu1 %v1790_v1, %s4911_s7  ;;  %v2049_v50 = vrot.slane %v2017_v12, %v5380_v46  ;;  %v2502_v43 = vcombine.high %v2494_v7, %v2494_v7  ;;  %v2510_v30 = vrot.slane %v2494_v7, %v5358_v32  ;;  %v2761_v18 = vcombine.high %v2753_v8, %v2753_v8 }
 0x1fa   : > { %v2300_v2 = vrot.slane %v2272_v28, %v5380_v46  ;;  %v2276_v54 = vcombine.high %v2272_v28, %v2272_v28  ;;  %v770_v15 = vpop.permute.xlu1 %769  ;;  %v2304_v10 = vrot.slane %v2274_v23, %v5380_v46  ;;  %v2769_v34 = vrot.slane %v2753_v8, %v5358_v32 }
 0x1fb   : > { %778 = vst.msk [vmem:[%s6169_s19 + $0x71] sm:$0x1] %vm511_vm6, %v770_v15  ;;  %v2524_v0 = vrot.slane %v2502_v43, %v5358_v32  ;;  %v2539_v21 = vrot.slane %v2510_v30, %v5380_v46  ;;  %v2783_v22 = vrot.slane %v2761_v18, %v5358_v32  ;;  %v2501_v53 = vrot.slane %v2487_v49, %v5358_v32 }
 0x1fc   : > { %2050 = vrot.lane.b32.xlu0 %v2021_v55, %s4911_s7  ;;  %v2308_v44 = vrot.slane %v2276_v54, %v5380_v46  ;;  %v2798_v63 = vrot.slane %v2769_v34, %v5380_v46  ;;  %v2532_v47 = vcombine.high %v2510_v30, %v2510_v30  ;;  %v2746_v1 = vcombine.high %v7491_v16, %v7491_v16 }
 0x1fd   : > { %2052 = vrot.lane.b32.xlu1 %v2025_v9, %s4911_s7  ;;  %v2543_v37 = vrot.slane %v2524_v0, %v5380_v46  ;;  %v2802_v13 = vrot.slane %v2783_v22, %v5380_v46  ;;  %v2534_v27 = vcombine.high %v2524_v0, %v2524_v0  ;;  %v2503_v19 = vcombine.high %v2501_v53, %v2501_v53 }
 0x1fe   : > { %v2547_v6 = vrot.slane %v2532_v47, %v5380_v46  ;;  %v2517_v14 = vrot.slane %v2501_v53, %v5358_v32  ;;  %v2760_v35 = vrot.slane %v2746_v1, %v5358_v32  ;;  %v2791_v4 = vcombine.high %v2769_v34, %v2769_v34 }
 0x1ff   : > { %v2551_v9 = vrot.slane %v2534_v27, %v5380_v46  ;;  %v2531_v29 = vrot.slane %v2503_v19, %v5358_v32  ;;  %v2793_v33 = vcombine.high %v2783_v22, %v2783_v22  ;;  %v3264_v0 = vcombine.high %v7493_v17, %v7493_v17 }
 0x200   : > { %2309 = vrot.lane.b32.xlu0 %v2280_v56, %s4911_s7  ;;  %v2555_v60 = vrot.slane %v2517_v14, %v5380_v46  ;;  %v2762_v61 = vcombine.high %v2760_v35, %v2760_v35  ;;  %v2776_v38 = vrot.slane %v2760_v35, %v5358_v32  ;;  %v2533_v24 = vcombine.high %v2517_v14, %v2517_v14 }
 0x201   : > { %2311 = vrot.lane.b32.xlu1 %v2284_v57, %s4911_s7  ;;  %v2559_v57 = vrot.slane %v2531_v29, %v5380_v46  ;;  %v2535_v48 = vcombine.high %v2531_v29, %v2531_v29  ;;  %v3278_v27 = vrot.slane %v3264_v0, %v5358_v32 }
 0x202   : > { %v2790_v25 = vrot.slane %v2762_v61, %v5358_v32  ;;  %v2814_v41 = vrot.slane %v2776_v38, %v5380_v46  ;;  %v2563_v31 = vrot.slane %v2533_v24, %v5380_v46 }
 0x203   : > { %v2567_v45 = vrot.slane %v2535_v48, %v5380_v46 }
 0x204   : > { %2054 = vrot.lane.b32.xlu0 %v2029_v62, %s4911_s7  ;;  %v2806_v62 = vrot.slane %v2791_v4, %v5380_v46 }
 0x205   : > { %2056 = vrot.lane.b32.xlu1 %v2033_v5, %s4911_s7  ;;  %v1015_v55 = vpop.permute.xlu0 %1014  ;;  %v2810_v5 = vrot.slane %v2793_v33, %v5380_v46 }
 0x206   : > { %1030 = vst.msk [vmem:[%s6169_s19 + $0x2] sm:$0x1] %vm511_vm6, %v1015_v55 }
 0x208   : > { %2058 = vrot.lane.b32.xlu0 %v2037_v42, %s4911_s7  ;;  %v1017_v26 = vpop.permute.xlu1 %1016  ;;  %v7492_v42 = vld [vmem:[#allocation28_spill] sm:$0xff] }
 0x209   : > { %2060 = vrot.lane.b32.xlu1 %v2041_v3, %s4911_s7  ;;  %1031 = vst.msk [vmem:[%s6169_s19 + $0x12] sm:$0x1] %vm511_vm6, %v1017_v26  ;;  %v1274_v56 = vpop.permute.xlu0 %1273  ;;  %v3012_v39 = vrot.slane %v7492_v42, %v5358_v32  ;;  %v2818_v3 = vrot.slane %v2790_v25, %v5380_v46  ;;  %v3280_v26 = vcombine.high %v3278_v27, %v3278_v27 }
 0x20a   : > { %1289 = vst.msk [vmem:[%s6169_s19 + $0x3] sm:$0x1] %vm511_vm6, %v1274_v56 }
 0x20b   : > { %v3020_v11 = vcombine.high %v3012_v39, %v3012_v39  ;;  %v3028_v7 = vrot.slane %v3012_v39, %v5358_v32  ;;  %v3308_v33 = vrot.slane %v3280_v26, %v5358_v32 }
 0x20c   : > { %2313 = vrot.lane.b32.xlu0 %v2288_v52, %s4911_s7  ;;  %v2792_v52 = vcombine.high %v2776_v38, %v2776_v38 }
 0x20d   : > { %2315 = vrot.lane.b32.xlu1 %v2292_v40, %s4911_s7  ;;  %v3271_v40 = vrot.slane %v7493_v17, %v5358_v32  ;;  %v3057_v8 = vrot.slane %v3028_v7, %v5380_v46  ;;  %v3336_v24 = vrot.slane %v3308_v33, %v5380_v46 }
 0x20e   : > { %v2822_v20 = vrot.slane %v2792_v52, %v5380_v46  ;;  %v7495_v52 = vld [vmem:[#allocation13_spill] sm:$0xff] }
 0x20f   : > { %v3279_v23 = vcombine.high %v3271_v40, %v3271_v40  ;;  %v3789_v17 = vrot.slane %v7495_v52, %v5358_v32 }
 0x210   : > { %2317 = vrot.lane.b32.xlu0 %v2296_v58, %s4911_s7  ;;  %v2794_v58 = vcombine.high %v2790_v25, %v2790_v25 }
 0x211   : > { %2319 = vrot.lane.b32.xlu1 %v2300_v2, %s4911_s7  ;;  %v3005_v2 = vcombine.high %v7492_v42, %v7492_v42  ;;  %v3301_v15 = vrot.slane %v3279_v23, %v5358_v32 }
 0x212   : > { %v2826_v59 = vrot.slane %v2794_v58, %v5380_v46 }
 0x213   : > { %v3311_v29 = vcombine.high %v3301_v15, %v3301_v15 }
 0x214   : > { %2062 = vrot.lane.b32.xlu0 %v2045_v51, %s4911_s7  ;;  %v3042_v51 = vrot.slane %v3020_v11, %v5358_v32 }
 0x215   : > { %2064 = vrot.lane.b32.xlu1 %v2049_v50, %s4911_s7  ;;  %v1276_v28 = vpop.permute.xlu1 %1275  ;;  %v3287_v50 = vrot.slane %v3271_v40, %v5358_v32  ;;  %v3312_v40 = vcombine.high %v3308_v33, %v3308_v33 }
 0x216   : > { %1290 = vst.msk [vmem:[%s6169_s19 + $0x13] sm:$0x1] %vm511_vm6, %v1276_v28  ;;  %v1019_v36 = vpop.permute.xlu0 %1018  ;;  %v3061_v43 = vrot.slane %v3042_v51, %v5380_v46  ;;  %v3052_v34 = vcombine.high %v3042_v51, %v3042_v51  ;;  %v3805_v51 = vrot.slane %v3789_v17, %v5358_v32 }
 0x217   : > { %1032 = vst.msk [vmem:[%s6169_s19 + $0x22] sm:$0x1] %vm511_vm6, %v1019_v36  ;;  %v3316_v49 = vrot.slane %v3287_v50, %v5380_v46 }
 0x218   : > { %2321 = vrot.lane.b32.xlu0 %v2304_v10, %s4911_s7  ;;  %v3019_v10 = vrot.slane %v3005_v2, %v5358_v32  ;;  %v3069_v1 = vrot.slane %v3052_v34, %v5380_v46 }
 0x219   : > { %2323 = vrot.lane.b32.xlu1 %v2308_v44, %s4911_s7  ;;  %v1021_v12 = vpop.permute.xlu1 %1020  ;;  %v3050_v44 = vcombine.high %v3028_v7, %v3028_v7  ;;  %v3797_v7 = vcombine.high %v3789_v17, %v3789_v17 }
 0x21a   : > { %1033 = vst.msk [vmem:[%s6169_s19 + $0x32] sm:$0x1] %vm511_vm6, %v1021_v12  ;;  %v3344_v12 = vrot.slane %v3312_v40, %v5380_v46 }
 0x21b   : > { %v1023_v16 = vpop.permute.xlu0 %1022  ;;  %v3065_v53 = vrot.slane %v3050_v44, %v5380_v46  ;;  %v3782_v44 = vcombine.high %v7495_v52, %v7495_v52 }
 0x21c   : > { %2568 = vrot.lane.b32.xlu0 %v2539_v21, %s4911_s7  ;;  %1034 = vst.msk [vmem:[%s6169_s19 + $0x42] sm:$0x1] %vm511_vm6, %v1023_v16  ;;  %v3320_v21 = vrot.slane %v3301_v15, %v5380_v46 }
 0x21d   : > { %2570 = vrot.lane.b32.xlu1 %v2543_v37, %s4911_s7  ;;  %v1025_v54 = vpop.permute.xlu1 %1024  ;;  %v3021_v37 = vcombine.high %v3019_v10, %v3019_v10 }
 0x21e   : > { %1035 = vst.msk [vmem:[%s6169_s19 + $0x52] sm:$0x1] %vm511_vm6, %v1025_v54 }
 0x21f   : > { %v1278_v30 = vpop.permute.xlu0 %1277 }
 0x220   : > { %2827 = vrot.lane.b32.xlu0 %v2798_v63, %s4911_s7  ;;  %1291 = vst.msk [vmem:[%s6169_s19 + $0x23] sm:$0x1] %vm511_vm6, %v1278_v30  ;;  %v3035_v63 = vrot.slane %v3019_v10, %v5358_v32  ;;  %v3834_v10 = vrot.slane %v3805_v51, %v5380_v46 }
 0x221   : > { %2829 = vrot.lane.b32.xlu1 %v2802_v13, %s4911_s7  ;;  %v1280_v18 = vpop.permute.xlu1 %1279  ;;  %v3049_v13 = vrot.slane %v3021_v37, %v5358_v32 }
 0x222   : > { %1292 = vst.msk [vmem:[%s6169_s19 + $0x33] sm:$0x1] %vm511_vm6, %v1280_v18  ;;  %v3073_v55 = vrot.slane %v3035_v63, %v5380_v46  ;;  %v3051_v38 = vcombine.high %v3035_v63, %v3035_v63 }
 0x223   : > { %v1282_v22 = vpop.permute.xlu0 %1281  ;;  %v3053_v42 = vcombine.high %v3049_v13, %v3049_v13 }
 0x224   : > { %2572 = vrot.lane.b32.xlu0 %v2547_v6, %s4911_s7  ;;  %1293 = vst.msk [vmem:[%s6169_s19 + $0x43] sm:$0x1] %vm511_vm6, %v1282_v22  ;;  %v3309_v6 = vcombine.high %v3287_v50, %v3287_v50  ;;  %v3081_v48 = vrot.slane %v3051_v38, %v5380_v46 }
 0x225   : > { %2574 = vrot.lane.b32.xlu1 %v2551_v9, %s4911_s7  ;;  %v1284_v47 = vpop.permute.xlu1 %1283  ;;  %v3077_v9 = vrot.slane %v3049_v13, %v5380_v46 }
 0x226   : > { %1294 = vst.msk [vmem:[%s6169_s19 + $0x53] sm:$0x1] %vm511_vm6, %v1284_v47  ;;  %v3324_v56 = vrot.slane %v3309_v6, %v5380_v46 }
 0x227   : > { %v1027_v19 = vpop.permute.xlu0 %1026 }
 0x228   : > { %2576 = vrot.lane.b32.xlu0 %v2555_v60, %s4911_s7  ;;  %1036 = vst.msk [vmem:[%s6169_s19 + $0x62] sm:$0x1] %vm511_vm6, %v1027_v19  ;;  %v3294_v60 = vrot.slane %v3278_v27, %v5358_v32  ;;  %v3827_v19 = vcombine.high %v3805_v51, %v3805_v51 }
 0x229   : > { %2578 = vrot.lane.b32.xlu1 %v2559_v57, %s4911_s7  ;;  %v1029_v14 = vpop.permute.xlu1 %1028  ;;  %v3328_v57 = vrot.slane %v3311_v29, %v5380_v46 }
 0x22a   : > { %1037 = vst.msk [vmem:[%s6169_s19 + $0x72] sm:$0x1] %vm511_vm6, %v1029_v14  ;;  %v3310_v39 = vcombine.high %v3294_v60, %v3294_v60  ;;  %v3842_v26 = vrot.slane %v3827_v19, %v5380_v46 }
 0x22b   : > { %v1286_v35 = vpop.permute.xlu0 %1285 }
 0x22c   : > { %2831 = vrot.lane.b32.xlu0 %v2806_v62, %s4911_s7  ;;  %1295 = vst.msk [vmem:[%s6169_s19 + $0x63] sm:$0x1] %vm511_vm6, %v1286_v35  ;;  %v3332_v62 = vrot.slane %v3294_v60, %v5380_v46  ;;  %v3340_v36 = vrot.slane %v3310_v39, %v5380_v46 }
 0x22d   : > { %2833 = vrot.lane.b32.xlu1 %v2810_v5, %s4911_s7  ;;  %v1288_v4 = vpop.permute.xlu1 %1287  ;;  %v7494_v5 = vld [vmem:[#allocation12_spill] sm:$0xff] }
 0x22e   : > { %1296 = vst.msk [vmem:[%s6169_s19 + $0x73] sm:$0x1] %vm511_vm6, %v1288_v4  ;;  %v3530_v25 = vrot.slane %v7494_v5, %v5358_v32 }
 0x22f   : > { %v1533_v61 = vpop.permute.xlu0 %1532 }
 0x230   : > { %2835 = vrot.lane.b32.xlu0 %v2814_v41, %s4911_s7  ;;  %1548 = vst.msk [vmem:[%s6169_s19 + $0x4] sm:$0x1] %vm511_vm6, %v1533_v61  ;;  %v3546_v58 = vrot.slane %v3530_v25, %v5358_v32 }
 0x231   : > { %2837 = vrot.lane.b32.xlu1 %v2818_v3, %s4911_s7  ;;  %v1535_v41 = vpop.permute.xlu1 %1534 }
 0x232   : > { %1549 = vst.msk [vmem:[%s6169_s19 + $0x14] sm:$0x1] %vm511_vm6, %v1535_v41  ;;  %v3575_v16 = vrot.slane %v3546_v58, %v5380_v46  ;;  %v3568_v30 = vcombine.high %v3546_v58, %v3546_v58 }
 0x234   : > { %2580 = vrot.lane.b32.xlu0 %v2563_v31, %s4911_s7  ;;  %v3538_v31 = vcombine.high %v3530_v25, %v3530_v25  ;;  %v3583_v37 = vrot.slane %v3568_v30, %v5380_v46 }
 0x235   : > { %2582 = vrot.lane.b32.xlu1 %v2567_v45, %s4911_s7  ;;  %v3085_v45 = vrot.slane %v3053_v42, %v5380_v46 }
 0x238   : > { %2839 = vrot.lane.b32.xlu0 %v2822_v20, %s4911_s7  ;;  %v3523_v20 = vcombine.high %v7494_v5, %v7494_v5 }
 0x239   : > { %2841 = vrot.lane.b32.xlu1 %v2826_v59, %s4911_s7  ;;  %v3560_v59 = vrot.slane %v3538_v31, %v5358_v32 }
 0x23b   : > { %v3579_v54 = vrot.slane %v3560_v59, %v5380_v46 }
 0x23c   : > { %3086 = vrot.lane.b32.xlu0 %v3057_v8, %s4911_s7  ;;  %v3537_v8 = vrot.slane %v3523_v20, %v5358_v32 }
 0x23d   : > { %3088 = vrot.lane.b32.xlu1 %v3061_v43, %s4911_s7  ;;  %v3819_v43 = vrot.slane %v3797_v7, %v5358_v32 }
 0x23e   : > { %v3553_v22 = vrot.slane %v3537_v8, %v5358_v32 }
 0x23f   : > { %v3838_v18 = vrot.slane %v3819_v43, %v5380_v46 }
 0x240   : > { %3345 = vrot.lane.b32.xlu0 %v3316_v49, %s4911_s7  ;;  %v3539_v49 = vcombine.high %v3537_v8, %v3537_v8  ;;  %v3591_v27 = vrot.slane %v3553_v22, %v5380_v46  ;;  %v3569_v61 = vcombine.high %v3553_v22, %v3553_v22 }
 0x241   : > { %3347 = vrot.lane.b32.xlu1 %v3320_v21, %s4911_s7  ;;  %v3570_v21 = vcombine.high %v3560_v59, %v3560_v59 }
 0x242   : > { %v3599_v42 = vrot.slane %v3569_v61, %v5380_v46 }
 0x243   : > { %v3587_v47 = vrot.slane %v3570_v21, %v5380_v46 }
 0x244   : > { %3090 = vrot.lane.b32.xlu0 %v3065_v53, %s4911_s7  ;;  %v3796_v53 = vrot.slane %v3782_v44, %v5358_v32 }
 0x245   : > { %3092 = vrot.lane.b32.xlu1 %v3069_v1, %s4911_s7  ;;  %v3567_v1 = vrot.slane %v3539_v49, %v5358_v32 }
 0x246   : > { %v3812_v35 = vrot.slane %v3796_v53, %v5358_v32 }
 0x247   : > { %v3595_v14 = vrot.slane %v3567_v1, %v5380_v46  ;;  %v3571_v41 = vcombine.high %v3567_v1, %v3567_v1 }
 0x248   : > { %3094 = vrot.lane.b32.xlu0 %v3073_v55, %s4911_s7  ;;  %v3798_v55 = vcombine.high %v3796_v53, %v3796_v53  ;;  %v3850_v33 = vrot.slane %v3812_v35, %v5380_v46  ;;  %v3828_v39 = vcombine.high %v3812_v35, %v3812_v35 }
 0x249   : > { %3096 = vrot.lane.b32.xlu1 %v3077_v9, %s4911_s7  ;;  %v3829_v9 = vcombine.high %v3819_v43, %v3819_v43  ;;  %v3603_v17 = vrot.slane %v3571_v41, %v5380_v46 }
 0x24a   : > { %v3826_v4 = vrot.slane %v3798_v55, %v5358_v32  ;;  %v3858_v58 = vrot.slane %v3828_v39, %v5380_v46 }
 0x24b   : > { %v3846_v60 = vrot.slane %v3829_v9, %v5380_v46 }
 0x24c   : > { %3349 = vrot.lane.b32.xlu0 %v3324_v56, %s4911_s7  ;;  %v3854_v25 = vrot.slane %v3826_v4, %v5380_v46  ;;  %v3830_v40 = vcombine.high %v3826_v4, %v3826_v4 }
 0x24d   : > { %3351 = vrot.lane.b32.xlu1 %v3328_v57, %s4911_s7 }
 0x24e   : > { %v3862_v7 = vrot.slane %v3830_v40, %v5380_v46 }
 0x250   : > { %3353 = vrot.lane.b32.xlu0 %v3332_v62, %s4911_s7  ;;  %v7496_v62 = vld [vmem:[#allocation19_spill] sm:$0xff] }
 0x251   : > { %3355 = vrot.lane.b32.xlu1 %v3336_v24, %s4911_s7  ;;  %v4048_v38 = vrot.slane %v7496_v62, %v5358_v32 }
 0x252   : > { %v1792_v3 = vpop.permute.xlu0 %1791  ;;  %v1794_v28 = vpop.permute.xlu1 %1793 }
 0x253   : > { %1807 = vst.msk [vmem:[%s6169_s19 + $0x5] sm:$0x1] %vm511_vm6, %v1792_v3  ;;  %1808 = vst.msk [vmem:[%s6169_s19 + $0x15] sm:$0x1] %vm511_vm6, %v1794_v28  ;;  %v4056_v3 = vcombine.high %v4048_v38, %v4048_v38  ;;  %v4064_v28 = vrot.slane %v4048_v38, %v5358_v32 }
 0x254   : > { %3098 = vrot.lane.b32.xlu0 %v3081_v48, %s4911_s7  ;;  %v7497_v48 = vld [vmem:[#allocation34_spill] sm:$0xff] }
 0x255   : > { %3100 = vrot.lane.b32.xlu1 %v3085_v45, %s4911_s7  ;;  %v4307_v31 = vrot.slane %v7497_v48, %v5358_v32  ;;  %v4093_v51 = vrot.slane %v4064_v28, %v5380_v46  ;;  %v4300_v30 = vcombine.high %v7497_v48, %v7497_v48 }
 0x256   : > { %v1537_v11 = vpop.permute.xlu0 %1536  ;;  %v1539_v2 = vpop.permute.xlu1 %1538 }
 0x257   : > { %1550 = vst.msk [vmem:[%s6169_s19 + $0x24] sm:$0x1] %vm511_vm6, %v1537_v11  ;;  %1551 = vst.msk [vmem:[%s6169_s19 + $0x34] sm:$0x1] %vm511_vm6, %v1539_v2  ;;  %v4041_v11 = vcombine.high %v7496_v62, %v7496_v62  ;;  %v4078_v2 = vrot.slane %v4056_v3, %v5358_v32 }
 0x258   : > { %3357 = vrot.lane.b32.xlu0 %v3340_v36, %s4911_s7  ;;  %v4315_v36 = vcombine.high %v4307_v31, %v4307_v31 }
 0x259   : > { %3359 = vrot.lane.b32.xlu1 %v3344_v12, %s4911_s7  ;;  %v4323_v12 = vrot.slane %v4307_v31, %v5358_v32  ;;  %v4097_v8 = vrot.slane %v4078_v2, %v5380_v46 }
 0x25a   : > { %v1541_v23 = vpop.permute.xlu0 %1540 }
 0x25b   : > { %1552 = vst.msk [vmem:[%s6169_s19 + $0x44] sm:$0x1] %vm511_vm6, %v1541_v23  ;;  %v1543_v50 = vpop.permute.xlu1 %1542  ;;  %v4055_v23 = vrot.slane %v4041_v11, %v5358_v32  ;;  %v4352_v43 = vrot.slane %v4323_v12, %v5380_v46 }
 0x25c   : > { %3604 = vrot.lane.b32.xlu0 %v3575_v16, %s4911_s7  ;;  %1553 = vst.msk [vmem:[%s6169_s19 + $0x54] sm:$0x1] %vm511_vm6, %v1543_v50  ;;  %v4337_v50 = vrot.slane %v4315_v36, %v5358_v32 }
 0x25d   : > { %3606 = vrot.lane.b32.xlu1 %v3579_v54, %s4911_s7 }
 0x25e   : > { %v1796_v15 = vpop.permute.xlu0 %1795  ;;  %v4356_v44 = vrot.slane %v4337_v50, %v5380_v46 }
 0x25f   : > { %1809 = vst.msk [vmem:[%s6169_s19 + $0x25] sm:$0x1] %vm511_vm6, %v1796_v15  ;;  %v1798_v0 = vpop.permute.xlu1 %1797  ;;  %v4086_v15 = vcombine.high %v4064_v28, %v4064_v28 }
 0x260   : > { %3863 = vrot.lane.b32.xlu0 %v3834_v10, %s4911_s7  ;;  %1810 = vst.msk [vmem:[%s6169_s19 + $0x35] sm:$0x1] %vm511_vm6, %v1798_v0  ;;  %v4057_v10 = vcombine.high %v4055_v23, %v4055_v23  ;;  %v4088_v0 = vcombine.high %v4078_v2, %v4078_v2 }
 0x261   : > { %3865 = vrot.lane.b32.xlu1 %v3838_v18, %s4911_s7  ;;  %v4101_v21 = vrot.slane %v4086_v15, %v5380_v46 }
 0x262   : > { %v1800_v34 = vpop.permute.xlu0 %1799  ;;  %v4105_v53 = vrot.slane %v4088_v0, %v5380_v46 }
 0x263   : > { %1811 = vst.msk [vmem:[%s6169_s19 + $0x45] sm:$0x1] %vm511_vm6, %v1800_v34  ;;  %v1802_v63 = vpop.permute.xlu1 %1801  ;;  %v4071_v34 = vrot.slane %v4055_v23, %v5358_v32 }
 0x264   : > { %3608 = vrot.lane.b32.xlu0 %v3583_v37, %s4911_s7  ;;  %1812 = vst.msk [vmem:[%s6169_s19 + $0x55] sm:$0x1] %vm511_vm6, %v1802_v63  ;;  %v4314_v37 = vrot.slane %v4300_v30, %v5358_v32  ;;  %v4085_v63 = vrot.slane %v4057_v10, %v5358_v32 }
 0x265   : > { %3610 = vrot.lane.b32.xlu1 %v3587_v47, %s4911_s7  ;;  %v4109_v1 = vrot.slane %v4071_v34, %v5380_v46 }
 0x266   : > { %v1545_v13 = vpop.permute.xlu0 %1544  ;;  %v4113_v55 = vrot.slane %v4085_v63, %v5380_v46  ;;  %v4089_v62 = vcombine.high %v4085_v63, %v4085_v63 }
 0x267   : > { %1554 = vst.msk [vmem:[%s6169_s19 + $0x64] sm:$0x1] %vm511_vm6, %v1545_v13  ;;  %v1547_v6 = vpop.permute.xlu1 %1546  ;;  %v4345_v13 = vcombine.high %v4323_v12, %v4323_v12 }
 0x268   : > { %3612 = vrot.lane.b32.xlu0 %v3591_v27, %s4911_s7  ;;  %1555 = vst.msk [vmem:[%s6169_s19 + $0x74] sm:$0x1] %vm511_vm6, %v1547_v6  ;;  %v4316_v27 = vcombine.high %v4314_v37, %v4314_v37  ;;  %v4347_v6 = vcombine.high %v4337_v50, %v4337_v50  ;;  %v4121_v41 = vrot.slane %v4089_v62, %v5380_v46 }
 0x269   : > { %3614 = vrot.lane.b32.xlu1 %v3595_v14, %s4911_s7  ;;  %v4360_v9 = vrot.slane %v4345_v13, %v5380_v46 }
 0x26a   : > { %v1804_v29 = vpop.permute.xlu0 %1803  ;;  %v4364_v35 = vrot.slane %v4347_v6, %v5380_v46 }
 0x26b   : > { %1813 = vst.msk [vmem:[%s6169_s19 + $0x65] sm:$0x1] %vm511_vm6, %v1804_v29  ;;  %v1806_v56 = vpop.permute.xlu1 %1805  ;;  %v4330_v29 = vrot.slane %v4314_v37, %v5358_v32 }
 0x26c   : > { %3867 = vrot.lane.b32.xlu0 %v3842_v26, %s4911_s7  ;;  %1814 = vst.msk [vmem:[%s6169_s19 + $0x75] sm:$0x1] %vm511_vm6, %v1806_v56  ;;  %v4344_v56 = vrot.slane %v4316_v27, %v5358_v32 }
 0x26d   : > { %3869 = vrot.lane.b32.xlu1 %v3846_v60, %s4911_s7  ;;  %v4368_v4 = vrot.slane %v4330_v29, %v5380_v46 }
 0x26e   : > { %v2051_v57 = vpop.permute.xlu0 %2050  ;;  %v4372_v61 = vrot.slane %v4344_v56, %v5380_v46 }
 0x26f   : > { %2066 = vst.msk [vmem:[%s6169_s19 + $0x6] sm:$0x1] %vm511_vm6, %v2051_v57  ;;  %v2053_v5 = vpop.permute.xlu1 %2052  ;;  %v4087_v57 = vcombine.high %v4071_v34, %v4071_v34 }
 0x270   : > { %3871 = vrot.lane.b32.xlu0 %v3850_v33, %s4911_s7  ;;  %2067 = vst.msk [vmem:[%s6169_s19 + $0x16] sm:$0x1] %vm511_vm6, %v2053_v5  ;;  %v4346_v5 = vcombine.high %v4330_v29, %v4330_v29 }
 0x271   : > { %3873 = vrot.lane.b32.xlu1 %v3854_v25, %s4911_s7  ;;  %v4117_v38 = vrot.slane %v4087_v57, %v5380_v46 }
 0x272   : > { %v2310_v24 = vpop.permute.xlu0 %2309  ;;  %v4376_v39 = vrot.slane %v4346_v5, %v5380_v46 }
 0x273   : > { %2325 = vst.msk [vmem:[%s6169_s19 + $0x7] sm:$0x1] %vm511_vm6, %v2310_v24  ;;  %v2312_v52 = vpop.permute.xlu1 %2311  ;;  %v4348_v24 = vcombine.high %v4344_v56, %v4344_v56 }
 0x274   : > { %3616 = vrot.lane.b32.xlu0 %v3599_v42, %s4911_s7  ;;  %2326 = vst.msk [vmem:[%s6169_s19 + $0x17] sm:$0x1] %vm511_vm6, %v2312_v52 }
 0x275   : > { %3618 = vrot.lane.b32.xlu1 %v3603_v17, %s4911_s7  ;;  %v4380_v48 = vrot.slane %v4348_v24, %v5380_v46 }
 0x276   : > { %v2055_v45 = vpop.permute.xlu0 %2054 }
 0x277   : > { %2068 = vst.msk [vmem:[%s6169_s19 + $0x26] sm:$0x1] %vm511_vm6, %v2055_v45  ;;  %v2057_v20 = vpop.permute.xlu1 %2056 }
 0x278   : > { %3875 = vrot.lane.b32.xlu0 %v3858_v58, %s4911_s7  ;;  %2069 = vst.msk [vmem:[%s6169_s19 + $0x36] sm:$0x1] %vm511_vm6, %v2057_v20 }
 0x279   : > { %3877 = vrot.lane.b32.xlu1 %v3862_v7, %s4911_s7 }
 0x27a   : > { %v2059_v59 = vpop.permute.xlu0 %2058 }
 0x27b   : > { %2070 = vst.msk [vmem:[%s6169_s19 + $0x46] sm:$0x1] %vm511_vm6, %v2059_v59  ;;  %v2061_v16 = vpop.permute.xlu1 %2060 }
 0x27c   : > { %4122 = vrot.lane.b32.xlu0 %v4093_v51, %s4911_s7  ;;  %2071 = vst.msk [vmem:[%s6169_s19 + $0x56] sm:$0x1] %vm511_vm6, %v2061_v16 }
 0x27d   : > { %4124 = vrot.lane.b32.xlu1 %v4097_v8, %s4911_s7 }
 0x27e   : > { %v2314_v54 = vpop.permute.xlu0 %2313 }
 0x27f   : > { %2327 = vst.msk [vmem:[%s6169_s19 + $0x27] sm:$0x1] %vm511_vm6, %v2314_v54  ;;  %v2316_v49 = vpop.permute.xlu1 %2315 }
 0x280   : > { %4381 = vrot.lane.b32.xlu0 %v4352_v43, %s4911_s7  ;;  %2328 = vst.msk [vmem:[%s6169_s19 + $0x37] sm:$0x1] %vm511_vm6, %v2316_v49 }
 0x281   : > { %4383 = vrot.lane.b32.xlu1 %v4356_v44, %s4911_s7 }
 0x282   : > { %v2318_v18 = vpop.permute.xlu0 %2317 }
 0x283   : > { %2329 = vst.msk [vmem:[%s6169_s19 + $0x47] sm:$0x1] %vm511_vm6, %v2318_v18  ;;  %v2320_v22 = vpop.permute.xlu1 %2319 }
 0x284   : > { %4126 = vrot.lane.b32.xlu0 %v4101_v21, %s4911_s7  ;;  %2330 = vst.msk [vmem:[%s6169_s19 + $0x57] sm:$0x1] %vm511_vm6, %v2320_v22 }
 0x285   : > { %4128 = vrot.lane.b32.xlu1 %v4105_v53, %s4911_s7 }
 0x286   : > { %v2063_v47 = vpop.permute.xlu0 %2062 }
 0x287   : > { %2072 = vst.msk [vmem:[%s6169_s19 + $0x66] sm:$0x1] %vm511_vm6, %v2063_v47  ;;  %v2065_v19 = vpop.permute.xlu1 %2064 }
 0x288   : > { %4130 = vrot.lane.b32.xlu0 %v4109_v1, %s4911_s7  ;;  %2073 = vst.msk [vmem:[%s6169_s19 + $0x76] sm:$0x1] %vm511_vm6, %v2065_v19 }
 0x289   : > { %4132 = vrot.lane.b32.xlu1 %v4113_v55, %s4911_s7 }
 0x28a   : > { %v2322_v14 = vpop.permute.xlu0 %2321 }
 0x28b   : > { %2331 = vst.msk [vmem:[%s6169_s19 + $0x67] sm:$0x1] %vm511_vm6, %v2322_v14  ;;  %v2324_v26 = vpop.permute.xlu1 %2323 }
 0x28c   : > { %4385 = vrot.lane.b32.xlu0 %v4360_v9, %s4911_s7  ;;  %2332 = vst.msk [vmem:[%s6169_s19 + $0x77] sm:$0x1] %vm511_vm6, %v2324_v26 }
 0x28d   : > { %4387 = vrot.lane.b32.xlu1 %v4364_v35, %s4911_s7 }
 0x28e   : > { %v2569_v60 = vpop.permute.xlu0 %2568 }
 0x28f   : > { %2584 = vst.msk [vmem:[%s6169_s19 + $0x8] sm:$0x1] %vm511_vm6, %v2569_v60  ;;  %v2571_v33 = vpop.permute.xlu1 %2570 }
 0x290   : > { %4389 = vrot.lane.b32.xlu0 %v4368_v4, %s4911_s7  ;;  %2585 = vst.msk [vmem:[%s6169_s19 + $0x18] sm:$0x1] %vm511_vm6, %v2571_v33 }
 0x291   : > { %4391 = vrot.lane.b32.xlu1 %v4372_v61, %s4911_s7 }
 0x292   : > { %v2828_v32 = vpop.permute.xlu0 %2827 }
 0x293   : > { %2843 = vst.msk [vmem:[%s6169_s19 + $0x9] sm:$0x1] %vm511_vm6, %v2828_v32  ;;  %v2830_v25 = vpop.permute.xlu1 %2829 }
 0x294   : > { %4134 = vrot.lane.b32.xlu0 %v4117_v38, %s4911_s7  ;;  %2844 = vst.msk [vmem:[%s6169_s19 + $0x19] sm:$0x1] %vm511_vm6, %v2830_v25 }
 0x295   : > { %4136 = vrot.lane.b32.xlu1 %v4121_v41, %s4911_s7 }
 0x296   : > { %v2573_v42 = vpop.permute.xlu0 %2572 }
 0x297   : > { %2586 = vst.msk [vmem:[%s6169_s19 + $0x28] sm:$0x1] %vm511_vm6, %v2573_v42  ;;  %v2575_v3 = vpop.permute.xlu1 %2574 }
 0x298   : > { %4393 = vrot.lane.b32.xlu0 %v4376_v39, %s4911_s7  ;;  %2587 = vst.msk [vmem:[%s6169_s19 + $0x38] sm:$0x1] %vm511_vm6, %v2575_v3 }
 0x299   : > { %4395 = vrot.lane.b32.xlu1 %v4380_v48, %s4911_s7 }
 0x29a   : > { %v2577_v31 = vpop.permute.xlu0 %2576 }
 0x29b   : > { %2588 = vst.msk [vmem:[%s6169_s19 + $0x48] sm:$0x1] %vm511_vm6, %v2577_v31  ;;  %v2579_v52 = vpop.permute.xlu1 %2578 }
 0x29c   : > { %2589 = vst.msk [vmem:[%s6169_s19 + $0x58] sm:$0x1] %vm511_vm6, %v2579_v52 }
 0x29e   : > { %v2832_v17 = vpop.permute.xlu0 %2831 }
 0x29f   : > { %2845 = vst.msk [vmem:[%s6169_s19 + $0x29] sm:$0x1] %vm511_vm6, %v2832_v17  ;;  %v2834_v40 = vpop.permute.xlu1 %2833 }
 0x2a0   : > { %2846 = vst.msk [vmem:[%s6169_s19 + $0x39] sm:$0x1] %vm511_vm6, %v2834_v40 }
 0x2a2   : > { %v2836_v46 = vpop.permute.xlu0 %2835 }
 0x2a3   : > { %2847 = vst.msk [vmem:[%s6169_s19 + $0x49] sm:$0x1] %vm511_vm6, %v2836_v46  ;;  %v2838_v28 = vpop.permute.xlu1 %2837 }
 0x2a4   : > { %2848 = vst.msk [vmem:[%s6169_s19 + $0x59] sm:$0x1] %vm511_vm6, %v2838_v28 }
 0x2a6   : > { %v2581_v45 = vpop.permute.xlu0 %2580 }
 0x2a7   : > { %2590 = vst.msk [vmem:[%s6169_s19 + $0x68] sm:$0x1] %vm511_vm6, %v2581_v45  ;;  %v2583_v58 = vpop.permute.xlu1 %2582 }
 0x2a8   : > { %2591 = vst.msk [vmem:[%s6169_s19 + $0x78] sm:$0x1] %vm511_vm6, %v2583_v58 }
 0x2aa   : > { %v2840_v11 = vpop.permute.xlu0 %2839 }
 0x2ab   : > { %2849 = vst.msk [vmem:[%s6169_s19 + $0x69] sm:$0x1] %vm511_vm6, %v2840_v11  ;;  %v2842_v36 = vpop.permute.xlu1 %2841 }
 0x2ac   : > { %2850 = vst.msk [vmem:[%s6169_s19 + $0x79] sm:$0x1] %vm511_vm6, %v2842_v36 }
 0x2ae   : > { %v3087_v20 = vpop.permute.xlu0 %3086 }
 0x2af   : > { %3102 = vst.msk [vmem:[%s6169_s19 + $0xa] sm:$0x1] %vm511_vm6, %v3087_v20  ;;  %v3089_v7 = vpop.permute.xlu1 %3088 }
 0x2b0   : > { %3103 = vst.msk [vmem:[%s6169_s19 + $0x1a] sm:$0x1] %vm511_vm6, %v3089_v7 }
 0x2b2   : > { %v3346_v2 = vpop.permute.xlu0 %3345 }
 0x2b3   : > { %3361 = vst.msk [vmem:[%s6169_s19 + $0xb] sm:$0x1] %vm511_vm6, %v3346_v2  ;;  %v3348_v12 = vpop.permute.xlu1 %3347 }
 0x2b4   : > { %3362 = vst.msk [vmem:[%s6169_s19 + $0x1b] sm:$0x1] %vm511_vm6, %v3348_v12 }
 0x2b6   : > { %v3091_v59 = vpop.permute.xlu0 %3090 }
 0x2b7   : > { %3104 = vst.msk [vmem:[%s6169_s19 + $0x2a] sm:$0x1] %vm511_vm6, %v3091_v59  ;;  %v3093_v51 = vpop.permute.xlu1 %3092 }
 0x2b8   : > { %3105 = vst.msk [vmem:[%s6169_s19 + $0x3a] sm:$0x1] %vm511_vm6, %v3093_v51 }
 0x2ba   : > { %v3095_v23 = vpop.permute.xlu0 %3094 }
 0x2bb   : > { %3106 = vst.msk [vmem:[%s6169_s19 + $0x4a] sm:$0x1] %vm511_vm6, %v3095_v23  ;;  %v3097_v16 = vpop.permute.xlu1 %3096 }
 0x2bc   : > { %3107 = vst.msk [vmem:[%s6169_s19 + $0x5a] sm:$0x1] %vm511_vm6, %v3097_v16 }
 0x2be   : > { %v3350_v8 = vpop.permute.xlu0 %3349 }
 0x2bf   : > { %3363 = vst.msk [vmem:[%s6169_s19 + $0x2b] sm:$0x1] %vm511_vm6, %v3350_v8  ;;  %v3352_v50 = vpop.permute.xlu1 %3351 }
 0x2c0   : > { %3364 = vst.msk [vmem:[%s6169_s19 + $0x3b] sm:$0x1] %vm511_vm6, %v3352_v50 }
 0x2c2   : > { %v3354_v54 = vpop.permute.xlu0 %3353 }
 0x2c3   : > { %3365 = vst.msk [vmem:[%s6169_s19 + $0x4b] sm:$0x1] %vm511_vm6, %v3354_v54  ;;  %v3356_v43 = vpop.permute.xlu1 %3355 }
 0x2c4   : > { %3366 = vst.msk [vmem:[%s6169_s19 + $0x5b] sm:$0x1] %vm511_vm6, %v3356_v43 }
 0x2c6   : > { %v3099_v15 = vpop.permute.xlu0 %3098 }
 0x2c7   : > { %3108 = vst.msk [vmem:[%s6169_s19 + $0x6a] sm:$0x1] %vm511_vm6, %v3099_v15  ;;  %v3101_v10 = vpop.permute.xlu1 %3100 }
 0x2c8   : > { %3109 = vst.msk [vmem:[%s6169_s19 + $0x7a] sm:$0x1] %vm511_vm6, %v3101_v10 }
 0x2ca   : > { %v3358_v30 = vpop.permute.xlu0 %3357 }
 0x2cb   : > { %3367 = vst.msk [vmem:[%s6169_s19 + $0x6b] sm:$0x1] %vm511_vm6, %v3358_v30  ;;  %v3360_v49 = vpop.permute.xlu1 %3359 }
 0x2cc   : > { %3368 = vst.msk [vmem:[%s6169_s19 + $0x7b] sm:$0x1] %vm511_vm6, %v3360_v49 }
 0x2ce   : > { %v3605_v44 = vpop.permute.xlu0 %3604 }
 0x2cf   : > { %3620 = vst.msk [vmem:[%s6169_s19 + $0xc] sm:$0x1] %vm511_vm6, %v3605_v44  ;;  %v3607_v0 = vpop.permute.xlu1 %3606 }
 0x2d0   : > { %3621 = vst.msk [vmem:[%s6169_s19 + $0x1c] sm:$0x1] %vm511_vm6, %v3607_v0 }
 0x2d2   : > { %v3864_v18 = vpop.permute.xlu0 %3863 }
 0x2d3   : > { %3879 = vst.msk [vmem:[%s6169_s19 + $0xd] sm:$0x1] %vm511_vm6, %v3864_v18  ;;  %v3866_v21 = vpop.permute.xlu1 %3865 }
 0x2d4   : > { %3880 = vst.msk [vmem:[%s6169_s19 + $0x1d] sm:$0x1] %vm511_vm6, %v3866_v21 }
 0x2d6   : > { %v3609_v34 = vpop.permute.xlu0 %3608 }
 0x2d7   : > { %3622 = vst.msk [vmem:[%s6169_s19 + $0x2c] sm:$0x1] %vm511_vm6, %v3609_v34  ;;  %v3611_v37 = vpop.permute.xlu1 %3610 }
 0x2d8   : > { %3623 = vst.msk [vmem:[%s6169_s19 + $0x3c] sm:$0x1] %vm511_vm6, %v3611_v37 }
 0x2da   : > { %v3613_v22 = vpop.permute.xlu0 %3612 }
 0x2db   : > { %3624 = vst.msk [vmem:[%s6169_s19 + $0x4c] sm:$0x1] %vm511_vm6, %v3613_v22  ;;  %v3615_v53 = vpop.permute.xlu1 %3614 }
 0x2dc   : > { %3625 = vst.msk [vmem:[%s6169_s19 + $0x5c] sm:$0x1] %vm511_vm6, %v3615_v53 }
 0x2de   : > { %v3868_v63 = vpop.permute.xlu0 %3867 }
 0x2df   : > { %3881 = vst.msk [vmem:[%s6169_s19 + $0x2d] sm:$0x1] %vm511_vm6, %v3868_v63  ;;  %v3870_v47 = vpop.permute.xlu1 %3869 }
 0x2e0   : > { %3882 = vst.msk [vmem:[%s6169_s19 + $0x3d] sm:$0x1] %vm511_vm6, %v3870_v47 }
 0x2e2   : > { %v3872_v1 = vpop.permute.xlu0 %3871 }
 0x2e3   : > { %3883 = vst.msk [vmem:[%s6169_s19 + $0x4d] sm:$0x1] %vm511_vm6, %v3872_v1  ;;  %v3874_v13 = vpop.permute.xlu1 %3873 }
 0x2e4   : > { %3884 = vst.msk [vmem:[%s6169_s19 + $0x5d] sm:$0x1] %vm511_vm6, %v3874_v13 }
 0x2e6   : > { %v3617_v27 = vpop.permute.xlu0 %3616 }
 0x2e7   : > { %3626 = vst.msk [vmem:[%s6169_s19 + $0x6c] sm:$0x1] %vm511_vm6, %v3617_v27  ;;  %v3619_v19 = vpop.permute.xlu1 %3618 }
 0x2e8   : > { %3627 = vst.msk [vmem:[%s6169_s19 + $0x7c] sm:$0x1] %vm511_vm6, %v3619_v19 }
 0x2ea   : > { %v3876_v55 = vpop.permute.xlu0 %3875 }
 0x2eb   : > { %3885 = vst.msk [vmem:[%s6169_s19 + $0x6d] sm:$0x1] %vm511_vm6, %v3876_v55  ;;  %v3878_v6 = vpop.permute.xlu1 %3877 }
 0x2ec   : > { %3886 = vst.msk [vmem:[%s6169_s19 + $0x7d] sm:$0x1] %vm511_vm6, %v3878_v6 }
 0x2ee   : > { %v4123_v14 = vpop.permute.xlu0 %4122 }
 0x2ef   : > { %4138 = vst.msk [vmem:[%s6169_s19 + $0xe] sm:$0x1] %vm511_vm6, %v4123_v14  ;;  %v4125_v9 = vpop.permute.xlu1 %4124 }
 0x2f0   : > { %4139 = vst.msk [vmem:[%s6169_s19 + $0x1e] sm:$0x1] %vm511_vm6, %v4125_v9 }
 0x2f2   : > { %v4382_v29 = vpop.permute.xlu0 %4381 }
 0x2f3   : > { %4397 = vst.msk [vmem:[%s6169_s19 + $0xf] sm:$0x1] %vm511_vm6, %v4382_v29  ;;  %v4384_v26 = vpop.permute.xlu1 %4383 }
 0x2f4   : > { %4398 = vst.msk [vmem:[%s6169_s19 + $0x1f] sm:$0x1] %vm511_vm6, %v4384_v26 }
 0x2f6   : > { %v4127_v35 = vpop.permute.xlu0 %4126 }
 0x2f7   : > { %4140 = vst.msk [vmem:[%s6169_s19 + $0x2e] sm:$0x1] %vm511_vm6, %v4127_v35  ;;  %v4129_v56 = vpop.permute.xlu1 %4128 }
 0x2f8   : > { %4141 = vst.msk [vmem:[%s6169_s19 + $0x3e] sm:$0x1] %vm511_vm6, %v4129_v56 }
 0x2fa   : > { %v4131_v60 = vpop.permute.xlu0 %4130 }
 0x2fb   : > { %4142 = vst.msk [vmem:[%s6169_s19 + $0x4e] sm:$0x1] %vm511_vm6, %v4131_v60  ;;  %v4133_v4 = vpop.permute.xlu1 %4132 }
 0x2fc   : > { %4143 = vst.msk [vmem:[%s6169_s19 + $0x5e] sm:$0x1] %vm511_vm6, %v4133_v4 }
 0x2fe   : > { %v4386_v57 = vpop.permute.xlu0 %4385 }
 0x2ff   : > { %4399 = vst.msk [vmem:[%s6169_s19 + $0x2f] sm:$0x1] %vm511_vm6, %v4386_v57  ;;  %v4388_v33 = vpop.permute.xlu1 %4387 }
 0x300   : > { %4400 = vst.msk [vmem:[%s6169_s19 + $0x3f] sm:$0x1] %vm511_vm6, %v4388_v33 }
 0x302   : > { %v4390_v61 = vpop.permute.xlu0 %4389 }
 0x303   : > { %4401 = vst.msk [vmem:[%s6169_s19 + $0x4f] sm:$0x1] %vm511_vm6, %v4390_v61  ;;  %v4392_v62 = vpop.permute.xlu1 %4391 }
 0x304   : > { %4402 = vst.msk [vmem:[%s6169_s19 + $0x5f] sm:$0x1] %vm511_vm6, %v4392_v62 }
 0x306   : > { %v4135_v32 = vpop.permute.xlu0 %4134 }
 0x307   : > { %4144 = vst.msk [vmem:[%s6169_s19 + $0x6e] sm:$0x1] %vm511_vm6, %v4135_v32  ;;  %v4137_v38 = vpop.permute.xlu1 %4136 }
 0x308   : > { %4145 = vst.msk [vmem:[%s6169_s19 + $0x7e] sm:$0x1] %vm511_vm6, %v4137_v38 }
 0x30a   : > { %v4394_v5 = vpop.permute.xlu0 %4393 }
 0x30b   : > { %4403 = vst.msk [vmem:[%s6169_s19 + $0x6f] sm:$0x1] %vm511_vm6, %v4394_v5  ;;  %v4396_v25 = vpop.permute.xlu1 %4395 }
 0x30c   : > { %4404 = vst.msk [vmem:[%s6169_s19 + $0x7f] sm:$0x1] %vm511_vm6, %v4396_v25 }
 0x30d   : > { %4835 = shalt.err (!%p4832_p5)
}
 0x30e   : > { %s4836_s29 = scalar_lea.hbm %s7251_s9, 2048  ;;  %s4840_s5 = scalar_lea.hbm %s7309_s3, 4096 }
 0x30f   : > { %p4837_p4 = scmp.ne.s32.totalorder %s7251_s9, %s4836_s29  ;;  %p4841_p12 = scmp.lt.u32.totalorder %s7251_s9, %s7309_s3 }
 0x310   : > { %p4842_p1 = scmp.lt.u32.totalorder %s4840_s5, %s4836_s29  ;;  %p4844_p8 = scmp.lt.u32.totalorder %s4836_s29, %s7251_s9 }
 0x311   : > { %p4838_p7 = pnand %p4837_p4, %p7498_p9 }
 0x312   : > { %p4843_p3 = por %p4842_p1, %p4841_p12 }
 0x313   : > { %p4839_p10 = pneg %p4838_p7 }
 0x314   : > { %p4845_p11 = por %p4844_p8, %p4843_p3 }
 0x316   : > { %p4846_p0 = pnand %p4845_p11, %p4839_p10 }
 0x318   : > { %4849 = shalt.err (!%p4846_p0)
}
 0x319   : > { %s4913_s19 = smov 128   ;;  %s4914_s21 = smov 8  }
 0x31a   : > { %4721 = dma.vmem_to_hbm [thread:$0]  (%p7498_p9), %s7253_s24, 2048, %s7251_s9, %s4406_s15, %s4913_s19, %s4913_s19, %s4914_s21  }
 0x31b PF: > { %s4436_s6 = sand.u32 1, %s4884_s12   ;;  %p7499_p6 = scmp.ne.s32.totalorder %s7359_s27, 0 }
 0x31c   : > { %p7500_p13 = scmp.ge.s32.totalorder %s4904_s17, 2  ;;  %s4437_s8 = scalar_lea.sflag [#allocation4], %s4436_s6 }
 0x31e   : > { %p4728_p2 = pnand %p7500_p13, %p7499_p6 }
 0x320   : > { %4879 = dma.done.wait (!%p4728_p2), %s4437_s8, 2048  }
 0x321   : > { %4881 = vsyncadd (!%p4728_p2), %s4437_s8, 4294965248  ;;  %s19_s17 = sadd.s32 1, %s4904_s17   ;;  %s7501_s12 = smov %s4888_s13 }
 0x322   : > { %p16_p5 = scmp.ge.s32.totalorder %s19_s17, 4   ;;  %s7502_s13 = smov %s4892_s14 }
 0x323   : > { %s7503_s14 = smov %s4991_s26  ;;  %s7504_s15 = smov %s4900_s16 }
 0x324   : > { %s7505_s16 = smov %s7507_s20  ;;  %18 = sbr.rel (!%p16_p5) target bundleno = 6 (0x6), region = 77 }
 0x32b   :  { %4442 = vsyncpa [#allocation3], 1 }
 0x32c   :  { %4444 = vsyncpa [#allocation3 + $0x1], 1 }
 0x32d   :  { %4445 = vsyncpa [#allocation4], 1 }
 0x32e   :  { %4447 = vsyncpa [#allocation4 + $0x1], 1 }

</bundles_post_ra>
